<compile_context>
chip_gen: v7x
topology: tpu7x:2x2x1
jax: 0.10.0
libtpu: 0.0.40
codegen_flags: <defaults>
</compile_context>

<pallas_src>
import functools
import math

import jax
import jax.numpy as jnp
from jax.experimental import pallas as pl
from jax.experimental.pallas import tpu as pltpu


# ------------------------------ configuration -------------------------------

class Config:
    vocab_size = 100
    hidden = 128          # lane-dense (multiple of 128)
    heads = 2             # head_dim = 64
    layers = 2
    intermediate = 512    # lane-dense
    max_pos = 128
    num_labels = 3
    cls_pad = 128         # classifier columns padded to a full lane tile
    ln_eps = 1e-12


# ------------------------------ kernel helpers -------------------------------

def _layernorm(x, gamma, beta, eps):
    mu = jnp.mean(x, axis=-1, keepdims=True)
    xc = x - mu
    var = jnp.mean(xc * xc, axis=-1, keepdims=True)
    return xc * jax.lax.rsqrt(var + eps) * gamma + beta


# --------------------------- embeddings + LayerNorm --------------------------

def _embed_ln_kernel(we_ref, pe_ref, te_ref, g_ref, b_ref, o_ref, *, eps):
    # we: (S,H) word emb rows for this batch element; pe: (S,H); te: (1,H)
    x = we_ref[...] + pe_ref[...] + te_ref[...]
    o_ref[...] = _layernorm(x, g_ref[...], b_ref[...], eps).astype(o_ref.dtype)


def embed_layernorm(we, pe, te, gamma, beta, cfg):
    B, S, H = we.shape
    return pl.pallas_call(
        functools.partial(_embed_ln_kernel, eps=cfg.ln_eps),
        grid=(B,),
        in_specs=[
            pl.BlockSpec((None, S, H), lambda b: (b, 0, 0)),
            pl.BlockSpec((S, H), lambda b: (0, 0)),
            pl.BlockSpec((1, H), lambda b: (0, 0)),
            pl.BlockSpec((1, H), lambda b: (0, 0)),
            pl.BlockSpec((1, H), lambda b: (0, 0)),
        ],
        out_specs=pl.BlockSpec((None, S, H), lambda b: (b, 0, 0)),
        out_shape=jax.ShapeDtypeStruct((B, S, H), jnp.float32),
        compiler_params=pltpu.CompilerParams(
            dimension_semantics=("parallel",)),
    )(we, pe, te, gamma, beta)


# --------------------------- fused transformer layer -------------------------

def _bert_layer_kernel(x_ref, mask_ref, wqkv_ref, bqkv_ref, wo_ref, bo_ref,
                       ln1_g_ref, ln1_b_ref, w1_ref, b1_ref, w2_ref, b2_ref,
                       ln2_g_ref, ln2_b_ref, o_ref, *, nh, dh, eps):
    x = x_ref[...]                                   # (S, H)
    mask = mask_ref[...]                             # (1, S) additive mask
    H = nh * dh
    scale = 1.0 / math.sqrt(dh)

    # fused QKV projection: (S,H) @ (H,3H)
    qkv = jnp.dot(x, wqkv_ref[...],
                  preferred_element_type=jnp.float32) + bqkv_ref[...]

    # per-head attention; output projection folded into the head loop so the
    # per-head contexts never need concatenation: sum_h ctx_h @ Wo[h]
    ctx_proj = None
    for h in range(nh):
        q = qkv[:, h * dh:(h + 1) * dh]              # (S, dh)
        k = qkv[:, H + h * dh:H + (h + 1) * dh]
        v = qkv[:, 2 * H + h * dh:2 * H + (h + 1) * dh]
        s = jax.lax.dot_general(q, k, (((1,), (1,)), ((), ())),
                                preferred_element_type=jnp.float32)   # (S,S)
        s = s * scale + mask                         # broadcast over query rows
        s = s - jnp.max(s, axis=-1, keepdims=True)
        p = jnp.exp(s)
        p = p * pl.reciprocal(jnp.sum(p, axis=-1, keepdims=True), approx=True)
        ctx = jnp.dot(p, v, preferred_element_type=jnp.float32)       # (S,dh)
        part = jnp.dot(ctx, wo_ref[h * dh:(h + 1) * dh, :],
                       preferred_element_type=jnp.float32)            # (S,H)
        ctx_proj = part if ctx_proj is None else ctx_proj + part
    attn_out = ctx_proj + bo_ref[...]

    h1 = _layernorm(attn_out + x, ln1_g_ref[...], ln1_b_ref[...], eps)

    inter = jnp.dot(h1, w1_ref[...],
                    preferred_element_type=jnp.float32) + b1_ref[...]
    # TODO(synk): HF BERT uses exact erf-GELU; tanh approximation used here.
    inter = jax.nn.gelu(inter, approximate=True)
    ffn = jnp.dot(inter, w2_ref[...],
                  preferred_element_type=jnp.float32) + b2_ref[...]

    o_ref[...] = _layernorm(ffn + h1, ln2_g_ref[...], ln2_b_ref[...],
                            eps).astype(o_ref.dtype)


def bert_layer(hidden, ext_mask, lyr, cfg):
    B, S, H = hidden.shape
    nh = cfg.heads
    dh = H // nh
    I = cfg.intermediate

    def wspec(shape):
        return pl.BlockSpec(shape, lambda b: (0, 0))

    return pl.pallas_call(
        functools.partial(_bert_layer_kernel, nh=nh, dh=dh, eps=cfg.ln_eps),
        grid=(B,),
        in_specs=[
            pl.BlockSpec((None, S, H), lambda b: (b, 0, 0)),   # activations
            pl.BlockSpec((None, 1, S), lambda b: (b, 0, 0)),   # (1,S) mask
            wspec((H, 3 * H)), wspec((1, 3 * H)),              # fused QKV
            wspec((H, H)), wspec((1, H)),                      # out proj
            wspec((1, H)), wspec((1, H)),                      # LN1
            wspec((H, I)), wspec((1, I)),                      # FFN in
            wspec((I, H)), wspec((1, H)),                      # FFN out
            wspec((1, H)), wspec((1, H)),                      # LN2
        ],
        out_specs=pl.BlockSpec((None, S, H), lambda b: (b, 0, 0)),
        out_shape=jax.ShapeDtypeStruct((B, S, H), jnp.float32),
        compiler_params=pltpu.CompilerParams(
            dimension_semantics=("parallel",),
            vmem_limit_bytes=32 * 1024 * 1024),
    )(hidden, ext_mask, lyr["wqkv"], lyr["bqkv"], lyr["wo"], lyr["bo"],
      lyr["ln1_g"], lyr["ln1_b"], lyr["w1"], lyr["b1"],
      lyr["w2"], lyr["b2"], lyr["ln2_g"], lyr["ln2_b"])


# ------------------- fused classification head + cross-entropy ---------------

def _head_kernel(pooled_ref, labels_ref, pre_w_ref, pre_b_ref,
                 cls_w_ref, cls_b_ref, logits_ref, loss_ref, *, num_labels):
    x = jnp.dot(pooled_ref[...], pre_w_ref[...],
                preferred_element_type=jnp.float32) + pre_b_ref[...]
    x = jnp.maximum(x, 0.0)                       # ReLU; dropout(p=0.2) = identity (eval)
    logits = jnp.dot(x, cls_w_ref[...],
                     preferred_element_type=jnp.float32) + cls_b_ref[...]   # (B, CP)
    logits_ref[...] = logits.astype(logits_ref.dtype)

    B, CP = logits.shape
    col = jax.lax.broadcasted_iota(jnp.int32, (B, CP), 1)
    # mask padded classifier columns out of the softmax
    z = jnp.where(col < num_labels, logits, -1e30)
    z = z - jnp.max(z, axis=-1, keepdims=True)
    lse = jnp.log(jnp.sum(jnp.exp(z), axis=-1, keepdims=True))
    onehot = (col == labels_ref[...]).astype(jnp.float32)          # in-kernel one-hot
    nll = -jnp.sum(onehot * (z - lse), axis=-1, keepdims=True)     # (B,1)
    loss_ref[...] = jnp.sum(nll, axis=0, keepdims=True) * (1.0 / B)


def classifier_head(pooled, labels_2d, params, cfg):
    B, H = pooled.shape
    CP = cfg.cls_pad
    logits_pad, loss = pl.pallas_call(
        functools.partial(_head_kernel, num_labels=cfg.num_labels),
        grid=(1,),
        in_specs=[
            pl.BlockSpec((B, H), lambda i: (0, 0)),
            pl.BlockSpec((B, 1), lambda i: (0, 0)),
            pl.BlockSpec((H, H), lambda i: (0, 0)),
            pl.BlockSpec((1, H), lambda i: (0, 0)),
            pl.BlockSpec((H, CP), lambda i: (0, 0)),
            pl.BlockSpec((1, CP), lambda i: (0, 0)),
        ],
        out_specs=(
            pl.BlockSpec((B, CP), lambda i: (0, 0)),
            pl.BlockSpec((1, 1), lambda i: (0, 0)),
        ),
        out_shape=(
            jax.ShapeDtypeStruct((B, CP), jnp.float32),
            jax.ShapeDtypeStruct((1, 1), jnp.float32),
        ),
        compiler_params=pltpu.CompilerParams(
            dimension_semantics=("arbitrary",)),
    )(pooled, labels_2d, params["pre_w"], params["pre_b"],
      params["cls_w_pad"], params["cls_b_pad"])
    return logits_pad, loss


# ------------------------------ params & forward ------------------------------

def _normal(key, shape, std=0.02):
    return (std * jax.random.normal(key, shape)).astype(jnp.float32)


def init_params(key, cfg):
    H, I, CP = cfg.hidden, cfg.intermediate, cfg.cls_pad
    keys = iter(jax.random.split(key, 5 + 6 * cfg.layers))

    cls_w = _normal(next(keys), (H, cfg.num_labels))
    cls_w_pad = jnp.zeros((H, CP), jnp.float32).at[:, :cfg.num_labels].set(cls_w)

    p = {
        "word_emb": _normal(next(keys), (cfg.vocab_size, H)),
        "pos_emb": _normal(next(keys), (cfg.max_pos, H)),
        "type_emb": _normal(next(keys), (2, H)),
        "emb_ln_g": jnp.ones((1, H), jnp.float32),
        "emb_ln_b": jnp.zeros((1, H), jnp.float32),
        "pre_w": _normal(next(keys), (H, H)),
        "pre_b": jnp.zeros((1, H), jnp.float32),
        "cls_w_pad": cls_w_pad,
        "cls_b_pad": jnp.zeros((1, CP), jnp.float32),
        "layers": [],
    }
    for _ in range(cfg.layers):
        wq = _normal(next(keys), (H, H))
        wk = _normal(next(keys), (H, H))
        wv = _normal(next(keys), (H, H))
        lyr = {
            "wqkv": jnp.concatenate([wq, wk, wv], axis=1),          # (H, 3H)
            "bqkv": jnp.zeros((1, 3 * H), jnp.float32),
            "wo": _normal(next(keys), (H, H)),
            "bo": jnp.zeros((1, H), jnp.float32),
            "ln1_g": jnp.ones((1, H), jnp.float32),
            "ln1_b": jnp.zeros((1, H), jnp.float32),
            "w1": _normal(next(keys), (H, I)),
            "b1": jnp.zeros((1, I), jnp.float32),
            "w2": _normal(next(keys), (I, H)),
            "b2": jnp.zeros((1, H), jnp.float32),
            "ln2_g": jnp.ones((1, H), jnp.float32),
            "ln2_b": jnp.zeros((1, H), jnp.float32),
        }
        p["layers"].append(lyr)
    return p


def forward(params, input_ids, attention_mask, labels, cfg):
    B, S = input_ids.shape

    # Embedding lookups (gather) stay in XLA; add + LayerNorm fused in Pallas.
    # TODO(synk): token_type_ids hard-coded to 0 (reference never passes them).
    we = jnp.take(params["word_emb"], input_ids, axis=0)            # (B,S,H)
    hidden = embed_layernorm(we, params["pos_emb"][:S],
                             params["type_emb"][0:1],
                             params["emb_ln_g"], params["emb_ln_b"], cfg)

    # additive attention mask, (B,1,S); broadcast to (S,S) inside the kernel
    ext = ((1.0 - attention_mask.astype(jnp.float32)) * -10000.0).reshape(B, 1, S)

    for lyr in params["layers"]:
        hidden = bert_layer(hidden, ext, lyr, cfg)

    pooled = hidden[:, 0, :]                                        # CLS token (B,H)

    if labels is None:
        labels_2d = jnp.zeros((B, 1), jnp.int32)
        logits_pad, _ = classifier_head(pooled, labels_2d, params, cfg)
        return logits_pad[:, :cfg.num_labels]

    labels_2d = labels.reshape(B, 1).astype(jnp.int32)
    logits_pad, loss = classifier_head(pooled, labels_2d, params, cfg)
    return loss[0, 0], logits_pad[:, :cfg.num_labels]


# ----------------------------------- main -----------------------------------

if __name__ == "__main__":
    cfg = Config()
    root = jax.random.PRNGKey(0)
    k_params, k_ids, k_lab = jax.random.split(root, 3)

    params = init_params(k_params, cfg)

    B, S = 2, 8
    input_ids = jax.random.randint(k_ids, (B, S), 0, cfg.vocab_size, dtype=jnp.int32)
    attention_mask = jnp.ones((B, S), dtype=jnp.int32)
    labels = jax.random.randint(k_lab, (B,), 0, cfg.num_labels, dtype=jnp.int32)

    fwd = jax.jit(lambda p, ids, m, lab: forward(p, ids, m, lab, cfg))
    loss, logits = fwd(params, input_ids, attention_mask, labels)
    jax.block_until_ready((loss, logits))

    assert logits.shape == (B, cfg.num_labels)
    assert loss.shape == ()
    print("KERNEL_OK")
</pallas_src>

<mosaic_0001>
module attributes {stable_mosaic.version = 11 : i64} {
  func.func @_embed_ln_kernel(%arg0: i32, %arg1: memref<1x8x128xf32, #tpu.memory_space<vmem>>, %arg2: memref<8x128xf32, #tpu.memory_space<vmem>>, %arg3: memref<1x128xf32, #tpu.memory_space<vmem>>, %arg4: memref<1x128xf32, #tpu.memory_space<vmem>>, %arg5: memref<1x128xf32, #tpu.memory_space<vmem>>, %arg6: memref<1x8x128xf32, #tpu.memory_space<vmem>>) attributes {dimension_semantics = [#tpu.dimension_semantics<parallel>], iteration_bounds = array<i64: 2>, scalar_prefetch = 0 : i64, scratch_operands = 0 : i64, tpu.core_type = #tpu.core_type<tc>, window_params = [{transform_indices = @transform_0, window_bounds = array<i64: 1, 8, 128>}, {pipeline_mode = #tpu.pipeline_mode<synchronous>, transform_indices = @transform_1, window_bounds = array<i64: 8, 128>}, {pipeline_mode = #tpu.pipeline_mode<synchronous>, transform_indices = @transform_2, window_bounds = array<i64: 1, 128>}, {pipeline_mode = #tpu.pipeline_mode<synchronous>, transform_indices = @transform_3, window_bounds = array<i64: 1, 128>}, {pipeline_mode = #tpu.pipeline_mode<synchronous>, transform_indices = @transform_4, window_bounds = array<i64: 1, 128>}, {transform_indices = @transform_5, window_bounds = array<i64: 1, 8, 128>}]} {
    %c0 = arith.constant 0 : index
    %c0_0 = arith.constant 0 : index
    %c0_1 = arith.constant 0 : index
    %0 = vector.load %arg1[%c0, %c0_0, %c0_1] : memref<1x8x128xf32, #tpu.memory_space<vmem>>, vector<1x8x128xf32>
    %1 = vector.shape_cast %0 : vector<1x8x128xf32> to vector<8x128xf32>
    %c0_2 = arith.constant 0 : index
    %c0_3 = arith.constant 0 : index
    %2 = vector.load %arg2[%c0_2, %c0_3] : memref<8x128xf32, #tpu.memory_space<vmem>>, vector<8x128xf32>
    %3 = arith.addf %1, %2 : vector<8x128xf32>
    %c0_4 = arith.constant 0 : index
    %c0_5 = arith.constant 0 : index
    %4 = vector.load %arg3[%c0_4, %c0_5] : memref<1x128xf32, #tpu.memory_space<vmem>>, vector<1x128xf32>
    %5 = vector.broadcast %4 : vector<1x128xf32> to vector<8x128xf32>
    %6 = arith.addf %3, %5 : vector<8x128xf32>
    %c0_6 = arith.constant 0 : index
    %c0_7 = arith.constant 0 : index
    %7 = vector.load %arg4[%c0_6, %c0_7] : memref<1x128xf32, #tpu.memory_space<vmem>>, vector<1x128xf32>
    %c0_8 = arith.constant 0 : index
    %c0_9 = arith.constant 0 : index
    %8 = vector.load %arg5[%c0_8, %c0_9] : memref<1x128xf32, #tpu.memory_space<vmem>>, vector<1x128xf32>
    %cst = arith.constant dense<0.000000e+00> : vector<8xf32>
    %9 = vector.multi_reduction <add>, %6, %cst [1] : vector<8x128xf32> to vector<8xf32>
    %10 = vector.shape_cast %9 : vector<8xf32> to vector<8x1xf32>
    %cst_10 = arith.constant 1.280000e+02 : f32
    %11 = vector.broadcast %cst_10 : f32 to vector<8x1xf32>
    %12 = arith.divf %10, %11 : vector<8x1xf32>
    %13 = vector.broadcast %12 : vector<8x1xf32> to vector<8x128xf32>
    %14 = arith.subf %6, %13 : vector<8x128xf32>
    %15 = arith.mulf %14, %14 : vector<8x128xf32>
    %cst_11 = arith.constant dense<0.000000e+00> : vector<8xf32>
    %16 = vector.multi_reduction <add>, %15, %cst_11 [1] : vector<8x128xf32> to vector<8xf32>
    %17 = vector.shape_cast %16 : vector<8xf32> to vector<8x1xf32>
    %cst_12 = arith.constant 1.280000e+02 : f32
    %18 = vector.broadcast %cst_12 : f32 to vector<8x1xf32>
    %19 = arith.divf %17, %18 : vector<8x1xf32>
    %cst_13 = arith.constant 9.99999996E-13 : f32
    %20 = vector.broadcast %cst_13 : f32 to vector<8x1xf32>
    %21 = arith.addf %19, %20 : vector<8x1xf32>
    %22 = math.rsqrt %21 : vector<8x1xf32>
    %23 = vector.broadcast %22 : vector<8x1xf32> to vector<8x128xf32>
    %24 = arith.mulf %14, %23 : vector<8x128xf32>
    %25 = vector.broadcast %7 : vector<1x128xf32> to vector<8x128xf32>
    %26 = arith.mulf %24, %25 : vector<8x128xf32>
    %27 = vector.broadcast %8 : vector<1x128xf32> to vector<8x128xf32>
    %28 = arith.addf %26, %27 : vector<8x128xf32>
    %c0_14 = arith.constant 0 : index
    %c0_15 = arith.constant 0 : index
    %c0_16 = arith.constant 0 : index
    %29 = vector.load %arg6[%c0_14, %c0_15, %c0_16] : memref<1x8x128xf32, #tpu.memory_space<vmem>>, vector<1x8x128xf32>
    %30 = vector.shape_cast %29 : vector<1x8x128xf32> to vector<8x128xf32>
    %31 = vector.shape_cast %28 : vector<8x128xf32> to vector<1x8x128xf32>
    tpu.vector_store %arg6[%c0_14, %c0_15, %c0_16], %31 {strides = array<i32>} : memref<1x8x128xf32, #tpu.memory_space<vmem>>, vector<1x8x128xf32>,
    return
  }
  func.func @transform_0(%arg0: i32) -> (i32, i32, i32) {
    %c0_i32 = arith.constant 0 : i32
    %c0_i32_0 = arith.constant 0 : i32
    %c0_i32_1 = arith.constant 0 : i32
    return %arg0, %c0_i32, %c0_i32_0 : i32, i32, i32
  }
  func.func @transform_1(%arg0: i32) -> (i32, i32) {
    %c0_i32 = arith.constant 0 : i32
    %c0_i32_0 = arith.constant 0 : i32
    %c0_i32_1 = arith.constant 0 : i32
    return %c0_i32, %c0_i32_0 : i32, i32
  }
  func.func @transform_2(%arg0: i32) -> (i32, i32) {
    %c0_i32 = arith.constant 0 : i32
    %c0_i32_0 = arith.constant 0 : i32
    %c0_i32_1 = arith.constant 0 : i32
    return %c0_i32, %c0_i32_0 : i32, i32
  }
  func.func @transform_3(%arg0: i32) -> (i32, i32) {
    %c0_i32 = arith.constant 0 : i32
    %c0_i32_0 = arith.constant 0 : i32
    %c0_i32_1 = arith.constant 0 : i32
    return %c0_i32, %c0_i32_0 : i32, i32
  }
  func.func @transform_4(%arg0: i32) -> (i32, i32) {
    %c0_i32 = arith.constant 0 : i32
    %c0_i32_0 = arith.constant 0 : i32
    %c0_i32_1 = arith.constant 0 : i32
    return %c0_i32, %c0_i32_0 : i32, i32
  }
  func.func @transform_5(%arg0: i32) -> (i32, i32, i32) {
    %c0_i32 = arith.constant 0 : i32
    %c0_i32_0 = arith.constant 0 : i32
    %c0_i32_1 = arith.constant 0 : i32
    return %arg0, %c0_i32, %c0_i32_0 : i32, i32, i32
  }
}

module attributes {stable_mosaic.version = 11 : i64} {
  func.func @_bert_layer_kernel(%arg0: i32, %arg1: memref<1x8x128xf32, #tpu.memory_space<vmem>>, %arg2: memref<1x1x8xf32, #tpu.memory_space<vmem>>, %arg3: memref<128x384xf32, #tpu.memory_space<vmem>>, %arg4: memref<1x384xf32, #tpu.memory_space<vmem>>, %arg5: memref<128x128xf32, #tpu.memory_space<vmem>>, %arg6: memref<1x128xf32, #tpu.memory_space<vmem>>, %arg7: memref<1x128xf32, #tpu.memory_space<vmem>>, %arg8: memref<1x128xf32, #tpu.memory_space<vmem>>, %arg9: memref<128x512xf32, #tpu.memory_space<vmem>>, %arg10: memref<1x512xf32, #tpu.memory_space<vmem>>, %arg11: memref<512x128xf32, #tpu.memory_space<vmem>>, %arg12: memref<1x128xf32, #tpu.memory_space<vmem>>, %arg13: memref<1x128xf32, #tpu.memory_space<vmem>>, %arg14: memref<1x128xf32, #tpu.memory_space<vmem>>, %arg15: memref<1x8x128xf32, #tpu.memory_space<vmem>>) attributes {dimension_semantics = [#tpu.dimension_semantics<parallel>], iteration_bounds = array<i64: 2>, scalar_prefetch = 0 : i64, scratch_operands = 0 : i64, tpu.core_type = #tpu.core_type<tc>, window_params = [{transform_indices = @transform_0, window_bounds = array<i64: 1, 8, 128>}, {transform_indices = @transform_1, window_bounds = array<i64: 1, 1, 8>}, {pipeline_mode = #tpu.pipeline_mode<synchronous>, transform_indices = @transform_2, window_bounds = array<i64: 128, 384>}, {pipeline_mode = #tpu.pipeline_mode<synchronous>, transform_indices = @transform_3, window_bounds = array<i64: 1, 384>}, {pipeline_mode = #tpu.pipeline_mode<synchronous>, transform_indices = @transform_4, window_bounds = array<i64: 128, 128>}, {pipeline_mode = #tpu.pipeline_mode<synchronous>, transform_indices = @transform_5, window_bounds = array<i64: 1, 128>}, {pipeline_mode = #tpu.pipeline_mode<synchronous>, transform_indices = @transform_6, window_bounds = array<i64: 1, 128>}, {pipeline_mode = #tpu.pipeline_mode<synchronous>, transform_indices = @transform_7, window_bounds = array<i64: 1, 128>}, {pipeline_mode = #tpu.pipeline_mode<synchronous>, transform_indices = @transform_8, window_bounds = array<i64: 128, 512>}, {pipeline_mode = #tpu.pipeline_mode<synchronous>, transform_indices = @transform_9, window_bounds = array<i64: 1, 512>}, {pipeline_mode = #tpu.pipeline_mode<synchronous>, transform_indices = @transform_10, window_bounds = array<i64: 512, 128>}, {pipeline_mode = #tpu.pipeline_mode<synchronous>, transform_indices = @transform_11, window_bounds = array<i64: 1, 128>}, {pipeline_mode = #tpu.pipeline_mode<synchronous>, transform_indices = @transform_12, window_bounds = array<i64: 1, 128>}, {pipeline_mode = #tpu.pipeline_mode<synchronous>, transform_indices = @transform_13, window_bounds = array<i64: 1, 128>}, {transform_indices = @transform_14, window_bounds = array<i64: 1, 8, 128>}]} {
    %c0 = arith.constant 0 : index
    %c0_0 = arith.constant 0 : index
    %c0_1 = arith.constant 0 : index
    %0 = vector.load %arg1[%c0, %c0_0, %c0_1] : memref<1x8x128xf32, #tpu.memory_space<vmem>>, vector<1x8x128xf32>
    %1 = vector.shape_cast %0 : vector<1x8x128xf32> to vector<8x128xf32>
    %c0_2 = arith.constant 0 : index
    %c0_3 = arith.constant 0 : index
    %c0_4 = arith.constant 0 : index
    %2 = vector.load %arg2[%c0_2, %c0_3, %c0_4] : memref<1x1x8xf32, #tpu.memory_space<vmem>>, vector<1x1x8xf32>
    %3 = vector.shape_cast %2 : vector<1x1x8xf32> to vector<1x8xf32>
    %c0_5 = arith.constant 0 : index
    %c0_6 = arith.constant 0 : index
    %4 = vector.load %arg3[%c0_5, %c0_6] : memref<128x384xf32, #tpu.memory_space<vmem>>, vector<128x384xf32>
    %cst = arith.constant dense<0.000000e+00> : vector<8x384xf32>
    %5 = tpu.matmul %1, %4, %cst {dimension_numbers = #tpu.dot_dimension_numbers<[1], [0], [0], [1], [0, 0, 1, 1], [], []>} : vector<8x128xf32>, vector<128x384xf32>, vector<8x384xf32> -> vector<8x384xf32>
    %c0_7 = arith.constant 0 : index
    %c0_8 = arith.constant 0 : index
    %6 = vector.load %arg4[%c0_7, %c0_8] : memref<1x384xf32, #tpu.memory_space<vmem>>, vector<1x384xf32>
    %7 = vector.broadcast %6 : vector<1x384xf32> to vector<8x384xf32>
    %8 = arith.addf %5, %7 : vector<8x384xf32>
    %9 = vector.extract_strided_slice %8 {offsets = [0, 0], sizes = [8, 64], strides = [1, 1]} : vector<8x384xf32> to vector<8x64xf32>
    %10 = vector.extract_strided_slice %8 {offsets = [0, 128], sizes = [8, 64], strides = [1, 1]} : vector<8x384xf32> to vector<8x64xf32>
    %11 = vector.extract_strided_slice %8 {offsets = [0, 256], sizes = [8, 64], strides = [1, 1]} : vector<8x384xf32> to vector<8x64xf32>
    %cst_9 = arith.constant dense<0.000000e+00> : vector<8x8xf32>
    %12 = tpu.matmul %9, %10, %cst_9 {dimension_numbers = #tpu.dot_dimension_numbers<[1], [1], [0], [0], [0, 0, 1, 0], [], []>} : vector<8x64xf32>, vector<8x64xf32>, vector<8x8xf32> -> vector<8x8xf32>
    %cst_10 = arith.constant 1.250000e-01 : f32
    %13 = vector.broadcast %cst_10 : f32 to vector<8x8xf32>
    %14 = arith.mulf %12, %13 : vector<8x8xf32>
    %15 = vector.broadcast %3 : vector<1x8xf32> to vector<8x8xf32>
    %16 = arith.addf %14, %15 : vector<8x8xf32>
    %cst_11 = arith.constant dense<0xFF800000> : vector<8xf32>
    %17 = vector.multi_reduction <maximumf>, %16, %cst_11 [1] : vector<8x8xf32> to vector<8xf32>
    %18 = vector.shape_cast %17 : vector<8xf32> to vector<8x1xf32>
    %19 = vector.broadcast %18 : vector<8x1xf32> to vector<8x8xf32>
    %20 = arith.subf %16, %19 : vector<8x8xf32>
    %21 = math.exp %20 : vector<8x8xf32>
    %cst_12 = arith.constant dense<0.000000e+00> : vector<8xf32>
    %22 = vector.multi_reduction <add>, %21, %cst_12 [1] : vector<8x8xf32> to vector<8xf32>
    %23 = vector.shape_cast %22 : vector<8xf32> to vector<8x1xf32>
    %24 = tpu.reciprocal %23 {approx = true} : vector<8x1xf32> -> vector<8x1xf32>
    %25 = vector.broadcast %24 : vector<8x1xf32> to vector<8x8xf32>
    %26 = arith.mulf %21, %25 : vector<8x8xf32>
    %cst_13 = arith.constant dense<0.000000e+00> : vector<8x64xf32>
    %27 = tpu.matmul %26, %11, %cst_13 {dimension_numbers = #tpu.dot_dimension_numbers<[1], [0], [0], [1], [0, 0, 1, 1], [], []>} : vector<8x8xf32>, vector<8x64xf32>, vector<8x64xf32> -> vector<8x64xf32>
    %c0_14 = arith.constant 0 : index
    %c0_15 = arith.constant 0 : index
    %28 = vector.load %arg5[%c0_14, %c0_15] : memref<128x128xf32, #tpu.memory_space<vmem>>, vector<64x128xf32>
    %cst_16 = arith.constant dense<0.000000e+00> : vector<8x128xf32>
    %29 = tpu.matmul %27, %28, %cst_16 {dimension_numbers = #tpu.dot_dimension_numbers<[1], [0], [0], [1], [0, 0, 1, 1], [], []>} : vector<8x64xf32>, vector<64x128xf32>, vector<8x128xf32> -> vector<8x128xf32>
    %30 = vector.extract_strided_slice %8 {offsets = [0, 64], sizes = [8, 64], strides = [1, 1]} : vector<8x384xf32> to vector<8x64xf32>
    %31 = vector.extract_strided_slice %8 {offsets = [0, 192], sizes = [8, 64], strides = [1, 1]} : vector<8x384xf32> to vector<8x64xf32>
    %32 = vector.extract_strided_slice %8 {offsets = [0, 320], sizes = [8, 64], strides = [1, 1]} : vector<8x384xf32> to vector<8x64xf32>
    %cst_17 = arith.constant dense<0.000000e+00> : vector<8x8xf32>
    %33 = tpu.matmul %30, %31, %cst_17 {dimension_numbers = #tpu.dot_dimension_numbers<[1], [1], [0], [0], [0, 0, 1, 0], [], []>} : vector<8x64xf32>, vector<8x64xf32>, vector<8x8xf32> -> vector<8x8xf32>
    %cst_18 = arith.constant 1.250000e-01 : f32
    %34 = vector.broadcast %cst_18 : f32 to vector<8x8xf32>
    %35 = arith.mulf %33, %34 : vector<8x8xf32>
    %36 = vector.broadcast %3 : vector<1x8xf32> to vector<8x8xf32>
    %37 = arith.addf %35, %36 : vector<8x8xf32>
    %cst_19 = arith.constant dense<0xFF800000> : vector<8xf32>
    %38 = vector.multi_reduction <maximumf>, %37, %cst_19 [1] : vector<8x8xf32> to vector<8xf32>
    %39 = vector.shape_cast %38 : vector<8xf32> to vector<8x1xf32>
    %40 = vector.broadcast %39 : vector<8x1xf32> to vector<8x8xf32>
    %41 = arith.subf %37, %40 : vector<8x8xf32>
    %42 = math.exp %41 : vector<8x8xf32>
    %cst_20 = arith.constant dense<0.000000e+00> : vector<8xf32>
    %43 = vector.multi_reduction <add>, %42, %cst_20 [1] : vector<8x8xf32> to vector<8xf32>
    %44 = vector.shape_cast %43 : vector<8xf32> to vector<8x1xf32>
    %45 = tpu.reciprocal %44 {approx = true} : vector<8x1xf32> -> vector<8x1xf32>
    %46 = vector.broadcast %45 : vector<8x1xf32> to vector<8x8xf32>
    %47 = arith.mulf %42, %46 : vector<8x8xf32>
    %cst_21 = arith.constant dense<0.000000e+00> : vector<8x64xf32>
    %48 = tpu.matmul %47, %32, %cst_21 {dimension_numbers = #tpu.dot_dimension_numbers<[1], [0], [0], [1], [0, 0, 1, 1], [], []>} : vector<8x8xf32>, vector<8x64xf32>, vector<8x64xf32> -> vector<8x64xf32>
    %c64 = arith.constant 64 : index
    %c0_22 = arith.constant 0 : index
    %49 = vector.load %arg5[%c64, %c0_22] : memref<128x128xf32, #tpu.memory_space<vmem>>, vector<64x128xf32>
    %cst_23 = arith.constant dense<0.000000e+00> : vector<8x128xf32>
    %50 = tpu.matmul %48, %49, %cst_23 {dimension_numbers = #tpu.dot_dimension_numbers<[1], [0], [0], [1], [0, 0, 1, 1], [], []>} : vector<8x64xf32>, vector<64x128xf32>, vector<8x128xf32> -> vector<8x128xf32>
    %51 = arith.addf %29, %50 : vector<8x128xf32>
    %c0_24 = arith.constant 0 : index
    %c0_25 = arith.constant 0 : index
    %52 = vector.load %arg6[%c0_24, %c0_25] : memref<1x128xf32, #tpu.memory_space<vmem>>, vector<1x128xf32>
    %53 = vector.broadcast %52 : vector<1x128xf32> to vector<8x128xf32>
    %54 = arith.addf %51, %53 : vector<8x128xf32>
    %55 = arith.addf %54, %1 : vector<8x128xf32>
    %c0_26 = arith.constant 0 : index
    %c0_27 = arith.constant 0 : index
    %56 = vector.load %arg7[%c0_26, %c0_27] : memref<1x128xf32, #tpu.memory_space<vmem>>, vector<1x128xf32>
    %c0_28 = arith.constant 0 : index
    %c0_29 = arith.constant 0 : index
    %57 = vector.load %arg8[%c0_28, %c0_29] : memref<1x128xf32, #tpu.memory_space<vmem>>, vector<1x128xf32>
    %cst_30 = arith.constant dense<0.000000e+00> : vector<8xf32>
    %58 = vector.multi_reduction <add>, %55, %cst_30 [1] : vector<8x128xf32> to vector<8xf32>
    %59 = vector.shape_cast %58 : vector<8xf32> to vector<8x1xf32>
    %cst_31 = arith.constant 1.280000e+02 : f32
    %60 = vector.broadcast %cst_31 : f32 to vector<8x1xf32>
    %61 = arith.divf %59, %60 : vector<8x1xf32>
    %62 = vector.broadcast %61 : vector<8x1xf32> to vector<8x128xf32>
    %63 = arith.subf %55, %62 : vector<8x128xf32>
    %64 = arith.mulf %63, %63 : vector<8x128xf32>
    %cst_32 = arith.constant dense<0.000000e+00> : vector<8xf32>
    %65 = vector.multi_reduction <add>, %64, %cst_32 [1] : vector<8x128xf32> to vector<8xf32>
    %66 = vector.shape_cast %65 : vector<8xf32> to vector<8x1xf32>
    %cst_33 = arith.constant 1.280000e+02 : f32
    %67 = vector.broadcast %cst_33 : f32 to vector<8x1xf32>
    %68 = arith.divf %66, %67 : vector<8x1xf32>
    %cst_34 = arith.constant 9.99999996E-13 : f32
    %69 = vector.broadcast %cst_34 : f32 to vector<8x1xf32>
    %70 = arith.addf %68, %69 : vector<8x1xf32>
    %71 = math.rsqrt %70 : vector<8x1xf32>
    %72 = vector.broadcast %71 : vector<8x1xf32> to vector<8x128xf32>
    %73 = arith.mulf %63, %72 : vector<8x128xf32>
    %74 = vector.broadcast %56 : vector<1x128xf32> to vector<8x128xf32>
    %75 = arith.mulf %73, %74 : vector<8x128xf32>
    %76 = vector.broadcast %57 : vector<1x128xf32> to vector<8x128xf32>
    %77 = arith.addf %75, %76 : vector<8x128xf32>
    %c0_35 = arith.constant 0 : index
    %c0_36 = arith.constant 0 : index
    %78 = vector.load %arg9[%c0_35, %c0_36] : memref<128x512xf32, #tpu.memory_space<vmem>>, vector<128x512xf32>
    %cst_37 = arith.constant dense<0.000000e+00> : vector<8x512xf32>
    %79 = tpu.matmul %77, %78, %cst_37 {dimension_numbers = #tpu.dot_dimension_numbers<[1], [0], [0], [1], [0, 0, 1, 1], [], []>} : vector<8x128xf32>, vector<128x512xf32>, vector<8x512xf32> -> vector<8x512xf32>
    %c0_38 = arith.constant 0 : index
    %c0_39 = arith.constant 0 : index
    %80 = vector.load %arg10[%c0_38, %c0_39] : memref<1x512xf32, #tpu.memory_space<vmem>>, vector<1x512xf32>
    %81 = vector.broadcast %80 : vector<1x512xf32> to vector<8x512xf32>
    %82 = arith.addf %79, %81 : vector<8x512xf32>
    %83 = arith.mulf %82, %82 : vector<8x512xf32>
    %84 = arith.mulf %82, %83 : vector<8x512xf32>
    %cst_40 = arith.constant 4.471500e-02 : f32
    %85 = vector.broadcast %cst_40 : f32 to vector<8x512xf32>
    %86 = arith.mulf %85, %84 : vector<8x512xf32>
    %87 = arith.addf %82, %86 : vector<8x512xf32>
    %cst_41 = arith.constant 0.797884583 : f32
    %88 = vector.broadcast %cst_41 : f32 to vector<8x512xf32>
    %89 = arith.mulf %88, %87 : vector<8x512xf32>
    %90 = math.tanh %89 : vector<8x512xf32>
    %cst_42 = arith.constant 1.000000e+00 : f32
    %91 = vector.broadcast %cst_42 : f32 to vector<8x512xf32>
    %92 = arith.addf %91, %90 : vector<8x512xf32>
    %cst_43 = arith.constant 5.000000e-01 : f32
    %93 = vector.broadcast %cst_43 : f32 to vector<8x512xf32>
    %94 = arith.mulf %93, %92 : vector<8x512xf32>
    %95 = arith.mulf %82, %94 : vector<8x512xf32>
    %c0_44 = arith.constant 0 : index
    %c0_45 = arith.constant 0 : index
    %96 = vector.load %arg11[%c0_44, %c0_45] : memref<512x128xf32, #tpu.memory_space<vmem>>, vector<512x128xf32>
    %cst_46 = arith.constant dense<0.000000e+00> : vector<8x128xf32>
    %97 = tpu.matmul %95, %96, %cst_46 {dimension_numbers = #tpu.dot_dimension_numbers<[1], [0], [0], [1], [0, 0, 1, 1], [], []>} : vector<8x512xf32>, vector<512x128xf32>, vector<8x128xf32> -> vector<8x128xf32>
    %c0_47 = arith.constant 0 : index
    %c0_48 = arith.constant 0 : index
    %98 = vector.load %arg12[%c0_47, %c0_48] : memref<1x128xf32, #tpu.memory_space<vmem>>, vector<1x128xf32>
    %99 = vector.broadcast %98 : vector<1x128xf32> to vector<8x128xf32>
    %100 = arith.addf %97, %99 : vector<8x128xf32>
    %101 = arith.addf %100, %77 : vector<8x128xf32>
    %c0_49 = arith.constant 0 : index
    %c0_50 = arith.constant 0 : index
    %102 = vector.load %arg13[%c0_49, %c0_50] : memref<1x128xf32, #tpu.memory_space<vmem>>, vector<1x128xf32>
    %c0_51 = arith.constant 0 : index
    %c0_52 = arith.constant 0 : index
    %103 = vector.load %arg14[%c0_51, %c0_52] : memref<1x128xf32, #tpu.memory_space<vmem>>, vector<1x128xf32>
    %cst_53 = arith.constant dense<0.000000e+00> : vector<8xf32>
    %104 = vector.multi_reduction <add>, %101, %cst_53 [1] : vector<8x128xf32> to vector<8xf32>
    %105 = vector.shape_cast %104 : vector<8xf32> to vector<8x1xf32>
    %cst_54 = arith.constant 1.280000e+02 : f32
    %106 = vector.broadcast %cst_54 : f32 to vector<8x1xf32>
    %107 = arith.divf %105, %106 : vector<8x1xf32>
    %108 = vector.broadcast %107 : vector<8x1xf32> to vector<8x128xf32>
    %109 = arith.subf %101, %108 : vector<8x128xf32>
    %110 = arith.mulf %109, %109 : vector<8x128xf32>
    %cst_55 = arith.constant dense<0.000000e+00> : vector<8xf32>
    %111 = vector.multi_reduction <add>, %110, %cst_55 [1] : vector<8x128xf32> to vector<8xf32>
    %112 = vector.shape_cast %111 : vector<8xf32> to vector<8x1xf32>
    %cst_56 = arith.constant 1.280000e+02 : f32
    %113 = vector.broadcast %cst_56 : f32 to vector<8x1xf32>
    %114 = arith.divf %112, %113 : vector<8x1xf32>
    %cst_57 = arith.constant 9.99999996E-13 : f32
    %115 = vector.broadcast %cst_57 : f32 to vector<8x1xf32>
    %116 = arith.addf %114, %115 : vector<8x1xf32>
    %117 = math.rsqrt %116 : vector<8x1xf32>
    %118 = vector.broadcast %117 : vector<8x1xf32> to vector<8x128xf32>
    %119 = arith.mulf %109, %118 : vector<8x128xf32>
    %120 = vector.broadcast %102 : vector<1x128xf32> to vector<8x128xf32>
    %121 = arith.mulf %119, %120 : vector<8x128xf32>
    %122 = vector.broadcast %103 : vector<1x128xf32> to vector<8x128xf32>
    %123 = arith.addf %121, %122 : vector<8x128xf32>
    %c0_58 = arith.constant 0 : index
    %c0_59 = arith.constant 0 : index
    %c0_60 = arith.constant 0 : index
    %124 = vector.load %arg15[%c0_58, %c0_59, %c0_60] : memref<1x8x128xf32, #tpu.memory_space<vmem>>, vector<1x8x128xf32>
    %125 = vector.shape_cast %124 : vector<1x8x128xf32> to vector<8x128xf32>
    %126 = vector.shape_cast %123 : vector<8x128xf32> to vector<1x8x128xf32>
    tpu.vector_store %arg15[%c0_58, %c0_59, %c0_60], %126 {strides = array<i32>} : memref<1x8x128xf32, #tpu.memory_space<vmem>>, vector<1x8x128xf32>,
    return
  }
  func.func @transform_0(%arg0: i32) -> (i32, i32, i32) {
    %c0_i32 = arith.constant 0 : i32
    %c0_i32_0 = arith.constant 0 : i32
    %c0_i32_1 = arith.constant 0 : i32
    return %arg0, %c0_i32, %c0_i32_0 : i32, i32, i32
  }
  func.func @transform_1(%arg0: i32) -> (i32, i32, i32) {
    %c0_i32 = arith.constant 0 : i32
    %c0_i32_0 = arith.constant 0 : i32
    %c0_i32_1 = arith.constant 0 : i32
    return %arg0, %c0_i32, %c0_i32_0 : i32, i32, i32
  }
  func.func @transform_2(%arg0: i32) -> (i32, i32) {
    %c0_i32 = arith.constant 0 : i32
    %c0_i32_0 = arith.constant 0 : i32
    %c0_i32_1 = arith.constant 0 : i32
    return %c0_i32, %c0_i32_0 : i32, i32
  }
  func.func @transform_3(%arg0: i32) -> (i32, i32) {
    %c0_i32 = arith.constant 0 : i32
    %c0_i32_0 = arith.constant 0 : i32
    %c0_i32_1 = arith.constant 0 : i32
    return %c0_i32, %c0_i32_0 : i32, i32
  }
  func.func @transform_4(%arg0: i32) -> (i32, i32) {
    %c0_i32 = arith.constant 0 : i32
    %c0_i32_0 = arith.constant 0 : i32
    %c0_i32_1 = arith.constant 0 : i32
    return %c0_i32, %c0_i32_0 : i32, i32
  }
  func.func @transform_5(%arg0: i32) -> (i32, i32) {
    %c0_i32 = arith.constant 0 : i32
    %c0_i32_0 = arith.constant 0 : i32
    %c0_i32_1 = arith.constant 0 : i32
    return %c0_i32, %c0_i32_0 : i32, i32
  }
  func.func @transform_6(%arg0: i32) -> (i32, i32) {
    %c0_i32 = arith.constant 0 : i32
    %c0_i32_0 = arith.constant 0 : i32
    %c0_i32_1 = arith.constant 0 : i32
    return %c0_i32, %c0_i32_0 : i32, i32
  }
  func.func @transform_7(%arg0: i32) -> (i32, i32) {
    %c0_i32 = arith.constant 0 : i32
    %c0_i32_0 = arith.constant 0 : i32
    %c0_i32_1 = arith.constant 0 : i32
    return %c0_i32, %c0_i32_0 : i32, i32
  }
  func.func @transform_8(%arg0: i32) -> (i32, i32) {
    %c0_i32 = arith.constant 0 : i32
    %c0_i32_0 = arith.constant 0 : i32
    %c0_i32_1 = arith.constant 0 : i32
    return %c0_i32, %c0_i32_0 : i32, i32
  }
  func.func @transform_9(%arg0: i32) -> (i32, i32) {
    %c0_i32 = arith.constant 0 : i32
    %c0_i32_0 = arith.constant 0 : i32
    %c0_i32_1 = arith.constant 0 : i32
    return %c0_i32, %c0_i32_0 : i32, i32
  }
  func.func @transform_10(%arg0: i32) -> (i32, i32) {
    %c0_i32 = arith.constant 0 : i32
    %c0_i32_0 = arith.constant 0 : i32
    %c0_i32_1 = arith.constant 0 : i32
    return %c0_i32, %c0_i32_0 : i32, i32
  }
  func.func @transform_11(%arg0: i32) -> (i32, i32) {
    %c0_i32 = arith.constant 0 : i32
    %c0_i32_0 = arith.constant 0 : i32
    %c0_i32_1 = arith.constant 0 : i32
    return %c0_i32, %c0_i32_0 : i32, i32
  }
  func.func @transform_12(%arg0: i32) -> (i32, i32) {
    %c0_i32 = arith.constant 0 : i32
    %c0_i32_0 = arith.constant 0 : i32
    %c0_i32_1 = arith.constant 0 : i32
    return %c0_i32, %c0_i32_0 : i32, i32
  }
  func.func @transform_13(%arg0: i32) -> (i32, i32) {
    %c0_i32 = arith.constant 0 : i32
    %c0_i32_0 = arith.constant 0 : i32
    %c0_i32_1 = arith.constant 0 : i32
    return %c0_i32, %c0_i32_0 : i32, i32
  }
  func.func @transform_14(%arg0: i32) -> (i32, i32, i32) {
    %c0_i32 = arith.constant 0 : i32
    %c0_i32_0 = arith.constant 0 : i32
    %c0_i32_1 = arith.constant 0 : i32
    return %arg0, %c0_i32, %c0_i32_0 : i32, i32, i32
  }
}

module attributes {stable_mosaic.version = 11 : i64} {
  func.func @_bert_layer_kernel(%arg0: i32, %arg1: memref<1x8x128xf32, #tpu.memory_space<vmem>>, %arg2: memref<1x1x8xf32, #tpu.memory_space<vmem>>, %arg3: memref<128x384xf32, #tpu.memory_space<vmem>>, %arg4: memref<1x384xf32, #tpu.memory_space<vmem>>, %arg5: memref<128x128xf32, #tpu.memory_space<vmem>>, %arg6: memref<1x128xf32, #tpu.memory_space<vmem>>, %arg7: memref<1x128xf32, #tpu.memory_space<vmem>>, %arg8: memref<1x128xf32, #tpu.memory_space<vmem>>, %arg9: memref<128x512xf32, #tpu.memory_space<vmem>>, %arg10: memref<1x512xf32, #tpu.memory_space<vmem>>, %arg11: memref<512x128xf32, #tpu.memory_space<vmem>>, %arg12: memref<1x128xf32, #tpu.memory_space<vmem>>, %arg13: memref<1x128xf32, #tpu.memory_space<vmem>>, %arg14: memref<1x128xf32, #tpu.memory_space<vmem>>, %arg15: memref<1x8x128xf32, #tpu.memory_space<vmem>>) attributes {dimension_semantics = [#tpu.dimension_semantics<parallel>], iteration_bounds = array<i64: 2>, scalar_prefetch = 0 : i64, scratch_operands = 0 : i64, tpu.core_type = #tpu.core_type<tc>, window_params = [{transform_indices = @transform_0, window_bounds = array<i64: 1, 8, 128>}, {transform_indices = @transform_1, window_bounds = array<i64: 1, 1, 8>}, {pipeline_mode = #tpu.pipeline_mode<synchronous>, transform_indices = @transform_2, window_bounds = array<i64: 128, 384>}, {pipeline_mode = #tpu.pipeline_mode<synchronous>, transform_indices = @transform_3, window_bounds = array<i64: 1, 384>}, {pipeline_mode = #tpu.pipeline_mode<synchronous>, transform_indices = @transform_4, window_bounds = array<i64: 128, 128>}, {pipeline_mode = #tpu.pipeline_mode<synchronous>, transform_indices = @transform_5, window_bounds = array<i64: 1, 128>}, {pipeline_mode = #tpu.pipeline_mode<synchronous>, transform_indices = @transform_6, window_bounds = array<i64: 1, 128>}, {pipeline_mode = #tpu.pipeline_mode<synchronous>, transform_indices = @transform_7, window_bounds = array<i64: 1, 128>}, {pipeline_mode = #tpu.pipeline_mode<synchronous>, transform_indices = @transform_8, window_bounds = array<i64: 128, 512>}, {pipeline_mode = #tpu.pipeline_mode<synchronous>, transform_indices = @transform_9, window_bounds = array<i64: 1, 512>}, {pipeline_mode = #tpu.pipeline_mode<synchronous>, transform_indices = @transform_10, window_bounds = array<i64: 512, 128>}, {pipeline_mode = #tpu.pipeline_mode<synchronous>, transform_indices = @transform_11, window_bounds = array<i64: 1, 128>}, {pipeline_mode = #tpu.pipeline_mode<synchronous>, transform_indices = @transform_12, window_bounds = array<i64: 1, 128>}, {pipeline_mode = #tpu.pipeline_mode<synchronous>, transform_indices = @transform_13, window_bounds = array<i64: 1, 128>}, {transform_indices = @transform_14, window_bounds = array<i64: 1, 8, 128>}]} {
    %c0 = arith.constant 0 : index
    %c0_0 = arith.constant 0 : index
    %c0_1 = arith.constant 0 : index
    %0 = vector.load %arg1[%c0, %c0_0, %c0_1] : memref<1x8x128xf32, #tpu.memory_space<vmem>>, vector<1x8x128xf32>
    %1 = vector.shape_cast %0 : vector<1x8x128xf32> to vector<8x128xf32>
    %c0_2 = arith.constant 0 : index
    %c0_3 = arith.constant 0 : index
    %c0_4 = arith.constant 0 : index
    %2 = vector.load %arg2[%c0_2, %c0_3, %c0_4] : memref<1x1x8xf32, #tpu.memory_space<vmem>>, vector<1x1x8xf32>
    %3 = vector.shape_cast %2 : vector<1x1x8xf32> to vector<1x8xf32>
    %c0_5 = arith.constant 0 : index
    %c0_6 = arith.constant 0 : index
    %4 = vector.load %arg3[%c0_5, %c0_6] : memref<128x384xf32, #tpu.memory_space<vmem>>, vector<128x384xf32>
    %cst = arith.constant dense<0.000000e+00> : vector<8x384xf32>
    %5 = tpu.matmul %1, %4, %cst {dimension_numbers = #tpu.dot_dimension_numbers<[1], [0], [0], [1], [0, 0, 1, 1], [], []>} : vector<8x128xf32>, vector<128x384xf32>, vector<8x384xf32> -> vector<8x384xf32>
    %c0_7 = arith.constant 0 : index
    %c0_8 = arith.constant 0 : index
    %6 = vector.load %arg4[%c0_7, %c0_8] : memref<1x384xf32, #tpu.memory_space<vmem>>, vector<1x384xf32>
    %7 = vector.broadcast %6 : vector<1x384xf32> to vector<8x384xf32>
    %8 = arith.addf %5, %7 : vector<8x384xf32>
    %9 = vector.extract_strided_slice %8 {offsets = [0, 0], sizes = [8, 64], strides = [1, 1]} : vector<8x384xf32> to vector<8x64xf32>
    %10 = vector.extract_strided_slice %8 {offsets = [0, 128], sizes = [8, 64], strides = [1, 1]} : vector<8x384xf32> to vector<8x64xf32>
    %11 = vector.extract_strided_slice %8 {offsets = [0, 256], sizes = [8, 64], strides = [1, 1]} : vector<8x384xf32> to vector<8x64xf32>
    %cst_9 = arith.constant dense<0.000000e+00> : vector<8x8xf32>
    %12 = tpu.matmul %9, %10, %cst_9 {dimension_numbers = #tpu.dot_dimension_numbers<[1], [1], [0], [0], [0, 0, 1, 0], [], []>} : vector<8x64xf32>, vector<8x64xf32>, vector<8x8xf32> -> vector<8x8xf32>
    %cst_10 = arith.constant 1.250000e-01 : f32
    %13 = vector.broadcast %cst_10 : f32 to vector<8x8xf32>
    %14 = arith.mulf %12, %13 : vector<8x8xf32>
    %15 = vector.broadcast %3 : vector<1x8xf32> to vector<8x8xf32>
    %16 = arith.addf %14, %15 : vector<8x8xf32>
    %cst_11 = arith.constant dense<0xFF800000> : vector<8xf32>
    %17 = vector.multi_reduction <maximumf>, %16, %cst_11 [1] : vector<8x8xf32> to vector<8xf32>
    %18 = vector.shape_cast %17 : vector<8xf32> to vector<8x1xf32>
    %19 = vector.broadcast %18 : vector<8x1xf32> to vector<8x8xf32>
    %20 = arith.subf %16, %19 : vector<8x8xf32>
    %21 = math.exp %20 : vector<8x8xf32>
    %cst_12 = arith.constant dense<0.000000e+00> : vector<8xf32>
    %22 = vector.multi_reduction <add>, %21, %cst_12 [1] : vector<8x8xf32> to vector<8xf32>
    %23 = vector.shape_cast %22 : vector<8xf32> to vector<8x1xf32>
    %24 = tpu.reciprocal %23 {approx = true} : vector<8x1xf32> -> vector<8x1xf32>
    %25 = vector.broadcast %24 : vector<8x1xf32> to vector<8x8xf32>
    %26 = arith.mulf %21, %25 : vector<8x8xf32>
    %cst_13 = arith.constant dense<0.000000e+00> : vector<8x64xf32>
    %27 = tpu.matmul %26, %11, %cst_13 {dimension_numbers = #tpu.dot_dimension_numbers<[1], [0], [0], [1], [0, 0, 1, 1], [], []>} : vector<8x8xf32>, vector<8x64xf32>, vector<8x64xf32> -> vector<8x64xf32>
    %c0_14 = arith.constant 0 : index
    %c0_15 = arith.constant 0 : index
    %28 = vector.load %arg5[%c0_14, %c0_15] : memref<128x128xf32, #tpu.memory_space<vmem>>, vector<64x128xf32>
    %cst_16 = arith.constant dense<0.000000e+00> : vector<8x128xf32>
    %29 = tpu.matmul %27, %28, %cst_16 {dimension_numbers = #tpu.dot_dimension_numbers<[1], [0], [0], [1], [0, 0, 1, 1], [], []>} : vector<8x64xf32>, vector<64x128xf32>, vector<8x128xf32> -> vector<8x128xf32>
    %30 = vector.extract_strided_slice %8 {offsets = [0, 64], sizes = [8, 64], strides = [1, 1]} : vector<8x384xf32> to vector<8x64xf32>
    %31 = vector.extract_strided_slice %8 {offsets = [0, 192], sizes = [8, 64], strides = [1, 1]} : vector<8x384xf32> to vector<8x64xf32>
    %32 = vector.extract_strided_slice %8 {offsets = [0, 320], sizes = [8, 64], strides = [1, 1]} : vector<8x384xf32> to vector<8x64xf32>
    %cst_17 = arith.constant dense<0.000000e+00> : vector<8x8xf32>
    %33 = tpu.matmul %30, %31, %cst_17 {dimension_numbers = #tpu.dot_dimension_numbers<[1], [1], [0], [0], [0, 0, 1, 0], [], []>} : vector<8x64xf32>, vector<8x64xf32>, vector<8x8xf32> -> vector<8x8xf32>
    %cst_18 = arith.constant 1.250000e-01 : f32
    %34 = vector.broadcast %cst_18 : f32 to vector<8x8xf32>
    %35 = arith.mulf %33, %34 : vector<8x8xf32>
    %36 = vector.broadcast %3 : vector<1x8xf32> to vector<8x8xf32>
    %37 = arith.addf %35, %36 : vector<8x8xf32>
    %cst_19 = arith.constant dense<0xFF800000> : vector<8xf32>
    %38 = vector.multi_reduction <maximumf>, %37, %cst_19 [1] : vector<8x8xf32> to vector<8xf32>
    %39 = vector.shape_cast %38 : vector<8xf32> to vector<8x1xf32>
    %40 = vector.broadcast %39 : vector<8x1xf32> to vector<8x8xf32>
    %41 = arith.subf %37, %40 : vector<8x8xf32>
    %42 = math.exp %41 : vector<8x8xf32>
    %cst_20 = arith.constant dense<0.000000e+00> : vector<8xf32>
    %43 = vector.multi_reduction <add>, %42, %cst_20 [1] : vector<8x8xf32> to vector<8xf32>
    %44 = vector.shape_cast %43 : vector<8xf32> to vector<8x1xf32>
    %45 = tpu.reciprocal %44 {approx = true} : vector<8x1xf32> -> vector<8x1xf32>
    %46 = vector.broadcast %45 : vector<8x1xf32> to vector<8x8xf32>
    %47 = arith.mulf %42, %46 : vector<8x8xf32>
    %cst_21 = arith.constant dense<0.000000e+00> : vector<8x64xf32>
    %48 = tpu.matmul %47, %32, %cst_21 {dimension_numbers = #tpu.dot_dimension_numbers<[1], [0], [0], [1], [0, 0, 1, 1], [], []>} : vector<8x8xf32>, vector<8x64xf32>, vector<8x64xf32> -> vector<8x64xf32>
    %c64 = arith.constant 64 : index
    %c0_22 = arith.constant 0 : index
    %49 = vector.load %arg5[%c64, %c0_22] : memref<128x128xf32, #tpu.memory_space<vmem>>, vector<64x128xf32>
    %cst_23 = arith.constant dense<0.000000e+00> : vector<8x128xf32>
    %50 = tpu.matmul %48, %49, %cst_23 {dimension_numbers = #tpu.dot_dimension_numbers<[1], [0], [0], [1], [0, 0, 1, 1], [], []>} : vector<8x64xf32>, vector<64x128xf32>, vector<8x128xf32> -> vector<8x128xf32>
    %51 = arith.addf %29, %50 : vector<8x128xf32>
    %c0_24 = arith.constant 0 : index
    %c0_25 = arith.constant 0 : index
    %52 = vector.load %arg6[%c0_24, %c0_25] : memref<1x128xf32, #tpu.memory_space<vmem>>, vector<1x128xf32>
    %53 = vector.broadcast %52 : vector<1x128xf32> to vector<8x128xf32>
    %54 = arith.addf %51, %53 : vector<8x128xf32>
    %55 = arith.addf %54, %1 : vector<8x128xf32>
    %c0_26 = arith.constant 0 : index
    %c0_27 = arith.constant 0 : index
    %56 = vector.load %arg7[%c0_26, %c0_27] : memref<1x128xf32, #tpu.memory_space<vmem>>, vector<1x128xf32>
    %c0_28 = arith.constant 0 : index
    %c0_29 = arith.constant 0 : index
    %57 = vector.load %arg8[%c0_28, %c0_29] : memref<1x128xf32, #tpu.memory_space<vmem>>, vector<1x128xf32>
    %cst_30 = arith.constant dense<0.000000e+00> : vector<8xf32>
    %58 = vector.multi_reduction <add>, %55, %cst_30 [1] : vector<8x128xf32> to vector<8xf32>
    %59 = vector.shape_cast %58 : vector<8xf32> to vector<8x1xf32>
    %cst_31 = arith.constant 1.280000e+02 : f32
    %60 = vector.broadcast %cst_31 : f32 to vector<8x1xf32>
    %61 = arith.divf %59, %60 : vector<8x1xf32>
    %62 = vector.broadcast %61 : vector<8x1xf32> to vector<8x128xf32>
    %63 = arith.subf %55, %62 : vector<8x128xf32>
    %64 = arith.mulf %63, %63 : vector<8x128xf32>
    %cst_32 = arith.constant dense<0.000000e+00> : vector<8xf32>
    %65 = vector.multi_reduction <add>, %64, %cst_32 [1] : vector<8x128xf32> to vector<8xf32>
    %66 = vector.shape_cast %65 : vector<8xf32> to vector<8x1xf32>
    %cst_33 = arith.constant 1.280000e+02 : f32
    %67 = vector.broadcast %cst_33 : f32 to vector<8x1xf32>
    %68 = arith.divf %66, %67 : vector<8x1xf32>
    %cst_34 = arith.constant 9.99999996E-13 : f32
    %69 = vector.broadcast %cst_34 : f32 to vector<8x1xf32>
    %70 = arith.addf %68, %69 : vector<8x1xf32>
    %71 = math.rsqrt %70 : vector<8x1xf32>
    %72 = vector.broadcast %71 : vector<8x1xf32> to vector<8x128xf32>
    %73 = arith.mulf %63, %72 : vector<8x128xf32>
    %74 = vector.broadcast %56 : vector<1x128xf32> to vector<8x128xf32>
    %75 = arith.mulf %73, %74 : vector<8x128xf32>
    %76 = vector.broadcast %57 : vector<1x128xf32> to vector<8x128xf32>
    %77 = arith.addf %75, %76 : vector<8x128xf32>
    %c0_35 = arith.constant 0 : index
    %c0_36 = arith.constant 0 : index
    %78 = vector.load %arg9[%c0_35, %c0_36] : memref<128x512xf32, #tpu.memory_space<vmem>>, vector<128x512xf32>
    %cst_37 = arith.constant dense<0.000000e+00> : vector<8x512xf32>
    %79 = tpu.matmul %77, %78, %cst_37 {dimension_numbers = #tpu.dot_dimension_numbers<[1], [0], [0], [1], [0, 0, 1, 1], [], []>} : vector<8x128xf32>, vector<128x512xf32>, vector<8x512xf32> -> vector<8x512xf32>
    %c0_38 = arith.constant 0 : index
    %c0_39 = arith.constant 0 : index
    %80 = vector.load %arg10[%c0_38, %c0_39] : memref<1x512xf32, #tpu.memory_space<vmem>>, vector<1x512xf32>
    %81 = vector.broadcast %80 : vector<1x512xf32> to vector<8x512xf32>
    %82 = arith.addf %79, %81 : vector<8x512xf32>
    %83 = arith.mulf %82, %82 : vector<8x512xf32>
    %84 = arith.mulf %82, %83 : vector<8x512xf32>
    %cst_40 = arith.constant 4.471500e-02 : f32
    %85 = vector.broadcast %cst_40 : f32 to vector<8x512xf32>
    %86 = arith.mulf %85, %84 : vector<8x512xf32>
    %87 = arith.addf %82, %86 : vector<8x512xf32>
    %cst_41 = arith.constant 0.797884583 : f32
    %88 = vector.broadcast %cst_41 : f32 to vector<8x512xf32>
    %89 = arith.mulf %88, %87 : vector<8x512xf32>
    %90 = math.tanh %89 : vector<8x512xf32>
    %cst_42 = arith.constant 1.000000e+00 : f32
    %91 = vector.broadcast %cst_42 : f32 to vector<8x512xf32>
    %92 = arith.addf %91, %90 : vector<8x512xf32>
    %cst_43 = arith.constant 5.000000e-01 : f32
    %93 = vector.broadcast %cst_43 : f32 to vector<8x512xf32>
    %94 = arith.mulf %93, %92 : vector<8x512xf32>
    %95 = arith.mulf %82, %94 : vector<8x512xf32>
    %c0_44 = arith.constant 0 : index
    %c0_45 = arith.constant 0 : index
    %96 = vector.load %arg11[%c0_44, %c0_45] : memref<512x128xf32, #tpu.memory_space<vmem>>, vector<512x128xf32>
    %cst_46 = arith.constant dense<0.000000e+00> : vector<8x128xf32>
    %97 = tpu.matmul %95, %96, %cst_46 {dimension_numbers = #tpu.dot_dimension_numbers<[1], [0], [0], [1], [0, 0, 1, 1], [], []>} : vector<8x512xf32>, vector<512x128xf32>, vector<8x128xf32> -> vector<8x128xf32>
    %c0_47 = arith.constant 0 : index
    %c0_48 = arith.constant 0 : index
    %98 = vector.load %arg12[%c0_47, %c0_48] : memref<1x128xf32, #tpu.memory_space<vmem>>, vector<1x128xf32>
    %99 = vector.broadcast %98 : vector<1x128xf32> to vector<8x128xf32>
    %100 = arith.addf %97, %99 : vector<8x128xf32>
    %101 = arith.addf %100, %77 : vector<8x128xf32>
    %c0_49 = arith.constant 0 : index
    %c0_50 = arith.constant 0 : index
    %102 = vector.load %arg13[%c0_49, %c0_50] : memref<1x128xf32, #tpu.memory_space<vmem>>, vector<1x128xf32>
    %c0_51 = arith.constant 0 : index
    %c0_52 = arith.constant 0 : index
    %103 = vector.load %arg14[%c0_51, %c0_52] : memref<1x128xf32, #tpu.memory_space<vmem>>, vector<1x128xf32>
    %cst_53 = arith.constant dense<0.000000e+00> : vector<8xf32>
    %104 = vector.multi_reduction <add>, %101, %cst_53 [1] : vector<8x128xf32> to vector<8xf32>
    %105 = vector.shape_cast %104 : vector<8xf32> to vector<8x1xf32>
    %cst_54 = arith.constant 1.280000e+02 : f32
    %106 = vector.broadcast %cst_54 : f32 to vector<8x1xf32>
    %107 = arith.divf %105, %106 : vector<8x1xf32>
    %108 = vector.broadcast %107 : vector<8x1xf32> to vector<8x128xf32>
    %109 = arith.subf %101, %108 : vector<8x128xf32>
    %110 = arith.mulf %109, %109 : vector<8x128xf32>
    %cst_55 = arith.constant dense<0.000000e+00> : vector<8xf32>
    %111 = vector.multi_reduction <add>, %110, %cst_55 [1] : vector<8x128xf32> to vector<8xf32>
    %112 = vector.shape_cast %111 : vector<8xf32> to vector<8x1xf32>
    %cst_56 = arith.constant 1.280000e+02 : f32
    %113 = vector.broadcast %cst_56 : f32 to vector<8x1xf32>
    %114 = arith.divf %112, %113 : vector<8x1xf32>
    %cst_57 = arith.constant 9.99999996E-13 : f32
    %115 = vector.broadcast %cst_57 : f32 to vector<8x1xf32>
    %116 = arith.addf %114, %115 : vector<8x1xf32>
    %117 = math.rsqrt %116 : vector<8x1xf32>
    %118 = vector.broadcast %117 : vector<8x1xf32> to vector<8x128xf32>
    %119 = arith.mulf %109, %118 : vector<8x128xf32>
    %120 = vector.broadcast %102 : vector<1x128xf32> to vector<8x128xf32>
    %121 = arith.mulf %119, %120 : vector<8x128xf32>
    %122 = vector.broadcast %103 : vector<1x128xf32> to vector<8x128xf32>
    %123 = arith.addf %121, %122 : vector<8x128xf32>
    %c0_58 = arith.constant 0 : index
    %c0_59 = arith.constant 0 : index
    %c0_60 = arith.constant 0 : index
    %124 = vector.load %arg15[%c0_58, %c0_59, %c0_60] : memref<1x8x128xf32, #tpu.memory_space<vmem>>, vector<1x8x128xf32>
    %125 = vector.shape_cast %124 : vector<1x8x128xf32> to vector<8x128xf32>
    %126 = vector.shape_cast %123 : vector<8x128xf32> to vector<1x8x128xf32>
    tpu.vector_store %arg15[%c0_58, %c0_59, %c0_60], %126 {strides = array<i32>} : memref<1x8x128xf32, #tpu.memory_space<vmem>>, vector<1x8x128xf32>,
    return
  }
  func.func @transform_0(%arg0: i32) -> (i32, i32, i32) {
    %c0_i32 = arith.constant 0 : i32
    %c0_i32_0 = arith.constant 0 : i32
    %c0_i32_1 = arith.constant 0 : i32
    return %arg0, %c0_i32, %c0_i32_0 : i32, i32, i32
  }
  func.func @transform_1(%arg0: i32) -> (i32, i32, i32) {
    %c0_i32 = arith.constant 0 : i32
    %c0_i32_0 = arith.constant 0 : i32
    %c0_i32_1 = arith.constant 0 : i32
    return %arg0, %c0_i32, %c0_i32_0 : i32, i32, i32
  }
  func.func @transform_2(%arg0: i32) -> (i32, i32) {
    %c0_i32 = arith.constant 0 : i32
    %c0_i32_0 = arith.constant 0 : i32
    %c0_i32_1 = arith.constant 0 : i32
    return %c0_i32, %c0_i32_0 : i32, i32
  }
  func.func @transform_3(%arg0: i32) -> (i32, i32) {
    %c0_i32 = arith.constant 0 : i32
    %c0_i32_0 = arith.constant 0 : i32
    %c0_i32_1 = arith.constant 0 : i32
    return %c0_i32, %c0_i32_0 : i32, i32
  }
  func.func @transform_4(%arg0: i32) -> (i32, i32) {
    %c0_i32 = arith.constant 0 : i32
    %c0_i32_0 = arith.constant 0 : i32
    %c0_i32_1 = arith.constant 0 : i32
    return %c0_i32, %c0_i32_0 : i32, i32
  }
  func.func @transform_5(%arg0: i32) -> (i32, i32) {
    %c0_i32 = arith.constant 0 : i32
    %c0_i32_0 = arith.constant 0 : i32
    %c0_i32_1 = arith.constant 0 : i32
    return %c0_i32, %c0_i32_0 : i32, i32
  }
  func.func @transform_6(%arg0: i32) -> (i32, i32) {
    %c0_i32 = arith.constant 0 : i32
    %c0_i32_0 = arith.constant 0 : i32
    %c0_i32_1 = arith.constant 0 : i32
    return %c0_i32, %c0_i32_0 : i32, i32
  }
  func.func @transform_7(%arg0: i32) -> (i32, i32) {
    %c0_i32 = arith.constant 0 : i32
    %c0_i32_0 = arith.constant 0 : i32
    %c0_i32_1 = arith.constant 0 : i32
    return %c0_i32, %c0_i32_0 : i32, i32
  }
  func.func @transform_8(%arg0: i32) -> (i32, i32) {
    %c0_i32 = arith.constant 0 : i32
    %c0_i32_0 = arith.constant 0 : i32
    %c0_i32_1 = arith.constant 0 : i32
    return %c0_i32, %c0_i32_0 : i32, i32
  }
  func.func @transform_9(%arg0: i32) -> (i32, i32) {
    %c0_i32 = arith.constant 0 : i32
    %c0_i32_0 = arith.constant 0 : i32
    %c0_i32_1 = arith.constant 0 : i32
    return %c0_i32, %c0_i32_0 : i32, i32
  }
  func.func @transform_10(%arg0: i32) -> (i32, i32) {
    %c0_i32 = arith.constant 0 : i32
    %c0_i32_0 = arith.constant 0 : i32
    %c0_i32_1 = arith.constant 0 : i32
    return %c0_i32, %c0_i32_0 : i32, i32
  }
  func.func @transform_11(%arg0: i32) -> (i32, i32) {
    %c0_i32 = arith.constant 0 : i32
    %c0_i32_0 = arith.constant 0 : i32
    %c0_i32_1 = arith.constant 0 : i32
    return %c0_i32, %c0_i32_0 : i32, i32
  }
  func.func @transform_12(%arg0: i32) -> (i32, i32) {
    %c0_i32 = arith.constant 0 : i32
    %c0_i32_0 = arith.constant 0 : i32
    %c0_i32_1 = arith.constant 0 : i32
    return %c0_i32, %c0_i32_0 : i32, i32
  }
  func.func @transform_13(%arg0: i32) -> (i32, i32) {
    %c0_i32 = arith.constant 0 : i32
    %c0_i32_0 = arith.constant 0 : i32
    %c0_i32_1 = arith.constant 0 : i32
    return %c0_i32, %c0_i32_0 : i32, i32
  }
  func.func @transform_14(%arg0: i32) -> (i32, i32, i32) {
    %c0_i32 = arith.constant 0 : i32
    %c0_i32_0 = arith.constant 0 : i32
    %c0_i32_1 = arith.constant 0 : i32
    return %arg0, %c0_i32, %c0_i32_0 : i32, i32, i32
  }
}

module attributes {stable_mosaic.version = 11 : i64} {
  func.func @_head_kernel(%arg0: i32, %arg1: memref<2x128xf32, #tpu.memory_space<vmem>>, %arg2: memref<2x1xi32, #tpu.memory_space<vmem>>, %arg3: memref<128x128xf32, #tpu.memory_space<vmem>>, %arg4: memref<1x128xf32, #tpu.memory_space<vmem>>, %arg5: memref<128x128xf32, #tpu.memory_space<vmem>>, %arg6: memref<1x128xf32, #tpu.memory_space<vmem>>, %arg7: memref<2x128xf32, #tpu.memory_space<vmem>>, %arg8: memref<1x1xf32, #tpu.memory_space<vmem>>) attributes {dimension_semantics = [#tpu.dimension_semantics<arbitrary>], iteration_bounds = array<i64: 1>, scalar_prefetch = 0 : i64, scratch_operands = 0 : i64, tpu.core_type = #tpu.core_type<tc>, window_params = [{pipeline_mode = #tpu.pipeline_mode<synchronous>, transform_indices = @transform_0, window_bounds = array<i64: 2, 128>}, {pipeline_mode = #tpu.pipeline_mode<synchronous>, transform_indices = @transform_1, window_bounds = array<i64: 2, 1>}, {pipeline_mode = #tpu.pipeline_mode<synchronous>, transform_indices = @transform_2, window_bounds = array<i64: 128, 128>}, {pipeline_mode = #tpu.pipeline_mode<synchronous>, transform_indices = @transform_3, window_bounds = array<i64: 1, 128>}, {pipeline_mode = #tpu.pipeline_mode<synchronous>, transform_indices = @transform_4, window_bounds = array<i64: 128, 128>}, {pipeline_mode = #tpu.pipeline_mode<synchronous>, transform_indices = @transform_5, window_bounds = array<i64: 1, 128>}, {pipeline_mode = #tpu.pipeline_mode<synchronous>, transform_indices = @transform_6, window_bounds = array<i64: 2, 128>}, {pipeline_mode = #tpu.pipeline_mode<synchronous>, transform_indices = @transform_7, window_bounds = array<i64: 1, 1>}]} {
    %c0 = arith.constant 0 : index
    %c0_0 = arith.constant 0 : index
    %0 = vector.load %arg1[%c0, %c0_0] : memref<2x128xf32, #tpu.memory_space<vmem>>, vector<2x128xf32>
    %c0_1 = arith.constant 0 : index
    %c0_2 = arith.constant 0 : index
    %1 = vector.load %arg3[%c0_1, %c0_2] : memref<128x128xf32, #tpu.memory_space<vmem>>, vector<128x128xf32>
    %cst = arith.constant dense<0.000000e+00> : vector<2x128xf32>
    %2 = tpu.matmul %0, %1, %cst {dimension_numbers = #tpu.dot_dimension_numbers<[1], [0], [0], [1], [0, 0, 1, 1], [], []>} : vector<2x128xf32>, vector<128x128xf32>, vector<2x128xf32> -> vector<2x128xf32>
    %c0_3 = arith.constant 0 : index
    %c0_4 = arith.constant 0 : index
    %3 = vector.load %arg4[%c0_3, %c0_4] : memref<1x128xf32, #tpu.memory_space<vmem>>, vector<1x128xf32>
    %4 = vector.broadcast %3 : vector<1x128xf32> to vector<2x128xf32>
    %5 = arith.addf %2, %4 : vector<2x128xf32>
    %cst_5 = arith.constant 0.000000e+00 : f32
    %6 = vector.broadcast %cst_5 : f32 to vector<2x128xf32>
    %7 = arith.maximumf %5, %6 : vector<2x128xf32>
    %c0_6 = arith.constant 0 : index
    %c0_7 = arith.constant 0 : index
    %8 = vector.load %arg5[%c0_6, %c0_7] : memref<128x128xf32, #tpu.memory_space<vmem>>, vector<128x128xf32>
    %cst_8 = arith.constant dense<0.000000e+00> : vector<2x128xf32>
    %9 = tpu.matmul %7, %8, %cst_8 {dimension_numbers = #tpu.dot_dimension_numbers<[1], [0], [0], [1], [0, 0, 1, 1], [], []>} : vector<2x128xf32>, vector<128x128xf32>, vector<2x128xf32> -> vector<2x128xf32>
    %c0_9 = arith.constant 0 : index
    %c0_10 = arith.constant 0 : index
    %10 = vector.load %arg6[%c0_9, %c0_10] : memref<1x128xf32, #tpu.memory_space<vmem>>, vector<1x128xf32>
    %11 = vector.broadcast %10 : vector<1x128xf32> to vector<2x128xf32>
    %12 = arith.addf %9, %11 : vector<2x128xf32>
    %c0_11 = arith.constant 0 : index
    %c0_12 = arith.constant 0 : index
    %13 = vector.load %arg7[%c0_11, %c0_12] : memref<2x128xf32, #tpu.memory_space<vmem>>, vector<2x128xf32>
    tpu.vector_store %arg7[%c0_11, %c0_12], %12 {strides = array<i32>} : memref<2x128xf32, #tpu.memory_space<vmem>>, vector<2x128xf32>,
    %14 = tpu.iota {dimensions = array<i32: 1>} : vector<2x128xi32>
    %c3_i32 = arith.constant 3 : i32
    %15 = vector.broadcast %c3_i32 : i32 to vector<2x128xi32>
    %16 = arith.cmpi slt, %14, %15 : vector<2x128xi32>
    %cst_13 = arith.constant -1.000000e+30 : f32
    %17 = vector.broadcast %cst_13 : f32 to vector<2x128xf32>
    %18 = arith.select %16, %12, %17 : vector<2x128xi1>, vector<2x128xf32>
    %cst_14 = arith.constant dense<0xFF800000> : vector<2xf32>
    %19 = vector.multi_reduction <maximumf>, %18, %cst_14 [1] : vector<2x128xf32> to vector<2xf32>
    %20 = vector.shape_cast %19 : vector<2xf32> to vector<2x1xf32>
    %21 = vector.broadcast %20 : vector<2x1xf32> to vector<2x128xf32>
    %22 = arith.subf %18, %21 : vector<2x128xf32>
    %23 = math.exp %22 : vector<2x128xf32>
    %cst_15 = arith.constant dense<0.000000e+00> : vector<2xf32>
    %24 = vector.multi_reduction <add>, %23, %cst_15 [1] : vector<2x128xf32> to vector<2xf32>
    %25 = vector.shape_cast %24 : vector<2xf32> to vector<2x1xf32>
    %26 = math.log %25 : vector<2x1xf32>
    %c0_16 = arith.constant 0 : index
    %c0_17 = arith.constant 0 : index
    %27 = vector.load %arg2[%c0_16, %c0_17] : memref<2x1xi32, #tpu.memory_space<vmem>>, vector<2x1xi32>
    %28 = vector.broadcast %27 : vector<2x1xi32> to vector<2x128xi32>
    %29 = arith.cmpi eq, %14, %28 : vector<2x128xi32>
    %30 = arith.extui %29 : vector<2x128xi1> to vector<2x128xi32>
    %31 = arith.sitofp %30 : vector<2x128xi32> to vector<2x128xf32>
    %32 = vector.broadcast %26 : vector<2x1xf32> to vector<2x128xf32>
    %33 = arith.subf %22, %32 : vector<2x128xf32>
    %34 = arith.mulf %31, %33 : vector<2x128xf32>
    %cst_18 = arith.constant dense<0.000000e+00> : vector<2xf32>
    %35 = vector.multi_reduction <add>, %34, %cst_18 [1] : vector<2x128xf32> to vector<2xf32>
    %36 = vector.shape_cast %35 : vector<2xf32> to vector<2x1xf32>
    %cst_19 = arith.constant 0.000000e+00 : f32
    %37 = vector.broadcast %cst_19 : f32 to vector<2x1xf32>
    %38 = arith.subf %37, %36 : vector<2x1xf32>
    %cst_20 = arith.constant dense<0.000000e+00> : vector<1xf32>
    %39 = vector.multi_reduction <add>, %38, %cst_20 [0] : vector<2x1xf32> to vector<1xf32>
    %40 = vector.shape_cast %39 : vector<1xf32> to vector<1x1xf32>
    %cst_21 = arith.constant 5.000000e-01 : f32
    %41 = vector.broadcast %cst_21 : f32 to vector<1x1xf32>
    %42 = arith.mulf %40, %41 : vector<1x1xf32>
    %c0_22 = arith.constant 0 : index
    %c0_23 = arith.constant 0 : index
    %43 = vector.load %arg8[%c0_22, %c0_23] : memref<1x1xf32, #tpu.memory_space<vmem>>, vector<1x1xf32>
    tpu.vector_store %arg8[%c0_22, %c0_23], %42 {strides = array<i32>} : memref<1x1xf32, #tpu.memory_space<vmem>>, vector<1x1xf32>,
    return
  }
  func.func @transform_0(%arg0: i32) -> (i32, i32) {
    %c0_i32 = arith.constant 0 : i32
    %c0_i32_0 = arith.constant 0 : i32
    %c0_i32_1 = arith.constant 0 : i32
    return %c0_i32, %c0_i32_0 : i32, i32
  }
  func.func @transform_1(%arg0: i32) -> (i32, i32) {
    %c0_i32 = arith.constant 0 : i32
    %c0_i32_0 = arith.constant 0 : i32
    %c0_i32_1 = arith.constant 0 : i32
    return %c0_i32, %c0_i32_0 : i32, i32
  }
  func.func @transform_2(%arg0: i32) -> (i32, i32) {
    %c0_i32 = arith.constant 0 : i32
    %c0_i32_0 = arith.constant 0 : i32
    %c0_i32_1 = arith.constant 0 : i32
    return %c0_i32, %c0_i32_0 : i32, i32
  }
  func.func @transform_3(%arg0: i32) -> (i32, i32) {
    %c0_i32 = arith.constant 0 : i32
    %c0_i32_0 = arith.constant 0 : i32
    %c0_i32_1 = arith.constant 0 : i32
    return %c0_i32, %c0_i32_0 : i32, i32
  }
  func.func @transform_4(%arg0: i32) -> (i32, i32) {
    %c0_i32 = arith.constant 0 : i32
    %c0_i32_0 = arith.constant 0 : i32
    %c0_i32_1 = arith.constant 0 : i32
    return %c0_i32, %c0_i32_0 : i32, i32
  }
  func.func @transform_5(%arg0: i32) -> (i32, i32) {
    %c0_i32 = arith.constant 0 : i32
    %c0_i32_0 = arith.constant 0 : i32
    %c0_i32_1 = arith.constant 0 : i32
    return %c0_i32, %c0_i32_0 : i32, i32
  }
  func.func @transform_6(%arg0: i32) -> (i32, i32) {
    %c0_i32 = arith.constant 0 : i32
    %c0_i32_0 = arith.constant 0 : i32
    %c0_i32_1 = arith.constant 0 : i32
    return %c0_i32, %c0_i32_0 : i32, i32
  }
  func.func @transform_7(%arg0: i32) -> (i32, i32) {
    %c0_i32 = arith.constant 0 : i32
    %c0_i32_0 = arith.constant 0 : i32
    %c0_i32_1 = arith.constant 0 : i32
    return %c0_i32, %c0_i32_0 : i32, i32
  }
}

</mosaic_0001>

<bundles_post_ra>
// kernel: _lambda_.4
= control target key start
LH: loop header
LB: loop body
LE: loop exit
PB: predicated region body
PF: predicated region fallthrough
CT: control target
= control target key end

     0   :  { %s373_s18 = smov 0   ;;  %s402_s0 = inlined_call_operand.vmem [shape: f32[2,8,128], index: 0, kind: input, shape index: {}]   ;;  %s403_s1 = inlined_call_operand.vmem [shape: f32[8,128], index: 1, kind: input, shape index: {}]   ;;  %s404_s2 = inlined_call_operand.vmem [shape: f32[1,128], index: 2, kind: input, shape index: {}]   ;;  %s405_s3 = inlined_call_operand.vmem [shape: f32[1,128], index: 3, kind: input, shape index: {}]   ;;  %s406_s4 = inlined_call_operand.vmem [shape: f32[1,128], index: 4, kind: input, shape index: {}]   ;;  %s407_s5 = inlined_call_operand.vmem [shape: f32[2,8,128], index: 5, kind: output, shape index: {}]  }
   0x1 LB: > { %s313_s19 = sadd.s32 4294967295, %s341_s18   ;;  %p317_p0 = scmp.ge.s32.totalorder %s341_s18, 1  ;;  %s341_s18 = sphi %s373_s18, %s15_s18  }
   0x2   : > { %p186_p1 = scmp.lt.s32.totalorder %s341_s18, 3 }
   0x4   : > { %p187_p2 = pnand %p317_p0, %p186_p1 }
   0x5   : > { %p212_p3 = scmp.lt.s32.totalorder (!%p187_p2), %s313_s19, 1  ;;  %v221_v0 = vld [vmem:[%s403_s1] sm:$0xff] (!%p187_p2) }
   0x6   : > { %190 = sbr.rel (%p187_p2) target bundleno = 333 (0x14d), region = 40  ;;  %v320_v2 = vld [vmem:[%s404_s2] ss:$0 sm:$0xff] (!%p187_p2) }
   0x7   : > { %v321_v13 = vld [vmem:[%s405_s3] ss:$0 sm:$0xff] (!%p187_p2) }
   0x8   : > { %v322_v15 = vld [vmem:[%s406_s4] ss:$0 sm:$0xff] (!%p187_p2) }
   0xd   : > { %s409_s19 = smov (!%p212_p3, %s313_s19), 1 }
   0xe   : > { %s318_s20 = sshll.u32 %s409_s19, 3 }
   0xf   : > { %s215_s25 = scalar_lea.vmem %s402_s0, %s318_s20  ;;  %s219_s9 = scalar_lea.vmem %s407_s5, %s318_s20 }
  0x10   : > { %v220_v1 = vld [vmem:[%s215_s25] sm:$0xff] }
  0x11   : > { %v222_v3 = vadd.f32 %v221_v0, %v220_v1 }
  0x13   : > { %v230_v4 = vadd.f32 %v320_v2, %v222_v3 }
  0x15   : > { %233 = vadd.xlane.f32.xlu0 %v230_v4 }
  0xa2   : > { %v234_v5 = vpop.xlane.xlu0 %233 }
  0xa3   : > { %v236_v6 = vmul.f32 0.0078125, %v234_v5 }
  0xa5   : > { %v237_v7 = vsub.f32 %v230_v4, %v236_v6 }
  0xa7   : > { %v238_v8 = vmul.f32 %v237_v7, %v237_v7 }
  0xa9   : > { %239 = vadd.xlane.f32.xlu0 %v238_v8 }
 0x136   : > { %v240_v9 = vpop.xlane.xlu0 %239 }
 0x137   : > { %v241_v10 = vmul.f32 0.0078125, %v240_v9 }
 0x139   : > { %v242_v11 = vadd.f32 1e-12, %v241_v10 }
 0x13b   : > { %333 = vrsqrt.f32 %v242_v11 }
 0x145   : > { %v334_v12 = vpop.eup %333 }
 0x146   : > { %v244_v14 = vmul.f32 %v334_v12, %v237_v7 }
 0x148   : > { %v251_v16 = vmul.f32 %v321_v13, %v244_v14 }
 0x14a   : > { %v258_v17 = vadd.f32 %v322_v15, %v251_v16 }
 0x14c   : > { %259 = vst [vmem:[%s219_s9] sm:$0xff] %v258_v17 }
 0x14d PF: > { %s15_s18 = sadd.s32 1, %s341_s18  }
 0x14e   : > { %p12_p4 = scmp.ge.s32.totalorder %s15_s18, 4  }
 0x150   :  { %14 = sbr.rel (!%p12_p4) target bundleno = 1 (0x1), region = 70 }

// kernel: _lambda_.7
= control target key start
LH: loop header
LB: loop body
LE: loop exit
PB: predicated region body
PF: predicated region fallthrough
CT: control target
= control target key end

     0   :  { %13 = vsyncpa [#allocation3], 0  ;;  %v498_v3 = vmov 0.0|0.0   ;;  %vm499_vm0 = vmmov 0   ;;  %v500_v6 = vmov 0.0   ;;  %s699_s0 = inlined_call_operand.vmem [shape: f32[2,128], index: 0, kind: input, shape index: {}]   ;;  %s700_s1 = inlined_call_operand.vmem [shape: s32[2,1], index: 1, kind: input, shape index: {}]   ;;  %s701_s2 = inlined_call_operand.vmem [shape: f32[128,128], index: 2, kind: input, shape index: {}]   ;;  %s702_s3 = inlined_call_operand.vmem [shape: f32[1,128], index: 3, kind: input, shape index: {}]   ;;  %s703_s4 = inlined_call_operand.vmem [shape: f32[128,128], index: 4, kind: input, shape index: {}]   ;;  %s704_s5 = inlined_call_operand.vmem [shape: f32[1,128], index: 5, kind: input, shape index: {}]   ;;  %s705_s6 = inlined_call_operand.hbm [shape: f32[2,128], index: 6, kind: output, shape index: {0}]   ;;  %s706_s7 = inlined_call_operand.hbm [shape: f32[1,1], index: 7, kind: output, shape index: {1}]  }
   0x1   :  { %v28_v0 = vld [vmem:[%s701_s2] sm:$0xff]  ;;  %v29_v1 = vld [vmem:[%s701_s2 + $0x8] sm:$0xff]  ;;  %v30_v2 = vld [vmem:[%s701_s2 + $0x10] sm:$0xff]  ;;  %390 = vmatprep.subr.bf16.mxu0 %v498_v3  ;;  %352 = vmatprep.mubr.msk.f32.mxu0 %vm499_vm0, %v500_v6 }
   0x2   :  { %v391_v4 = vpack.c.bf16 %v29_v1, %v28_v0  ;;  %v31_v5 = vld [vmem:[%s701_s2 + $0x18] sm:$0xff]  ;;  %414 = vmatprep.subr.bf16.mxu1 %v498_v3  ;;  %387 = vmatprep.mubr.msk.f32.mxu1 %vm499_vm0, %v500_v6  ;;  %v32_v8 = vld [vmem:[%s701_s2 + $0x20] sm:$0xff]  ;;  %v33_v9 = vld [vmem:[%s701_s2 + $0x28] sm:$0xff] }
   0x3   :  { %v394_v7 = vpack.c.bf16 %v31_v5, %v30_v2  ;;  %v122_v10 = vld [vmem:[%s703_s4] sm:$0xff]  ;;  %v123_v11 = vld [vmem:[%s703_s4 + $0x8] sm:$0xff]  ;;  %v124_v12 = vld [vmem:[%s703_s4 + $0x10] sm:$0xff]  ;;  %v397_v14 = vpack.c.bf16 %v33_v9, %v32_v8 }
   0x4   :  { %392 = vmatpush3.bf16.msra.mxu0 %v391_v4  ;;  %v125_v13 = vld [vmem:[%s703_s4 + $0x18] sm:$0xff]  ;;  %v415_v15 = vpack.c.bf16 %v123_v11, %v122_v10  ;;  %v34_v16 = vld [vmem:[%s701_s2 + $0x30] sm:$0xff]  ;;  %v126_v19 = vld [vmem:[%s703_s4 + $0x20] sm:$0xff] }
   0x5   :  { %393 = vmatprep.subr.bf16.mxu0 %v498_v3  ;;  %v35_v17 = vld [vmem:[%s701_s2 + $0x38] sm:$0xff]  ;;  %v418_v18 = vpack.c.bf16 %v125_v13, %v124_v12  ;;  %v127_v20 = vld [vmem:[%s703_s4 + $0x28] sm:$0xff] }
   0x6   :  { %416 = vmatpush3.bf16.msra.mxu1 %v415_v15 }
   0x7   :  { %417 = vmatprep.subr.bf16.mxu1 %v498_v3 }
   0x8   :  { %395 = vmatpush3.bf16.msra.mxu0 %v394_v7 }
   0x9   :  { %396 = vmatprep.subr.bf16.mxu0 %v498_v3 }
   0xa   :  { %14 = vsyncpa [#allocation5], 0  ;;  %v400_v21 = vpack.c.bf16 %v35_v17, %v34_v16  ;;  %v36_v22 = vld [vmem:[%s701_s2 + $0x40] sm:$0xff]  ;;  %v37_v23 = vld [vmem:[%s701_s2 + $0x48] sm:$0xff]  ;;  %419 = vmatpush3.bf16.msra.mxu1 %v418_v18  ;;  %v421_v24 = vpack.c.bf16 %v127_v20, %v126_v19  ;;  %v216_v56 = vlaneseq  ;;  %vm220_vm2 = vcmask 1041408  }
   0xb   :  { %420 = vmatprep.subr.bf16.mxu1 %v498_v3  ;;  %v128_v25 = vld [vmem:[%s703_s4 + $0x30] sm:$0xff]  ;;  %v129_v26 = vld [vmem:[%s703_s4 + $0x38] sm:$0xff]  ;;  %v403_v27 = vpack.c.bf16 %v37_v23, %v36_v22  ;;  %v130_v31 = vld [vmem:[%s703_s4 + $0x40] sm:$0xff]  ;;  %v501_v1 = vmov 0  }
   0xc   :  { %398 = vmatpush3.bf16.msra.mxu0 %v397_v14  ;;  %v38_v28 = vld [vmem:[%s701_s2 + $0x50] sm:$0xff]  ;;  %v39_v29 = vld [vmem:[%s701_s2 + $0x58] sm:$0xff]  ;;  %v424_v30 = vpack.c.bf16 %v129_v26, %v128_v25  ;;  %v131_v32 = vld [vmem:[%s703_s4 + $0x48] sm:$0xff]  ;;  %v217_v57 = vand.u32 127, %v216_v56  ;;  %444 = vset.pattern.permute.xlu1 %v501_v1 }
   0xd   :  { %399 = vmatprep.subr.bf16.mxu0 %v498_v3  ;;  %v406_v33 = vpack.c.bf16 %v39_v29, %v38_v28  ;;  %v40_v34 = vld [vmem:[%s701_s2 + $0x60] sm:$0xff]  ;;  %v41_v35 = vld [vmem:[%s701_s2 + $0x68] sm:$0xff]  ;;  %v427_v36 = vpack.c.bf16 %v131_v32, %v130_v31  ;;  %v132_v37 = vld [vmem:[%s703_s4 + $0x50] sm:$0xff]  ;;  %445 = vset.pattern.permute.xlu0 %v501_v1 }
   0xe   :  { %422 = vmatpush3.bf16.msra.mxu1 %v421_v24  ;;  %v133_v38 = vld [vmem:[%s703_s4 + $0x58] sm:$0xff]  ;;  %v409_v39 = vpack.c.bf16 %v41_v35, %v40_v34  ;;  %v42_v40 = vld [vmem:[%s701_s2 + $0x70] sm:$0xff]  ;;  %v134_v43 = vld [vmem:[%s703_s4 + $0x60] sm:$0xff]  ;;  %vm218_vm1 = vcmp.lt.s32.totalorder %v217_v57, 3 }
   0xf   :  { %423 = vmatprep.subr.bf16.mxu1 %v498_v3  ;;  %v43_v41 = vld [vmem:[%s701_s2 + $0x78] sm:$0xff]  ;;  %v430_v42 = vpack.c.bf16 %v133_v38, %v132_v37  ;;  %v135_v44 = vld [vmem:[%s703_s4 + $0x68] sm:$0xff]  ;;  %v27_v47 = vld [vmem:[%s699_s0] sm:$0x3] }
  0x10   :  { %401 = vmatpush3.bf16.msra.mxu0 %v400_v21  ;;  %v412_v45 = vpack.c.bf16 %v43_v41, %v42_v40  ;;  %v433_v46 = vpack.c.bf16 %v135_v44, %v134_v43  ;;  %v136_v48 = vld [vmem:[%s703_s4 + $0x70] sm:$0xff]  ;;  %v137_v49 = vld [vmem:[%s703_s4 + $0x78] sm:$0xff]  ;;  %v283_v51 = vld [vmem:[%s702_s3] ss:$0 sm:$0xff] }
  0x11   :  { %402 = vmatprep.subr.bf16.mxu0 %v498_v3  ;;  %v436_v50 = vpack.c.bf16 %v137_v49, %v136_v48  ;;  %v284_v58 = vld [vmem:[%s704_s5] ss:$0 sm:$0xff] }
  0x12   :  { %425 = vmatpush3.bf16.msra.mxu1 %v424_v30  ;;  %v232_v0 = vld [vmem:[%s700_s1] sm:$0x3]  ;;  %s502_s1 = smov [#allocation2]  }
  0x13   :  { %426 = vmatprep.subr.bf16.mxu1 %v498_v3  ;;  %234 = vperm.xlu1 %444, %v232_v0   ;;  %s261_s5 = sshll.u32 %s502_s1, 4  ;;  %s262_s5 = int_to_ptr.vmem [resolvable:$true] %s261_s5 }
  0x14   :  { %404 = vmatpush3.bf16.msra.mxu0 %v403_v27  ;;  %s450_s23 = scalar_lea.vmem %s262_s5, 32  ;;  %p455_p1 = scmp.lt.s32.totalorder %s262_s5, %s262_s5 }
  0x15   :  { %405 = vmatprep.subr.bf16.mxu0 %v498_v3  ;;  %p451_p0 = scmp.ne.s32.totalorder %s262_s5, %s450_s23  ;;  %p456_p2 = scmp.lt.s32.totalorder %s450_s23, %s450_s23 }
  0x16   :  { %428 = vmatpush3.bf16.msra.mxu1 %v427_v36 }
  0x17   :  { %429 = vmatprep.subr.bf16.mxu1 %v498_v3  ;;  %p457_p3 = por %p456_p2, %p455_p1 }
  0x18   :  { %407 = vmatpush3.bf16.msra.mxu0 %v406_v33 }
  0x19   :  { %408 = vmatprep.subr.bf16.mxu0 %v498_v3  ;;  %p458_p4 = pnand %p457_p3, %p451_p0 }
  0x1a   :  { %431 = vmatpush3.bf16.msra.mxu1 %v430_v42 }
  0x1b   :  { %432 = vmatprep.subr.bf16.mxu1 %v498_v3 }
  0x1c   :  { %410 = vmatpush3.bf16.msra.mxu0 %v409_v39 }
  0x1d   :  { %411 = vmatprep.subr.bf16.mxu0 %v498_v3 }
  0x1e   :  { %434 = vmatpush3.bf16.msra.mxu1 %v433_v46 }
  0x1f   :  { %435 = vmatprep.subr.bf16.mxu1 %v498_v3 }
  0x20   :  { %413 = vmatpush3.bf16.msra.mxu0 %v412_v45 }
  0x22   :  { %437 = vmatpush3.bf16.msra.mxu1 %v436_v50 }
  0x23   :  { %353 = vmatmul.mubr.f32.vlgmr.msra.gmra.mrb[0].mxu0 %v27_v47 }
  0x92   :  { %v235_v9 = vpop.permute.xlu1 %234 }
  0x93   :  { %vm236_vm3 = vcmp.eq.s32.totalorder %v217_v57, %v235_v9 }
  0x94   :  { %v285_v12 = vsel %vm236_vm3, 1.0, %v500_v6 }
  0xf6   :  { %v117_v52 = vpop.f32.mrb[0].mxu0 }
  0xf7   :  { %v118_v53 = vadd.f32 %v283_v51, %v117_v52  ;;  %v354_v54 = vpop.f32.mrb[1].mxu0 }
  0xf9   :  { %v121_v55 = vmax.f32 %v118_v53, 0.0 }
  0xfb   :  { %388 = vmatmul.mubr.f32.vlgmr.msra.gmra.mrb[0].mxu1 %v121_v55 }
 0x1ce   :  { %v211_v59 = vpop.f32.mrb[0].mxu1 }
 0x1cf   :  { %v212_v60 = vadd.f32 %v284_v58, %v211_v59  ;;  %v389_v61 = vpop.f32.mrb[1].mxu1 }
 0x1d1   :  { %215 = vst [vmem:[#allocation2] sm:$0x3] %v212_v60  ;;  %v219_v62 = vsel %vm218_vm1, %v212_v60, -1e+30 }
 0x1d2   :  { %v221_v63 = vsel %vm220_vm2, %v219_v62, -inf }
 0x1d3   :  { %222 = vmax.xlane.f32.xlu0 %v221_v63 }
 0x260   :  { %v223_v2 = vpop.xlane.xlu0 %222 }
 0x261   :  { %v224_v3 = vsub.f32 %v219_v62, %v223_v2 }
 0x263   :  { %v225_v4 = vmul.f32 1.442695, %v224_v3 }
 0x265   :  { %446 = vpow2.f32 %v225_v4 }
 0x26f   :  { %v447_v5 = vpop.eup %446 }
 0x270   :  { %v227_v7 = vsel %vm220_vm2, %v447_v5, 0.0 }
 0x271   :  { %228 = vadd.xlane.f32.xlu0 %v227_v7 }
 0x2fe   :  { %v229_v8 = vpop.xlane.xlu0 %228 }
 0x2ff   :  { %448 = vlog2.f32 %v229_v8 }
 0x309   :  { %v449_v10 = vpop.eup %448 }
 0x30a   :  { %v231_v11 = vmul.f32 0.6931472, %v449_v10 }
 0x30c   :  { %v239_v13 = vsub.f32 %v224_v3, %v231_v11 }
 0x30e   :  { %v240_v14 = vmul.f32 %v285_v12, %v239_v13 }
 0x310   :  { %v241_v15 = vsel %vm220_vm2, %v240_v14, 0.0 }
 0x311   :  { %242 = vadd.xlane.f32.xlu1 %v241_v15 }
 0x312   :  { %461 = shalt.err (!%p458_p4)
}
 0x313   :  { %s462_s26 = scalar_lea.hbm %s705_s6, 32 }
 0x314   :  { %p463_p5 = scmp.ne.s32.totalorder %s705_s6, %s462_s26  ;;  %p466_p6 = scmp.lt.u32.totalorder %s462_s26, %s705_s6 }
 0x316   :  { %p468_p7 = pnand %p466_p6, %p463_p5 }
 0x318   :  { %471 = shalt.err (!%p468_p7)
}
 0x319   :  { %264 = dma.vmem_to_hbm [thread:$0]  %s262_s5, 32, %s705_s6, [#allocation3]   ;;  %vm253_vm4 = vcmask 0  }
 0x31a   :  { %s503_s10 = smov [#allocation4]  }
 0x31b   :  { %s271_s11 = sshll.u32 %s503_s10, 4  ;;  %s272_s11 = int_to_ptr.vmem [resolvable:$true] %s271_s11 }
 0x31c   :  { %s472_s12 = scalar_lea.vmem %s272_s11, 16  ;;  %s476_s13 = scalar_lea.vmem %s272_s11, 32 }
 0x31d   :  { %p473_p8 = scmp.ne.s32.totalorder %s272_s11, %s472_s12  ;;  %p477_p9 = scmp.lt.s32.totalorder %s272_s11, %s272_s11 }
 0x31e   :  { %p478_p10 = scmp.lt.s32.totalorder %s476_s13, %s472_s12 }
 0x320   :  { %p479_p11 = por %p478_p10, %p477_p9 }
 0x322   :  { %p480_p12 = pnand %p479_p11, %p473_p8 }
 0x39e   :  { %v243_v6 = vpop.xlane.xlu1 %242 }
 0x39f   :  { %v244_v16 = vsub.f32 0.0, %v243_v6 }
 0x3a1   :  { %v245_v17 = vsel %vm220_vm2, %v244_v16, 0.0 }
 0x3a2   :  { %v246_v18 = vrot.slane %v245_v17, 4 }
 0x3a4   :  { %v247_v19 = vadd.f32 %v246_v18, %v245_v17 }
 0x3a6   :  { %v248_v20 = vrot.slane %v247_v19, 2 }
 0x3a8   :  { %v249_v21 = vadd.f32 %v248_v20, %v247_v19 }
 0x3aa   :  { %v250_v22 = vrot.slane %v249_v21, 1 }
 0x3ac   :  { %v251_v23 = vadd.f32 %v250_v22, %v249_v21 }
 0x3ae   :  { %v252_v24 = vmul.f32 0.5, %v251_v23 }
 0x3b0   :  { %254 = vst.msk [vmem:[#allocation4] sm:$0x1] %vm253_vm4, %v252_v24 }
 0x3b1   :  { %483 = shalt.err (!%p480_p12)
}
 0x3b2   :  { %s484_s2 = scalar_lea.hbm %s706_s7, 16 }
 0x3b3   :  { %p485_p13 = scmp.ne.s32.totalorder %s706_s7, %s484_s2  ;;  %p488_p0 = scmp.lt.u32.totalorder %s484_s2, %s706_s7 }
 0x3b5   :  { %p490_p1 = pnand %p488_p0, %p485_p13 }
 0x3b7   :  { %493 = shalt.err (!%p490_p1)
}
 0x3b8   :  { %274 = dma.vmem_to_hbm [thread:$0]  %s272_s11, 16, %s706_s7, [#allocation5]  }
 0x3b9   :  { %494 = dma.done.wait [#allocation3], 32  }
 0x3ba   :  { %495 = vsyncadd [#allocation3], 4294967264 }
 0x3bb   :  { %496 = dma.done.wait [#allocation5], 16  }
 0x3bc   :  { %497 = vsyncadd [#allocation5], 4294967280 }
 0x3bd   :  { %281 = vsyncpa [#allocation3], 1 }
 0x3be   :  { %282 = vsyncpa [#allocation5], 1 }

// kernel: _lambda_.6
= control target key start
LH: loop header
LB: loop body
LE: loop exit
PB: predicated region body
PF: predicated region fallthrough
CT: control target
= control target key end

     0   :  { %s2345_s29 = smov 0   ;;  %s3067_s0 = inlined_call_operand.vmem [shape: f32[2,8,128], index: 0, kind: input, shape index: {}]   ;;  %s3068_s1 = inlined_call_operand.vmem [shape: f32[2,1,8], index: 1, kind: input, shape index: {}]   ;;  %s3069_s2 = inlined_call_operand.vmem [shape: f32[128,384], index: 2, kind: input, shape index: {}]   ;;  %s3070_s3 = inlined_call_operand.vmem [shape: f32[1,384], index: 3, kind: input, shape index: {}]   ;;  %s3071_s4 = inlined_call_operand.vmem [shape: f32[128,128], index: 4, kind: input, shape index: {}]   ;;  %s3072_s5 = inlined_call_operand.vmem [shape: f32[1,128], index: 5, kind: input, shape index: {}]   ;;  %s3073_s6 = inlined_call_operand.vmem [shape: f32[1,128], index: 6, kind: input, shape index: {}]   ;;  %s3074_s7 = inlined_call_operand.vmem [shape: f32[1,128], index: 7, kind: input, shape index: {}]   ;;  %s3075_s8 = inlined_call_operand.vmem [shape: f32[128,512], index: 8, kind: input, shape index: {}]   ;;  %s3076_s9 = inlined_call_operand.vmem [shape: f32[1,512], index: 9, kind: input, shape index: {}]   ;;  %s3077_s10 = inlined_call_operand.vmem [shape: f32[512,128], index: 10, kind: input, shape index: {}]   ;;  %s3078_s11 = inlined_call_operand.vmem [shape: f32[1,128], index: 11, kind: input, shape index: {}]   ;;  %s3079_s12 = inlined_call_operand.vmem [shape: f32[1,128], index: 12, kind: input, shape index: {}]   ;;  %s3080_s13 = inlined_call_operand.vmem [shape: f32[1,128], index: 13, kind: input, shape index: {}]   ;;  %s3081_s14 = inlined_call_operand.vmem [shape: f32[2,8,128], index: 14, kind: output, shape index: {}]  }
   0x1 LB: > { %s1788_s30 = sadd.s32 4294967295, %s2264_s29   ;;  %p1792_p0 = scmp.ge.s32.totalorder %s2264_s29, 1  ;;  %s2264_s29 = sphi %s2345_s29, %s24_s29  }
   0x2   : > { %p419_p1 = scmp.lt.s32.totalorder %s2264_s29, 3 }
   0x4   : > { %p420_p2 = pnand %p1792_p0, %p419_p1 }
   0x5   : > { %v480_v0 = vld [vmem:[%s3069_s2 + $0x8] sm:$0xff] (!%p420_p2)  ;;  %v483_v1 = vld [vmem:[%s3069_s2 + $0x20] sm:$0xff] (!%p420_p2)  ;;  %v482_v4 = vld [vmem:[%s3069_s2 + $0x18] sm:$0xff] (!%p420_p2)  ;;  %v2266_v7 = vmov (!%p420_p2), 0.0   ;;  %p466_p3 = scmp.lt.s32.totalorder (!%p420_p2), %s1788_s30, 1  ;;  %vm2267_vm0 = vmmov (!%p420_p2), 0   ;;  %v529_v50 = vlaneseq (!%p420_p2) }
   0x6   : > { %423 = sbr.rel (%p420_p2) target bundleno = 2422 (0x976), region = 76  ;;  %v479_v2 = vld [vmem:[%s3069_s2] sm:$0xff] (!%p420_p2)  ;;  %v2018_v3 = vpack.c.bf16 (!%p420_p2), %v483_v1, %v480_v0  ;;  %v486_v5 = vld [vmem:[%s3069_s2 + $0x38] sm:$0xff] (!%p420_p2)  ;;  %v489_v6 = vld [vmem:[%s3069_s2 + $0x50] sm:$0xff] (!%p420_p2)  ;;  %608 = vmatprep.mubr.f32.mxu0 (!%p420_p2), %v2266_v7  ;;  %1957 = vmatprep.mubr.msk.f32.mxu1 (!%p420_p2), %vm2267_vm0, %v2266_v7  ;;  %vm685_vm1 = vcmask (!%p420_p2), 523264   ;;  %s2268_s15 = smov (!%p420_p2), 64  }
   0x7   : > { %v2020_v8 = vpack.c.bf16 (!%p420_p2), %v482_v4, %v479_v2  ;;  %v2022_v9 = vpack.c.bf16 (!%p420_p2), %v489_v6, %v486_v5  ;;  %v485_v10 = vld [vmem:[%s3069_s2 + $0x30] sm:$0xff] (!%p420_p2)  ;;  %v488_v11 = vld [vmem:[%s3069_s2 + $0x48] sm:$0xff] (!%p420_p2)  ;;  %v495_v13 = vld [vmem:[%s3069_s2 + $0x80] sm:$0xff] (!%p420_p2)  ;;  %v2470_v51 = vshrl.u32 (!%p420_p2), %v529_v50, 7  ;;  %v2269_v0 = vmov (!%p420_p2), 0.0|0.0  }
   0x8   : > { %v492_v12 = vld [vmem:[%s3069_s2 + $0x68] sm:$0xff] (!%p420_p2)  ;;  %2019 = vmatprep.subr.bf16.mxu0 (!%p420_p2), %v2018_v3  ;;  %v2024_v14 = vpack.c.bf16 (!%p420_p2), %v488_v11, %v485_v10  ;;  %v491_v16 = vld [vmem:[%s3069_s2 + $0x60] sm:$0xff] (!%p420_p2)  ;;  %v494_v17 = vld [vmem:[%s3069_s2 + $0x78] sm:$0xff] (!%p420_p2)  ;;  %2050 = vmatprep.subr.bf16.mxu1 (!%p420_p2), %v2269_v0  ;;  %vm770_vm2 = vcmask (!%p420_p2), 64512  }
   0x9   : > { %2021 = vmatpush1.bf16.msra.mxu0 (!%p420_p2), %v2020_v8  ;;  %v2026_v15 = vpack.c.bf16 (!%p420_p2), %v495_v13, %v492_v12  ;;  %v498_v18 = vld [vmem:[%s3069_s2 + $0x98] sm:$0xff] (!%p420_p2)  ;;  %v501_v19 = vld [vmem:[%s3069_s2 + $0xb0] sm:$0xff] (!%p420_p2)  ;;  %v2028_v20 = vpack.c.bf16 (!%p420_p2), %v494_v17, %v491_v16  ;;  %v500_v23 = vld [vmem:[%s3069_s2 + $0xa8] sm:$0xff] (!%p420_p2)  ;;  %v535_v52 = vsub.s32 (!%p420_p2), 1, %v2470_v51  ;;  %v531_v54 = vsub.s32 (!%p420_p2), 0, %v2470_v51 }
   0xa   : > { %2023 = vmatprep.subr.bf16.mxu0 (!%p420_p2), %v2022_v9  ;;  %v2030_v21 = vpack.c.bf16 (!%p420_p2), %v501_v19, %v498_v18  ;;  %v497_v22 = vld [vmem:[%s3069_s2 + $0x90] sm:$0xff] (!%p420_p2)  ;;  %v504_v24 = vld [vmem:[%s3069_s2 + $0xc8] sm:$0xff] (!%p420_p2)  ;;  %v507_v25 = vld [vmem:[%s3069_s2 + $0xe0] sm:$0xff] (!%p420_p2) }
   0xb   : > { %v2032_v26 = vpack.c.bf16 (!%p420_p2), %v500_v23, %v497_v22  ;;  %v2034_v27 = vpack.c.bf16 (!%p420_p2), %v507_v25, %v504_v24  ;;  %v503_v28 = vld [vmem:[%s3069_s2 + $0xc0] sm:$0xff] (!%p420_p2)  ;;  %v506_v29 = vld [vmem:[%s3069_s2 + $0xd8] sm:$0xff] (!%p420_p2)  ;;  %v513_v31 = vld [vmem:[%s3069_s2 + $0x110] sm:$0xff] (!%p420_p2) }
   0xc   : > { %v510_v30 = vld [vmem:[%s3069_s2 + $0xf8] sm:$0xff] (!%p420_p2)  ;;  %v2036_v32 = vpack.c.bf16 (!%p420_p2), %v506_v29, %v503_v28  ;;  %v509_v34 = vld [vmem:[%s3069_s2 + $0xf0] sm:$0xff] (!%p420_p2)  ;;  %v512_v35 = vld [vmem:[%s3069_s2 + $0x108] sm:$0xff] (!%p420_p2) }
   0xd   : > { %2025 = vmatpush1.bf16.msra.mxu0 %v2024_v14  ;;  %v2038_v33 = vpack.c.bf16 %v513_v31, %v510_v30  ;;  %v516_v36 = vld [vmem:[%s3069_s2 + $0x128] sm:$0xff]  ;;  %v519_v37 = vld [vmem:[%s3069_s2 + $0x140] sm:$0xff]  ;;  %v2040_v38 = vpack.c.bf16 %v512_v35, %v509_v34  ;;  %v518_v41 = vld [vmem:[%s3069_s2 + $0x138] sm:$0xff]  ;;  %s3083_s30 = smov (!%p466_p3, %s1788_s30), 1 }
   0xe   : > { %2027 = vmatprep.subr.bf16.mxu0 %v2026_v15  ;;  %v2042_v39 = vpack.c.bf16 %v519_v37, %v516_v36  ;;  %v515_v40 = vld [vmem:[%s3069_s2 + $0x120] sm:$0xff]  ;;  %v522_v42 = vld [vmem:[%s3069_s2 + $0x158] sm:$0xff]  ;;  %v525_v43 = vld [vmem:[%s3069_s2 + $0x170] sm:$0xff]  ;;  %s1793_s23 = sshll.u32 %s3083_s30, 3  ;;  %s472_s27 = scalar_lea.vmem %s3068_s1, %s3083_s30 }
   0xf   : > { %v2044_v44 = vpack.c.bf16 %v518_v41, %v515_v40  ;;  %v2046_v45 = vpack.c.bf16 %v525_v43, %v522_v42  ;;  %v521_v46 = vld [vmem:[%s3069_s2 + $0x150] sm:$0xff]  ;;  %v524_v47 = vld [vmem:[%s3069_s2 + $0x168] sm:$0xff]  ;;  %s469_s26 = scalar_lea.vmem %s3067_s0, %s1793_s23  ;;  %v2476_v53 = vld [vmem:[%s3070_s3] sm:$0x7]  ;;  %v539_v41 = vsub.s32 2, %v2470_v51  ;;  %s476_s20 = scalar_lea.vmem %s3081_s14, %s1793_s23 }
  0x10   : > { %v2048_v48 = vpack.c.bf16 %v524_v47, %v521_v46  ;;  %v2462_v49 = vld [vmem:[%s469_s26] sm:$0xff]  ;;  %v536_v55 = vrot.slane %v2476_v53, %v535_v52  ;;  %v532_v57 = vrot.slane %v2476_v53, %v531_v54  ;;  %v481_v61 = vld [vmem:[%s3069_s2 + $0x10] sm:$0xff]  ;;  %v484_v62 = vld [vmem:[%s3069_s2 + $0x28] sm:$0xff] }
  0x11   : > { %2029 = vmatpush1.bf16.msra.mxu0 %v2028_v20  ;;  %v487_v63 = vld [vmem:[%s3069_s2 + $0x40] sm:$0xff]  ;;  %v2051_v1 = vpack.c.bf16 %v484_v62, %v481_v61  ;;  %v490_v2 = vld [vmem:[%s3069_s2 + $0x58] sm:$0xff]  ;;  %v493_v4 = vld [vmem:[%s3069_s2 + $0x70] sm:$0xff]  ;;  %v540_v42 = vrot.slane %v2476_v53, %v539_v41 }
  0x12   : > { %2031 = vmatprep.subr.bf16.mxu0 %v2030_v21  ;;  %v2054_v3 = vpack.c.bf16 %v490_v2, %v487_v63  ;;  %v496_v5 = vld [vmem:[%s3069_s2 + $0x88] sm:$0xff]  ;;  %v499_v8 = vld [vmem:[%s3069_s2 + $0xa0] sm:$0xff]  ;;  %v502_v9 = vld [vmem:[%s3069_s2 + $0xb8] sm:$0xff] }
  0x13   : > { %2052 = vmatpush3.bf16.msra.mxu1 %v2051_v1  ;;  %v2057_v6 = vpack.c.bf16 %v496_v5, %v493_v4  ;;  %v2060_v10 = vpack.c.bf16 %v502_v9, %v499_v8  ;;  %v505_v11 = vld [vmem:[%s3069_s2 + $0xd0] sm:$0xff]  ;;  %v508_v12 = vld [vmem:[%s3069_s2 + $0xe8] sm:$0xff]  ;;  %v511_v14 = vld [vmem:[%s3069_s2 + $0x100] sm:$0xff] }
  0x14   : > { %2053 = vmatprep.subr.bf16.mxu1 %v2269_v0  ;;  %v2063_v13 = vpack.c.bf16 %v508_v12, %v505_v11  ;;  %v514_v15 = vld [vmem:[%s3069_s2 + $0x118] sm:$0xff]  ;;  %v517_v17 = vld [vmem:[%s3069_s2 + $0x130] sm:$0xff]  ;;  %v520_v18 = vld [vmem:[%s3069_s2 + $0x148] sm:$0xff] }
  0x15   : > { %2033 = vmatpush1.bf16.msra.mxu0 %v2032_v26  ;;  %v2066_v16 = vpack.c.bf16 %v514_v15, %v511_v14  ;;  %v2069_v20 = vpack.c.bf16 %v520_v18, %v517_v17  ;;  %v523_v21 = vld [vmem:[%s3069_s2 + $0x160] sm:$0xff]  ;;  %v526_v22 = vld [vmem:[%s3069_s2 + $0x178] sm:$0xff]  ;;  %v1036_v2 = vld [vmem:[%s3071_s4 + $0x68] sm:$0xff] }
  0x16   : > { %2035 = vmatprep.subr.bf16.mxu0 %v2034_v27  ;;  %v2072_v24 = vpack.c.bf16 %v526_v22, %v523_v21  ;;  %v1797_v26 = vld [vmem:[%s472_s27] ss:$0 sm:$0xff]  ;;  %v1034_v62 = vld [vmem:[%s3071_s4 + $0x58] sm:$0xff]  ;;  %v1037_v4 = vld [vmem:[%s3071_s4 + $0x70] sm:$0xff] }
  0x17   : > { %2055 = vmatpush3.bf16.msra.mxu1 %v2054_v3  ;;  %v1035_v1 = vld [vmem:[%s3071_s4 + $0x60] sm:$0xff]  ;;  %v1038_v5 = vld [vmem:[%s3071_s4 + $0x78] sm:$0xff]  ;;  %v856_v11 = vld [vmem:[%s3071_s4 + $0x8] sm:$0xff] }
  0x18   : > { %2056 = vmatprep.subr.bf16.mxu1 %v2269_v0  ;;  %v2081_v3 = vpack.c.bf16 %v1036_v2, %v1035_v1  ;;  %v857_v15 = vld [vmem:[%s3071_s4 + $0x10] sm:$0xff]  ;;  %v859_v18 = vld [vmem:[%s3071_s4 + $0x20] sm:$0xff]  ;;  %v862_v22 = vld [vmem:[%s3071_s4 + $0x38] sm:$0xff] }
  0x19   : > { %2037 = vmatpush1.bf16.msra.mxu0 %v2036_v32  ;;  %v861_v21 = vld [vmem:[%s3071_s4 + $0x30] sm:$0xff]  ;;  %v1241_v2 = vld [vmem:[%s3075_s8 + $0x98] sm:$0xff] }
  0x1a   : > { %2039 = vmatprep.subr.bf16.mxu0 %v2038_v33 }
  0x1b   : > { %2058 = vmatpush3.bf16.msra.mxu1 %v2057_v6  ;;  %v2084_v6 = vpack.c.bf16 %v1038_v5, %v1037_v4  ;;  %v1238_v4 = vld [vmem:[%s3075_s8 + $0x80] sm:$0xff] }
  0x1c   : > { %2059 = vmatprep.subr.bf16.mxu1 %v2269_v0 }
  0x1d   : > { %2041 = vmatpush1.bf16.msra.mxu0 %v2040_v38 }
  0x1e   : > { %2043 = vmatprep.subr.bf16.mxu0 %v2042_v39 }
  0x1f   : > { %2061 = vmatpush3.bf16.msra.mxu1 %v2060_v10  ;;  %v855_v10 = vld [vmem:[%s3071_s4] sm:$0xff] }
  0x20   : > { %2062 = vmatprep.subr.bf16.mxu1 %v2269_v0 }
  0x21   : > { %2045 = vmatpush1.bf16.msra.mxu0 %v2044_v44 }
  0x22   : > { %2047 = vmatprep.subr.bf16.mxu0 %v2046_v45 }
  0x23   : > { %2064 = vmatpush3.bf16.msra.mxu1 %v2063_v13  ;;  %v2087_v13 = vpack.c.bf16 %v856_v11, %v855_v10 }
  0x24   : > { %2065 = vmatprep.subr.bf16.mxu1 %v2269_v0 }
  0x25   : > { %2049 = vmatpush1.bf16.msra.mxu0 %v2048_v48 }
  0x26   : > { %1960 = vmatprep.subr.mxu0 %v2266_v7 }
  0x27   : > { %2067 = vmatpush3.bf16.msra.mxu1 %v2066_v16  ;;  %v858_v16 = vld [vmem:[%s3071_s4 + $0x18] sm:$0xff] }
  0x28   : > { %609 = vmatmul.mubr.f32.vlgmr.msra.gmra.mrb[0].mxu0 %v2462_v49  ;;  %2068 = vmatprep.subr.bf16.mxu1 %v2269_v0  ;;  %v2090_v17 = vpack.c.bf16 %v858_v16, %v857_v15  ;;  %v1247_v16 = vld [vmem:[%s3075_s8 + $0xc8] sm:$0xff] }
  0x29   : > { %1962 = vmatprep.mubr.msk.f32.mxu0 %vm2267_vm0, %v2266_v7 }
  0x2b   : > { %2070 = vmatpush3.bf16.msra.mxu1 %v2069_v20 }
  0x2c   : > { %2071 = vmatprep.subr.bf16.mxu1 %v2269_v0 }
  0x2f   : > { %2073 = vmatpush3.bf16.msra.mxu1 %v2072_v24 }
  0x30   : > { %1965 = vmatprep.subr.mxu1 %v2266_v7 }
  0x32   : > { %1958 = vmatmul.mubr.f32.vlgmr.msra.gmra.mrb[0].mxu1 %v2462_v49 }
  0x33   : > { %1967 = vmatprep.mubr.msk.f32.mxu1 %vm2267_vm0, %v2266_v7 }
  0xfb   : > { %v610_v56 = vpop.f32.mrb[0].mxu0 }
  0xfc   : > { %v612_v58 = vpop.f32.mrb[1].mxu0  ;;  %v611_v60 = vadd.f32 %v610_v56, %v532_v57 }
  0xfd   : > { %v613_v59 = vadd.f32 %v612_v58, %v536_v55  ;;  %v1031_v58 = vld [vmem:[%s3071_s4 + $0x40] sm:$0xff] }
  0xff   : > { %865 = vrot.lane.b32.xlu0 %v613_v59, %s2268_s15  ;;  %1961 = vmatpush3.xpose.msk.msra.mxu0 %vm685_vm1, %v613_v59  ;;  %v1032_v59 = vld [vmem:[%s3071_s4 + $0x48] sm:$0xff] }
 0x100   : > { %1970 = vmatprep.subr.mxu0 %v2266_v7  ;;  %v2075_v61 = vpack.c.bf16 %v1032_v59, %v1031_v58  ;;  %v1232_v58 = vld [vmem:[%s3075_s8 + $0x50] sm:$0xff] }
 0x102   : > { %1963 = vmatmul.mubr.msk.f32.vlgmr.msra.gmra.mrb[2].mxu0 %vm685_vm1, %v611_v60 }
 0x103   : > { %863 = vrot.lane.b32.xlu0 %v611_v60, %s2268_s15  ;;  %1972 = vmatprep.mubr.msk.f32.mxu0 %vm2267_vm0, %v2266_v7  ;;  %v1033_v60 = vld [vmem:[%s3071_s4 + $0x50] sm:$0xff] }
 0x104   : > { %v2078_v63 = vpack.c.bf16 %v1034_v62, %v1033_v60  ;;  %v1236_v60 = vld [vmem:[%s3075_s8 + $0x70] sm:$0xff]  ;;  %v1243_v62 = vld [vmem:[%s3075_s8 + $0xa8] sm:$0xff] }
 0x105   : > { %v681_v43 = vpop.f32.mrb[0].mxu1 }
 0x106   : > { %v682_v44 = vadd.f32 %v681_v43, %v540_v42  ;;  %v1959_v45 = vpop.f32.mrb[1].mxu1  ;;  %v1224_v43 = vld [vmem:[%s3075_s8 + $0x10] sm:$0xff] }
 0x107   : > { %v1231_v45 = vld [vmem:[%s3075_s8 + $0x48] sm:$0xff] }
 0x108   : > { %1966 = vmatpush3.msra.mxu1 %v682_v44 }
 0x109   : > { %1975 = vmatprep.subr.mxu1 %v2266_v7 }
 0x171   : > { %v866_v19 = vpop.permute.xlu0 %865 }
 0x172   : > { %1971 = vmatpush3.xpose.msk.msra.mxu0 %vm685_vm1, %v866_v19  ;;  %v860_v19 = vld [vmem:[%s3071_s4 + $0x28] sm:$0xff] }
 0x173   : > { %2074 = vmatprep.subr.bf16.mxu0 %v2269_v0  ;;  %v2093_v20 = vpack.c.bf16 %v860_v19, %v859_v18  ;;  %v1249_v18 = vld [vmem:[%s3075_s8 + $0xd8] sm:$0xff] }
 0x175   : > { %v864_v23 = vpop.permute.xlu0 %863 }
 0x176   : > { %1973 = vmatmul.mubr.msk.f32.vlgmr.msra.gmra.mrb[4].mxu0 %vm685_vm1, %v864_v23  ;;  %v2096_v23 = vpack.c.bf16 %v862_v22, %v861_v21  ;;  %v1246_v21 = vld [vmem:[%s3075_s8 + $0xc0] sm:$0xff] }
 0x177   : > { %1996 = vmatprep.mubr.msk.f32.mxu0 %vm2267_vm0, %v2266_v7  ;;  %2076 = vmatpush3.bf16.msra.mxu0 %v2075_v61  ;;  %v1239_v61 = vld [vmem:[%s3075_s8 + $0x88] sm:$0xff]  ;;  %v1250_v22 = vld [vmem:[%s3075_s8 + $0xe0] sm:$0xff] }
 0x178   : > { %2077 = vmatprep.subr.bf16.mxu0 %v2269_v0  ;;  %v2106_v1 = vpack.c.bf16 %v1243_v62, %v1239_v61  ;;  %v1274_v61 = vld [vmem:[%s3075_s8 + $0x1a0] sm:$0xff]  ;;  %v1272_v62 = vld [vmem:[%s3075_s8 + $0x190] sm:$0xff] }
 0x17b   : > { %2079 = vmatpush3.bf16.msra.mxu0 %v2078_v63  ;;  %v2136_v63 = vpack.c.bf16 %v1236_v60, %v1232_v58  ;;  %v1277_v58 = vld [vmem:[%s3075_s8 + $0x1b8] sm:$0xff] }
 0x17c   : > { %2080 = vmatprep.subr.bf16.mxu0 %v2269_v0 }
 0x17f   : > { %2082 = vmatpush3.bf16.msra.mxu0 %v2081_v3  ;;  %v1245_v3 = vld [vmem:[%s3075_s8 + $0xb8] sm:$0xff] }
 0x180   : > { %2083 = vmatprep.subr.bf16.mxu0 %v2269_v0  ;;  %v2138_v5 = vpack.c.bf16 %v1245_v3, %v1241_v2  ;;  %v1279_v2 = vld [vmem:[%s3075_s8 + $0x1c8] sm:$0xff] }
 0x181   : > { %v1283_v3 = vld [vmem:[%s3075_s8 + $0x1e8] sm:$0xff] }
 0x183   : > { %2085 = vmatpush3.bf16.msra.mxu0 %v2084_v6  ;;  %v1242_v6 = vld [vmem:[%s3075_s8 + $0xa0] sm:$0xff] }
 0x184   : > { %v2108_v10 = vpack.c.bf16 %v1242_v6, %v1238_v4  ;;  %v1281_v4 = vld [vmem:[%s3075_s8 + $0x1d8] sm:$0xff]  ;;  %v2126_v6 = vpack.c.bf16 %v1283_v3, %v1279_v2  ;;  %v1540_v2 = vld [vmem:[%s3077_s10 + $0x1b0] sm:$0xff] }
 0x1d5   : > { %v758_v25 = vpop.f32.mrb[2].mxu0 }
 0x1d6   : > { %v762_v27 = vmul.f32 0.125, %v758_v25  ;;  %v1964_v28 = vpop.f32.mrb[3].mxu0 }
 0x1d8   : > { %v769_v29 = vadd.f32 %v1797_v26, %v762_v27 }
 0x1da   : > { %v771_v30 = vsel %vm770_vm2, %v769_v29, -inf }
 0x1db   : > { %772 = vmax.xlane.f32.xlu1 %v771_v30 }
 0x249   : > { %v937_v31 = vpop.f32.mrb[4].mxu0 }
 0x24a   : > { %v941_v32 = vmul.f32 0.125, %v937_v31  ;;  %v1974_v33 = vpop.f32.mrb[5].mxu0 }
 0x24c   : > { %v942_v34 = vadd.f32 %v1797_v26, %v941_v32 }
 0x24e   : > { %v943_v35 = vsel %vm770_vm2, %v942_v34, -inf }
 0x24f   : > { %944 = vmax.xlane.f32.xlu1 %v943_v35  ;;  %v1223_v35 = vld [vmem:[%s3075_s8 + $0x8] sm:$0xff] }
 0x268   : > { %v773_v36 = vpop.xlane.xlu1 %772 }
 0x269   : > { %v774_v37 = vsub.f32 %v769_v29, %v773_v36  ;;  %v1225_v36 = vld [vmem:[%s3075_s8 + $0x18] sm:$0xff] }
 0x26b   : > { %v775_v38 = vmul.f32 1.442695, %v774_v37 }
 0x26d   : > { %2238 = vpow2.f32 %v775_v38  ;;  %v1229_v38 = vld [vmem:[%s3075_s8 + $0x38] sm:$0xff] }
 0x277   : > { %v2239_v39 = vpop.eup %2238 }
 0x278   : > { %v777_v40 = vsel %vm770_vm2, %v2239_v39, 0.0 }
 0x279   : > { %778 = vadd.xlane.f32.xlu0 %v777_v40  ;;  %v2130_v40 = vpack.c.bf16 %v1229_v38, %v1225_v36  ;;  %v1260_v36 = vld [vmem:[%s3075_s8 + $0x130] sm:$0xff] }
 0x2dc   : > { %v945_v46 = vpop.xlane.xlu1 %944 }
 0x2dd   : > { %v946_v47 = vsub.f32 %v942_v34, %v945_v46 }
 0x2df   : > { %v947_v48 = vmul.f32 1.442695, %v946_v47  ;;  %v1235_v47 = vld [vmem:[%s3075_s8 + $0x68] sm:$0xff] }
 0x2e1   : > { %2240 = vpow2.f32 %v947_v48  ;;  %v1233_v48 = vld [vmem:[%s3075_s8 + $0x58] sm:$0xff] }
 0x2eb   : > { %v2241_v50 = vpop.eup %2240 }
 0x2ec   : > { %v949_v55 = vsel %vm770_vm2, %v2241_v50, 0.0 }
 0x2ed   : > { %950 = vadd.xlane.f32.xlu1 %v949_v55  ;;  %v2102_v55 = vpack.c.bf16 %v1235_v47, %v1231_v45  ;;  %v1266_v45 = vld [vmem:[%s3075_s8 + $0x160] sm:$0xff] }
 0x2fe   : > { %955 = vrot.lane.b32.xlu1 %v682_v44, %s2268_s15  ;;  %v1228_v44 = vld [vmem:[%s3075_s8 + $0x30] sm:$0xff] }
 0x2ff   : > { %v2132_v46 = vpack.c.bf16 %v1228_v44, %v1224_v43  ;;  %v1262_v44 = vld [vmem:[%s3075_s8 + $0x140] sm:$0xff] }
 0x300   : > { %v2120_v47 = vpack.c.bf16 %v1266_v45, %v1262_v44  ;;  %v1520_v44 = vld [vmem:[%s3077_s10 + $0x110] sm:$0xff]  ;;  %v1521_v45 = vld [vmem:[%s3077_s10 + $0x118] sm:$0xff] }
 0x306   : > { %v779_v56 = vpop.xlane.xlu0 %778 }
 0x307   : > { %2242 = vrcp.f32 %v779_v56 }
 0x311   : > { %v2243_v57 = vpop.eup %2242 }
 0x312   : > { %v781_v53 = vmul.f32 %v2243_v57, %v2239_v39  ;;  %v1226_v39 = vld [vmem:[%s3075_s8 + $0x20] sm:$0xff] }
 0x313   : > { %v1230_v57 = vld [vmem:[%s3075_s8 + $0x40] sm:$0xff] }
 0x314   : > { %1968 = vmatmul.mubr.msk.f32.vlgmr.msra.gmra.mrb[2].mxu1 %vm770_vm2, %v781_v53  ;;  %v1234_v53 = vld [vmem:[%s3075_s8 + $0x60] sm:$0xff] }
 0x315   : > { %1977 = vmatprep.mubr.msk.f32.mxu1 %vm2267_vm0, %v2266_v7  ;;  %v2104_v59 = vpack.c.bf16 %v1234_v53, %v1230_v57  ;;  %v1273_v53 = vld [vmem:[%s3075_s8 + $0x198] sm:$0xff] }
 0x316   : > { %v2154_v60 = vpack.c.bf16 %v1277_v58, %v1273_v53  ;;  %v1491_v53 = vld [vmem:[%s3077_s10 + $0x28] sm:$0xff] }
 0x37a   : > { %v951_v8 = vpop.xlane.xlu1 %950 }
 0x37b   : > { %2244 = vrcp.f32 %v951_v8  ;;  %v1240_v8 = vld [vmem:[%s3075_s8 + $0x90] sm:$0xff] }
 0x37e   : > { %v956_v9 = vpop.permute.xlu1 %955 }
 0x37f   : > { %1976 = vmatpush3.msra.mxu1 %v956_v9  ;;  %v1244_v9 = vld [vmem:[%s3075_s8 + $0xb0] sm:$0xff] }
 0x380   : > { %2086 = vmatprep.subr.bf16.mxu1 %v2269_v0  ;;  %v2140_v11 = vpack.c.bf16 %v1244_v9, %v1240_v8  ;;  %v1285_v8 = vld [vmem:[%s3075_s8 + $0x1f8] sm:$0xff]  ;;  %v1278_v9 = vld [vmem:[%s3075_s8 + $0x1c0] sm:$0xff] }
 0x385   : > { %v2245_v12 = vpop.eup %2244 }
 0x386   : > { %v953_v14 = vmul.f32 %v2245_v12, %v2241_v50  ;;  %v1237_v50 = vld [vmem:[%s3075_s8 + $0x78] sm:$0xff] }
 0x387   : > { %v2134_v56 = vpack.c.bf16 %v1237_v50, %v1233_v48  ;;  %v1268_v48 = vld [vmem:[%s3075_s8 + $0x170] sm:$0xff]  ;;  %v1271_v50 = vld [vmem:[%s3075_s8 + $0x188] sm:$0xff] }
 0x388   : > { %1978 = vmatmul.mubr.msk.f32.vlgmr.msra.gmra.mrb[4].mxu1 %vm770_vm2, %v953_v14 }
 0x389   : > { %2088 = vmatpush3.bf16.msra.mxu1 %v2087_v13  ;;  %2015 = vmatprep.mubr.msk.f32.mxu1 %vm2267_vm0, %v2266_v7 }
 0x38a   : > { %2089 = vmatprep.subr.bf16.mxu1 %v2269_v0 }
 0x38d   : > { %2091 = vmatpush3.bf16.msra.mxu1 %v2090_v17  ;;  %v1251_v17 = vld [vmem:[%s3075_s8 + $0xe8] sm:$0xff] }
 0x38e   : > { %2092 = vmatprep.subr.bf16.mxu1 %v2269_v0  ;;  %v2110_v19 = vpack.c.bf16 %v1251_v17, %v1247_v16 }
 0x391   : > { %2094 = vmatpush3.bf16.msra.mxu1 %v2093_v20  ;;  %v1253_v20 = vld [vmem:[%s3075_s8 + $0xf8] sm:$0xff] }
 0x392   : > { %2095 = vmatprep.subr.bf16.mxu1 %v2269_v0  ;;  %v1804_v0 = vld [vmem:[%s3072_s5] ss:$0 sm:$0xff] }
 0x395   : > { %2097 = vmatpush3.bf16.msra.mxu1 %v2096_v23  ;;  %v2142_v23 = vpack.c.bf16 %v1253_v20, %v1249_v18 }
 0x396   : > { %2131 = vmatprep.subr.bf16.mxu1 %v2130_v40  ;;  %v1269_v40 = vld [vmem:[%s3075_s8 + $0x178] sm:$0xff] }
 0x3e7   : > { %v851_v24 = vpop.f32.mrb[2].mxu1 }
 0x3e8   : > { %v1969_v25 = vpop.f32.mrb[3].mxu1  ;;  %2016 = vmatmul.mubr.msk.f32.vlgmr.msra.gmra.mrb[6].mxu1 %vm685_vm1, %v851_v24  ;;  %v2112_v24 = vpack.c.bf16 %v1250_v22, %v1246_v21  ;;  %v1805_v21 = vld [vmem:[%s3073_s6] ss:$0 sm:$0xff] }
 0x3e9   : > { %1443 = vmatprep.mubr.f32.mxu1 %v2266_v7  ;;  %2133 = vmatpush1.bf16.msra.mxu1 %v2132_v46  ;;  %v1248_v25 = vld [vmem:[%s3075_s8 + $0xd0] sm:$0xff] }
 0x3ea   : > { %2135 = vmatprep.subr.bf16.mxu1 %v2134_v56  ;;  %v1264_v46 = vld [vmem:[%s3075_s8 + $0x150] sm:$0xff] }
 0x3eb   : > { %v2152_v56 = vpack.c.bf16 %v1268_v48, %v1264_v46  ;;  %v2200_v46 = vpack.c.bf16 %v1521_v45, %v1520_v44  ;;  %v1507_v48 = vld [vmem:[%s3077_s10 + $0xa8] sm:$0xff]  ;;  %v1530_v44 = vld [vmem:[%s3077_s10 + $0x160] sm:$0xff] }
 0x3ec   : > { %v1531_v45 = vld [vmem:[%s3077_s10 + $0x168] sm:$0xff] }
 0x3ed   : > { %2137 = vmatpush1.bf16.msra.mxu1 %v2136_v63  ;;  %v1276_v63 = vld [vmem:[%s3075_s8 + $0x1b0] sm:$0xff] }
 0x3ee   : > { %2139 = vmatprep.subr.bf16.mxu1 %v2138_v5  ;;  %v2156_v5 = vpack.c.bf16 %v1276_v63, %v1272_v62  ;;  %v1508_v63 = vld [vmem:[%s3077_s10 + $0xb0] sm:$0xff] }
 0x3f1   : > { %2141 = vmatpush1.bf16.msra.mxu1 %v2140_v11  ;;  %v2158_v11 = vpack.c.bf16 %v1285_v8, %v1281_v4  ;;  %v1541_v4 = vld [vmem:[%s3077_s10 + $0x1b8] sm:$0xff] }
 0x3f2   : > { %2143 = vmatprep.subr.bf16.mxu1 %v2142_v23  ;;  %v1806_v23 = vld [vmem:[%s3074_s7] ss:$0 sm:$0xff]  ;;  %v2206_v8 = vpack.c.bf16 %v1541_v4, %v1540_v2  ;;  %v1302_v2 = vsub.s32 3, %v2470_v51 }
 0x45b   : > { %v1027_v26 = vpop.f32.mrb[4].mxu1 }
 0x45c   : > { %v1979_v27 = vpop.f32.mrb[5].mxu1  ;;  %1997 = vmatmul.mubr.msk.f32.vlgmr.msra.gmra.mrb[6].mxu0 %vm685_vm1, %v1027_v26  ;;  %v1252_v26 = vld [vmem:[%s3075_s8 + $0xf0] sm:$0xff] }
 0x45d   : > { %1372 = vmatprep.mubr.f32.mxu0 %v2266_v7  ;;  %v1227_v7 = vld [vmem:[%s3075_s8 + $0x28] sm:$0xff]  ;;  %v2144_v27 = vpack.c.bf16 %v1252_v26, %v1248_v25  ;;  %v1502_v26 = vld [vmem:[%s3077_s10 + $0x80] sm:$0xff] }
 0x45e   : > { %v2098_v37 = vpack.c.bf16 %v1227_v7, %v1223_v35  ;;  %v1256_v7 = vld [vmem:[%s3075_s8 + $0x110] sm:$0xff] }
 0x45f   : > { %2145 = vmatpush1.bf16.msra.mxu1 %v2144_v27  ;;  %v2148_v38 = vpack.c.bf16 %v1260_v36, %v1256_v7  ;;  %v1503_v27 = vld [vmem:[%s3077_s10 + $0x88] sm:$0xff]  ;;  %v1504_v7 = vld [vmem:[%s3077_s10 + $0x90] sm:$0xff]  ;;  %v1505_v36 = vld [vmem:[%s3077_s10 + $0x98] sm:$0xff] }
 0x460   : > { %2099 = vmatprep.subr.bf16.mxu0 %v2098_v37  ;;  %v1263_v37 = vld [vmem:[%s3075_s8 + $0x148] sm:$0xff] }
 0x4bb   : > { %v1181_v28 = vpop.f32.mrb[6].mxu1 }
 0x4bc   : > { %v2017_v29 = vpop.f32.mrb[7].mxu1 }
 0x4bd   : > { %v1259_v29 = vld [vmem:[%s3075_s8 + $0x128] sm:$0xff] }
 0x52f   : > { %v1108_v30 = vpop.f32.mrb[6].mxu0 }
 0x530   : > { %v1182_v31 = vadd.f32 %v1181_v28, %v1108_v30  ;;  %v1998_v32 = vpop.f32.mrb[7].mxu0  ;;  %v1255_v28 = vld [vmem:[%s3075_s8 + $0x108] sm:$0xff]  ;;  %v1257_v30 = vld [vmem:[%s3075_s8 + $0x118] sm:$0xff] }
 0x531   : > { %v1254_v32 = vld [vmem:[%s3075_s8 + $0x100] sm:$0xff] }
 0x532   : > { %v1192_v33 = vadd.f32 %v1804_v0, %v1182_v31  ;;  %v2114_v0 = vpack.c.bf16 %v1259_v29, %v1255_v28  ;;  %v1261_v31 = vld [vmem:[%s3075_s8 + $0x138] sm:$0xff]  ;;  %v2162_v28 = vpack.c.bf16 %v1503_v27, %v1502_v26  ;;  %v1535_v29 = vld [vmem:[%s3077_s10 + $0x188] sm:$0xff]  ;;  %v1512_v26 = vld [vmem:[%s3077_s10 + $0xd0] sm:$0xff] }
 0x534   : > { %v1193_v34 = vadd.f32 %v1192_v33, %v2462_v49  ;;  %v1222_v49 = vld [vmem:[%s3075_s8] sm:$0xff] }
 0x535   : > { %v2100_v42 = vpack.c.bf16 %v1226_v39, %v1222_v49  ;;  %v1258_v33 = vld [vmem:[%s3075_s8 + $0x120] sm:$0xff]  ;;  %v1267_v49 = vld [vmem:[%s3075_s8 + $0x168] sm:$0xff]  ;;  %v1265_v39 = vld [vmem:[%s3075_s8 + $0x158] sm:$0xff] }
 0x536   : > { %1196 = vadd.xlane.f32.xlu1 %v1193_v34  ;;  %v2116_v35 = vpack.c.bf16 %v1258_v33, %v1254_v32  ;;  %v2150_v43 = vpack.c.bf16 %v1269_v40, %v1265_v39  ;;  %v1518_v33 = vld [vmem:[%s3077_s10 + $0x100] sm:$0xff]  ;;  %v1488_v39 = vld [vmem:[%s3077_s10 + $0x10] sm:$0xff]  ;;  %v1489_v40 = vld [vmem:[%s3077_s10 + $0x18] sm:$0xff] }
 0x537   : > { %2101 = vmatpush1.bf16.msra.mxu0 %v2100_v42  ;;  %v2118_v42 = vpack.c.bf16 %v1267_v49, %v1263_v37  ;;  %v1536_v37 = vld [vmem:[%s3077_s10 + $0x190] sm:$0xff]  ;;  %v1537_v49 = vld [vmem:[%s3077_s10 + $0x198] sm:$0xff] }
 0x538   : > { %2103 = vmatprep.subr.bf16.mxu0 %v2102_v55  ;;  %v1275_v55 = vld [vmem:[%s3075_s8 + $0x1a8] sm:$0xff] }
 0x539   : > { %v2122_v57 = vpack.c.bf16 %v1275_v55, %v1271_v50  ;;  %v1538_v50 = vld [vmem:[%s3077_s10 + $0x1a0] sm:$0xff] }
 0x53b   : > { %2105 = vmatpush1.bf16.msra.mxu0 %v2104_v59  ;;  %v1270_v59 = vld [vmem:[%s3075_s8 + $0x180] sm:$0xff] }
 0x53c   : > { %2107 = vmatprep.subr.bf16.mxu0 %v2106_v1  ;;  %v2124_v1 = vpack.c.bf16 %v1274_v61, %v1270_v59  ;;  %v1523_v61 = vld [vmem:[%s3077_s10 + $0x128] sm:$0xff] }
 0x53f   : > { %2109 = vmatpush1.bf16.msra.mxu0 %v2108_v10  ;;  %v1282_v10 = vld [vmem:[%s3075_s8 + $0x1e0] sm:$0xff] }
 0x540   : > { %2111 = vmatprep.subr.bf16.mxu0 %v2110_v19 }
 0x543   : > { %2113 = vmatpush1.bf16.msra.mxu0 %v2112_v24 }
 0x544   : > { %2115 = vmatprep.subr.bf16.mxu0 %v2114_v0  ;;  %v1487_v0 = vld [vmem:[%s3077_s10 + $0x8] sm:$0xff] }
 0x547   : > { %2117 = vmatpush1.bf16.msra.mxu0 %v2116_v35 }
 0x548   : > { %2119 = vmatprep.subr.bf16.mxu0 %v2118_v42  ;;  %v2198_v42 = vpack.c.bf16 %v1537_v49, %v1536_v37  ;;  %v1546_v49 = vld [vmem:[%s3077_s10 + $0x1e0] sm:$0xff] }
 0x54b   : > { %2121 = vmatpush1.bf16.msra.mxu0 %v2120_v47  ;;  %v1506_v47 = vld [vmem:[%s3077_s10 + $0xa0] sm:$0xff] }
 0x54c   : > { %2123 = vmatprep.subr.bf16.mxu0 %v2122_v57  ;;  %v2170_v55 = vpack.c.bf16 %v1507_v48, %v1506_v47  ;;  %v1490_v57 = vld [vmem:[%s3077_s10 + $0x20] sm:$0xff]  ;;  %v1516_v47 = vld [vmem:[%s3077_s10 + $0xf0] sm:$0xff]  ;;  %v1517_v48 = vld [vmem:[%s3077_s10 + $0xf8] sm:$0xff] }
 0x54d   : > { %v2172_v59 = vpack.c.bf16 %v1491_v53, %v1490_v57  ;;  %v1549_v57 = vld [vmem:[%s3077_s10 + $0x1f8] sm:$0xff]  ;;  %v1500_v53 = vld [vmem:[%s3077_s10 + $0x70] sm:$0xff] }
 0x54f   : > { %2125 = vmatpush1.bf16.msra.mxu0 %v2124_v1  ;;  %v1509_v1 = vld [vmem:[%s3077_s10 + $0xb8] sm:$0xff] }
 0x550   : > { %2127 = vmatprep.subr.bf16.mxu0 %v2126_v6  ;;  %v2174_v3 = vpack.c.bf16 %v1509_v1, %v1508_v63  ;;  %v1493_v6 = vld [vmem:[%s3077_s10 + $0x38] sm:$0xff]  ;;  %v1286_v1 = vld [vmem:[%s3076_s9] sm:$0xf] }
 0x551   : > { %v1299_v4 = vrot.slane %v1286_v1, %v539_v41 }
 0x5c3   : > { %v1197_v12 = vpop.xlane.xlu1 %1196 }
 0x5c4   : > { %v1199_v13 = vmul.f32 0.0078125, %v1197_v12  ;;  %v1280_v12 = vld [vmem:[%s3075_s8 + $0x1d0] sm:$0xff] }
 0x5c6   : > { %v2712_v14 = vsub.f32 %v1193_v34, %v1199_v13  ;;  %v2146_v34 = vpack.c.bf16 %v1261_v31, %v1257_v30  ;;  %v1284_v13 = vld [vmem:[%s3075_s8 + $0x1f0] sm:$0xff]  ;;  %v1486_v30 = vld [vmem:[%s3077_s10] sm:$0xff] }
 0x5c7   : > { %v2160_v16 = vpack.c.bf16 %v1284_v13, %v1280_v12  ;;  %v2164_v32 = vpack.c.bf16 %v1487_v0, %v1486_v30  ;;  %v1510_v13 = vld [vmem:[%s3077_s10 + $0xc0] sm:$0xff] }
 0x5c8   : > { %v1201_v15 = vmul.f32 %v2712_v14, %v2712_v14  ;;  %2147 = vmatprep.subr.bf16.mxu1 %v2146_v34  ;;  %v1519_v34 = vld [vmem:[%s3077_s10 + $0x108] sm:$0xff] }
 0x5c9   : > { %2149 = vmatpush1.bf16.msra.mxu1 %v2148_v38  ;;  %v2196_v35 = vpack.c.bf16 %v1519_v34, %v1518_v33  ;;  %v2166_v38 = vpack.c.bf16 %v1505_v36, %v1504_v7  ;;  %v1528_v33 = vld [vmem:[%s3077_s10 + $0x150] sm:$0xff]  ;;  %v1514_v7 = vld [vmem:[%s3077_s10 + $0xe0] sm:$0xff]  ;;  %v1515_v36 = vld [vmem:[%s3077_s10 + $0xe8] sm:$0xff] }
 0x5ca   : > { %1202 = vadd.xlane.f32.xlu0 %v1201_v15  ;;  %2151 = vmatprep.subr.bf16.mxu1 %v2150_v43  ;;  %v2128_v15 = vpack.c.bf16 %v1282_v10, %v1278_v9  ;;  %v2168_v43 = vpack.c.bf16 %v1489_v40, %v1488_v39  ;;  %v1524_v10 = vld [vmem:[%s3077_s10 + $0x130] sm:$0xff]  ;;  %v1547_v39 = vld [vmem:[%s3077_s10 + $0x1e8] sm:$0xff]  ;;  %v1498_v40 = vld [vmem:[%s3077_s10 + $0x60] sm:$0xff] }
 0x5cc   : > { %2129 = vmatpush1.bf16.msra.mxu0 %v2128_v15  ;;  %v1511_v15 = vld [vmem:[%s3077_s10 + $0xc8] sm:$0xff] }
 0x5cd   : > { %2153 = vmatpush1.bf16.msra.mxu1 %v2152_v56  ;;  %2163 = vmatprep.subr.bf16.mxu0 %v2162_v28  ;;  %v1539_v56 = vld [vmem:[%s3077_s10 + $0x1a8] sm:$0xff]  ;;  %v1544_v28 = vld [vmem:[%s3077_s10 + $0x1d0] sm:$0xff] }
 0x5ce   : > { %2155 = vmatprep.subr.bf16.mxu1 %v2154_v60  ;;  %v2202_v58 = vpack.c.bf16 %v1539_v56, %v1538_v50  ;;  %v1522_v60 = vld [vmem:[%s3077_s10 + $0x120] sm:$0xff]  ;;  %v1548_v50 = vld [vmem:[%s3077_s10 + $0x1f0] sm:$0xff]  ;;  %v2190_v56 = vpack.c.bf16 %v1517_v48, %v1516_v47 }
 0x5cf   : > { %v2204_v62 = vpack.c.bf16 %v1523_v61, %v1522_v60  ;;  %v1532_v60 = vld [vmem:[%s3077_s10 + $0x170] sm:$0xff]  ;;  %v1533_v61 = vld [vmem:[%s3077_s10 + $0x178] sm:$0xff] }
 0x5d0   : > { %v2224_v63 = vpack.c.bf16 %v1533_v61, %v1532_v60 }
 0x5d1   : > { %2157 = vmatpush1.bf16.msra.mxu1 %v2156_v5  ;;  %v1492_v5 = vld [vmem:[%s3077_s10 + $0x30] sm:$0xff] }
 0x5d2   : > { %2159 = vmatprep.subr.bf16.mxu1 %v2158_v11  ;;  %v2176_v9 = vpack.c.bf16 %v1493_v6, %v1492_v5  ;;  %v1525_v11 = vld [vmem:[%s3077_s10 + $0x138] sm:$0xff]  ;;  %v1295_v5 = vrot.slane %v1286_v1, %v535_v52  ;;  %v1303_v6 = vrot.slane %v1286_v1, %v1302_v2 }
 0x5d3   : > { %v2208_v12 = vpack.c.bf16 %v1525_v11, %v1524_v10 }
 0x5d5   : > { %2161 = vmatpush1.bf16.msra.mxu1 %v2160_v16  ;;  %v1542_v16 = vld [vmem:[%s3077_s10 + $0x1c0] sm:$0xff] }
 0x657   : > { %v1203_v17 = vpop.xlane.xlu0 %1202 }
 0x658   : > { %v1204_v18 = vmul.f32 0.0078125, %v1203_v17  ;;  %v2178_v17 = vpack.c.bf16 %v1511_v15, %v1510_v13 }
 0x65a   : > { %v1205_v19 = vadd.f32 1e-12, %v1204_v18  ;;  %v1543_v18 = vld [vmem:[%s3077_s10 + $0x1c8] sm:$0xff] }
 0x65c   : > { %2246 = vrsqrt.f32 %v1205_v19  ;;  %v1494_v19 = vld [vmem:[%s3077_s10 + $0x40] sm:$0xff] }
 0x666   : > { %v2247_v20 = vpop.eup %2246 }
 0x667   : > { %v1207_v22 = vmul.f32 %v2247_v20, %v2712_v14  ;;  %v1534_v14 = vld [vmem:[%s3077_s10 + $0x180] sm:$0xff]  ;;  %v1495_v20 = vld [vmem:[%s3077_s10 + $0x48] sm:$0xff] }
 0x668   : > { %v2194_v31 = vpack.c.bf16 %v1535_v29, %v1534_v14  ;;  %v1513_v14 = vld [vmem:[%s3077_s10 + $0xd8] sm:$0xff] }
 0x669   : > { %v1214_v24 = vmul.f32 %v1805_v21, %v1207_v22  ;;  %v2210_v21 = vpack.c.bf16 %v1543_v18, %v1542_v16  ;;  %v2180_v22 = vpack.c.bf16 %v1495_v20, %v1494_v19  ;;  %v1545_v29 = vld [vmem:[%s3077_s10 + $0x1d8] sm:$0xff]  ;;  %v2182_v30 = vpack.c.bf16 %v1513_v14, %v1512_v26 }
 0x66a   : > { %2195 = vmatprep.subr.bf16.mxu1 %v2194_v31  ;;  %v2214_v0 = vpack.c.bf16 %v1545_v29, %v1544_v28  ;;  %v1496_v31 = vld [vmem:[%s3077_s10 + $0x50] sm:$0xff] }
 0x66b   : > { %v2843_v25 = vadd.f32 %v1806_v23, %v1214_v24  ;;  %v1526_v23 = vld [vmem:[%s3077_s10 + $0x140] sm:$0xff]  ;;  %v1527_v24 = vld [vmem:[%s3077_s10 + $0x148] sm:$0xff] }
 0x66c   : > { %v2212_v27 = vpack.c.bf16 %v1527_v24, %v1526_v23 }
 0x66d   : > { %1373 = vmatmul.mubr.f32.vlgmr.msra.gmra.mrb[8].mxu0 %v2843_v25  ;;  %1444 = vmatmul.mubr.f32.vlgmr.msra.gmra.mrb[8].mxu1 %v2843_v25 }
 0x66e   : > { %2165 = vmatpush3.bf16.msra.mxu0 %v2164_v32  ;;  %2197 = vmatpush3.bf16.msra.mxu1 %v2196_v35  ;;  %v1497_v32 = vld [vmem:[%s3077_s10 + $0x58] sm:$0xff] }
 0x66f   : > { %2167 = vmatprep.subr.bf16.mxu0 %v2166_v38  ;;  %2199 = vmatprep.subr.bf16.mxu1 %v2198_v42  ;;  %v2184_v34 = vpack.c.bf16 %v1497_v32, %v1496_v31  ;;  %v1529_v35 = vld [vmem:[%s3077_s10 + $0x158] sm:$0xff]  ;;  %v2186_v38 = vpack.c.bf16 %v1515_v36, %v1514_v7  ;;  %v2218_v42 = vpack.c.bf16 %v1547_v39, %v1546_v49 }
 0x670   : > { %v2216_v37 = vpack.c.bf16 %v1529_v35, %v1528_v33 }
 0x672   : > { %2169 = vmatpush3.bf16.msra.mxu0 %v2168_v43  ;;  %2201 = vmatpush3.bf16.msra.mxu1 %v2200_v46  ;;  %v1499_v43 = vld [vmem:[%s3077_s10 + $0x68] sm:$0xff] }
 0x673   : > { %2171 = vmatprep.subr.bf16.mxu0 %v2170_v55  ;;  %2203 = vmatprep.subr.bf16.mxu1 %v2202_v58  ;;  %v2188_v46 = vpack.c.bf16 %v1499_v43, %v1498_v40  ;;  %v2220_v55 = vpack.c.bf16 %v1531_v45, %v1530_v44  ;;  %v1501_v58 = vld [vmem:[%s3077_s10 + $0x78] sm:$0xff] }
 0x676   : > { %2173 = vmatpush3.bf16.msra.mxu0 %v2172_v59  ;;  %2205 = vmatpush3.bf16.msra.mxu1 %v2204_v62  ;;  %v2222_v59 = vpack.c.bf16 %v1549_v57, %v1548_v50  ;;  %v2192_v62 = vpack.c.bf16 %v1501_v58, %v1500_v53  ;;  %v1807_v50 = vld [vmem:[%s3078_s11] ss:$0 sm:$0xff] }
 0x677   : > { %2175 = vmatprep.subr.bf16.mxu0 %v2174_v3  ;;  %2207 = vmatprep.subr.bf16.mxu1 %v2206_v8  ;;  %v1291_v3 = vrot.slane %v1286_v1, %v531_v54 }
 0x67a   : > { %2177 = vmatpush3.bf16.msra.mxu0 %v2176_v9  ;;  %2209 = vmatpush3.bf16.msra.mxu1 %v2208_v12 }
 0x67b   : > { %2179 = vmatprep.subr.bf16.mxu0 %v2178_v17  ;;  %2211 = vmatprep.subr.bf16.mxu1 %v2210_v21 }
 0x67e   : > { %2181 = vmatpush3.bf16.msra.mxu0 %v2180_v22  ;;  %2213 = vmatpush3.bf16.msra.mxu1 %v2212_v27 }
 0x67f   : > { %2183 = vmatprep.subr.bf16.mxu0 %v2182_v30  ;;  %2215 = vmatprep.subr.bf16.mxu1 %v2214_v0 }
 0x682   : > { %2185 = vmatpush3.bf16.msra.mxu0 %v2184_v34  ;;  %2217 = vmatpush3.bf16.msra.mxu1 %v2216_v37 }
 0x683   : > { %2187 = vmatprep.subr.bf16.mxu0 %v2186_v38  ;;  %2219 = vmatprep.subr.bf16.mxu1 %v2218_v42 }
 0x686   : > { %2189 = vmatpush3.bf16.msra.mxu0 %v2188_v46  ;;  %2221 = vmatpush3.bf16.msra.mxu1 %v2220_v55 }
 0x687   : > { %2191 = vmatprep.subr.bf16.mxu0 %v2190_v56  ;;  %2223 = vmatprep.subr.bf16.mxu1 %v2222_v59 }
 0x68a   : > { %2193 = vmatpush3.bf16.msra.mxu0 %v2192_v62  ;;  %2225 = vmatpush3.bf16.msra.mxu1 %v2224_v63 }
 0x740   : > { %v1374_v8 = vpop.f32.mrb[8].mxu0  ;;  %v1445_v9 = vpop.f32.mrb[8].mxu1 }
 0x741   : > { %v1375_v10 = vadd.f32 %v1374_v8, %v1291_v3  ;;  %v1446_v11 = vadd.f32 %v1445_v9, %v1299_v4  ;;  %v1376_v12 = vpop.f32.mrb[9].mxu0  ;;  %v1447_v13 = vpop.f32.mrb[9].mxu1 }
 0x742   : > { %v1377_v15 = vadd.f32 %v1376_v12, %v1295_v5  ;;  %v1448_v16 = vadd.f32 %v1447_v13, %v1303_v6  ;;  %v1808_v6 = vld [vmem:[%s3079_s12] ss:$0 sm:$0xff] }
 0x743   : > { %v1450_v17 = vmul.f32 %v1375_v10, %v1375_v10  ;;  %v1452_v18 = vmul.f32 %v1446_v11, %v1446_v11 }
 0x744   : > { %v1451_v19 = vmul.f32 %v1377_v15, %v1377_v15  ;;  %v1453_v20 = vmul.f32 %v1448_v16, %v1448_v16 }
 0x745   : > { %v1454_v54 = vmul.f32 %v1450_v17, %v1375_v10  ;;  %v1456_v21 = vmul.f32 %v1452_v18, %v1446_v11 }
 0x746   : > { %v1455_v22 = vmul.f32 %v1451_v19, %v1377_v15  ;;  %v1457_v41 = vmul.f32 %v1453_v20, %v1448_v16 }
 0x747   : > { %v1458_v23 = vmul.f32 0.044715, %v1454_v54  ;;  %v1460_v51 = vmul.f32 0.044715, %v1456_v21 }
 0x748   : > { %v1459_v52 = vmul.f32 0.044715, %v1455_v22  ;;  %v1461_v24 = vmul.f32 0.044715, %v1457_v41 }
 0x749   : > { %v1462_v26 = vadd.f32 %v1458_v23, %v1375_v10  ;;  %v1464_v27 = vadd.f32 %v1460_v51, %v1446_v11 }
 0x74a   : > { %v1463_v14 = vadd.f32 %v1459_v52, %v1377_v15  ;;  %v1465_v28 = vadd.f32 %v1461_v24, %v1448_v16 }
 0x74b   : > { %v1466_v29 = vmul.f32 0.7978846, %v1462_v26  ;;  %v1468_v30 = vmul.f32 0.7978846, %v1464_v27 }
 0x74c   : > { %v1467_v0 = vmul.f32 0.7978846, %v1463_v14  ;;  %v1469_v31 = vmul.f32 0.7978846, %v1465_v28 }
 0x74d   : > { %2248 = vtanh.f32 %v1466_v29 }
 0x74e   : > { %2250 = vtanh.f32 %v1468_v30 }
 0x74f   : > { %2252 = vtanh.f32 %v1467_v0 }
 0x750   : > { %2254 = vtanh.f32 %v1469_v31 }
 0x757   : > { %v2249_v32 = vpop.eup %2248 }
 0x758   : > { %v2251_v33 = vpop.eup %2250  ;;  %v1474_v34 = vadd.f32 1.0, %v2249_v32 }
 0x759   : > { %v2253_v35 = vpop.eup %2252  ;;  %v1476_v7 = vadd.f32 1.0, %v2251_v33 }
 0x75a   : > { %v2255_v36 = vpop.eup %2254  ;;  %v1475_v37 = vadd.f32 1.0, %v2253_v35  ;;  %v1478_v49 = vmul.f32 0.5, %v1474_v34 }
 0x75b   : > { %v1477_v38 = vadd.f32 1.0, %v2255_v36  ;;  %v1480_v40 = vmul.f32 0.5, %v1476_v7 }
 0x75c   : > { %v1479_v39 = vmul.f32 0.5, %v1475_v37  ;;  %v1482_v45 = vmul.f32 %v1478_v49, %v1375_v10 }
 0x75d   : > { %v1481_v42 = vmul.f32 0.5, %v1477_v38  ;;  %v1484_v46 = vmul.f32 %v1480_v40, %v1446_v11 }
 0x75e   : > { %v1483_v43 = vmul.f32 %v1479_v39, %v1377_v15 }
 0x75f   : > { %v1485_v44 = vmul.f32 %v1481_v42, %v1448_v16 }
 0x760   : > { %1621 = vmatprep.mubr.f32.mxu0 %v1483_v43 }
 0x761   : > { %1691 = vmatprep.mubr.f32.mxu1 %v1485_v44  ;;  %1622 = vmatmul.mubr.f32.vlgmr.msra.gmra.mrb[10].mxu0 %v1482_v45 }
 0x762   : > { %1692 = vmatmul.mubr.f32.vlgmr.msra.gmra.mrb[10].mxu1 %v1484_v46 }
 0x834   : > { %v1887_v47 = vpop.f32.mrb[10].mxu0 }
 0x835   : > { %v1922_v48 = vpop.f32.mrb[10].mxu1  ;;  %v1888_v55 = vpop.f32.mrb[11].mxu0 }
 0x836   : > { %v1889_v56 = vadd.f32 %v1888_v55, %v1887_v47  ;;  %v1923_v57 = vpop.f32.mrb[11].mxu1 }
 0x837   : > { %v1924_v53 = vadd.f32 %v1923_v57, %v1922_v48 }
 0x838   : > { %v1624_v58 = vadd.f32 %v1889_v56, %v1807_v50 }
 0x83a   : > { %v1694_v59 = vadd.f32 %v1924_v53, %v1624_v58 }
 0x83c   : > { %v1697_v60 = vadd.f32 %v1694_v59, %v2843_v25  ;;  %v1809_v25 = vld [vmem:[%s3080_s13] ss:$0 sm:$0xff] }
 0x83e   : > { %1700 = vadd.xlane.f32.xlu0 %v1697_v60 }
 0x8cb   : > { %v1701_v61 = vpop.xlane.xlu0 %1700 }
 0x8cc   : > { %v1702_v62 = vmul.f32 0.0078125, %v1701_v61 }
 0x8ce   : > { %v1703_v63 = vsub.f32 %v1697_v60, %v1702_v62 }
 0x8d0   : > { %v1704_v1 = vmul.f32 %v1703_v63, %v1703_v63 }
 0x8d2   : > { %1705 = vadd.xlane.f32.xlu0 %v1704_v1 }
 0x95f   : > { %v1706_v2 = vpop.xlane.xlu0 %1705 }
 0x960   : > { %v1707_v3 = vmul.f32 0.0078125, %v1706_v2 }
 0x962   : > { %v1708_v4 = vadd.f32 1e-12, %v1707_v3 }
 0x964   : > { %2256 = vrsqrt.f32 %v1708_v4 }
 0x96e   : > { %v2257_v5 = vpop.eup %2256 }
 0x96f   : > { %v1710_v8 = vmul.f32 %v2257_v5, %v1703_v63 }
 0x971   : > { %v1717_v9 = vmul.f32 %v1808_v6, %v1710_v8 }
 0x973   : > { %v1724_v10 = vadd.f32 %v1809_v25, %v1717_v9 }
 0x975   : > { %1725 = vst [vmem:[%s476_s20] sm:$0xff] %v1724_v10 }
 0x976 PF: > { %s24_s29 = sadd.s32 1, %s2264_s29  }
 0x977   : > { %p21_p4 = scmp.ge.s32.totalorder %s24_s29, 4  }
 0x979   :  { %23 = sbr.rel (!%p21_p4) target bundleno = 1 (0x1), region = 109 }

// kernel: _lambda_.5
= control target key start
LH: loop header
LB: loop body
LE: loop exit
PB: predicated region body
PF: predicated region fallthrough
CT: control target
= control target key end

     0   :  { %s2858_s0 = inlined_call_operand.vmem [shape: f32[2,8,128], index: 0, kind: input, shape index: {}]   ;;  %s2859_s1 = inlined_call_operand.vmem [shape: f32[2,1,8], index: 1, kind: input, shape index: {}]   ;;  %s2860_s2 = inlined_call_operand.hbm [shape: f32[128,384], index: 2, kind: input, shape index: {}]   ;;  %s2861_s3 = inlined_call_operand.vmem [shape: f32[1,384], index: 3, kind: input, shape index: {}]   ;;  %s2862_s4 = inlined_call_operand.vmem [shape: f32[128,128], index: 4, kind: input, shape index: {}]   ;;  %s2863_s5 = inlined_call_operand.vmem [shape: f32[1,128], index: 5, kind: input, shape index: {}]   ;;  %s2864_s6 = inlined_call_operand.vmem [shape: f32[1,128], index: 6, kind: input, shape index: {}]   ;;  %s2865_s7 = inlined_call_operand.vmem [shape: f32[1,128], index: 7, kind: input, shape index: {}]   ;;  %s2866_s8 = inlined_call_operand.hbm [shape: f32[128,512], index: 8, kind: input, shape index: {}]   ;;  %s2867_s9 = inlined_call_operand.vmem [shape: f32[1,512], index: 9, kind: input, shape index: {}]   ;;  %s2868_s10 = inlined_call_operand.hbm [shape: f32[512,128], index: 10, kind: input, shape index: {}]   ;;  %s2869_s11 = inlined_call_operand.vmem [shape: f32[1,128], index: 11, kind: input, shape index: {}]   ;;  %s2870_s12 = inlined_call_operand.vmem [shape: f32[1,128], index: 12, kind: input, shape index: {}]   ;;  %s2871_s13 = inlined_call_operand.vmem [shape: f32[1,128], index: 13, kind: input, shape index: {}]   ;;  %s2872_s14 = inlined_call_operand.vmem [shape: f32[2,8,128], index: 14, kind: output, shape index: {}]  }
   0x1   :  { %2876 = sst [smem:[#allocation10_spill]] %s2871_s13 }
   0x2   :  { %2877 = sst [smem:[#allocation11_spill]] %s2872_s14 }
   0x3   :  { %19 = vsyncpa [#allocation3], 0 }
   0x4   :  { %20 = vsyncpa [#allocation5], 0  ;;  %s2564_s29 = smov 0  }
   0x5 LB: > { %2878 = sst [smem:[#allocation9_spill]] %s2474_s29  ;;  %s2476_s30 = smov [#allocation4]   ;;  %s2474_s29 = sphi %s2564_s29, %s26_s29  }
   0x6   : > { %s401_s15 = sshll.u32 %s2476_s30, 4  ;;  %s2570_s16 = sadd.s32 4294967295, %s2474_s29   ;;  %s2575_s15 = int_to_ptr.vmem [resolvable:$true] %s401_s15 }
   0x7   : > { %p1865_p0 = scmp.ge.s32.totalorder %s2474_s29, 1  ;;  %p361_p1 = scmp.lt.s32.totalorder %s2474_s29, 3 }
   0x8   : > { %p2874_p2 = scmp.eq.s32.totalorder %s2570_s16, 0  ;;  %s2477_s18 = smov [#allocation2]  }
   0x9   : > { %p2577_p3 = pnand %p1865_p0, %p361_p1  ;;  %s373_s19 = sshll.u32 %s2477_s18, 4  ;;  %s2583_s19 = int_to_ptr.vmem [resolvable:$true] %s373_s19 }
   0xa   : > { %s2478_s21 = smov [#allocation6]   ;;  %s2376_s25 = scalar_lea.hbm %s2866_s8, 8192 }
   0xb   : > { %s2879_s17 = scalar_select %p2577_p3, 1, 0 }
   0xc   : > { %p2319_p4 = pneg %p2577_p3  ;;  %s2591_s22 = sshll.u32 %s2478_s21, 4  ;;  %s418_s22 = int_to_ptr.vmem [resolvable:$true] %s2591_s22 }
   0xd   : > { %p2377_p6 = scmp.ne.s32.totalorder %s2866_s8, %s2376_s25  ;;  %p2383_p10 = scmp.lt.u32.totalorder %s2376_s25, %s2866_s8 }
   0xe   : > { %p2587_p5 = pnand %p2874_p2, %p2319_p4 }
  0x10   : > { %p2601_p7 = pneg %p2587_p5 }
  0x12   : > { %p2379_p8 = pnand %p2601_p7, %p2377_p6 }
  0x14   : > { %p2380_p9 = pneg %p2379_p8 }
  0x16   : > { %p2385_p11 = pnand %p2383_p10, %p2380_p9 }
  0x18   : > { %2388 = shalt.err (!%p2385_p11)
}
  0x19   : > { %s2389_s21 = scalar_lea.vmem %s2575_s15, 8192  ;;  %p2397_p1 = scmp.lt.s32.totalorder %s2575_s15, %s2575_s15 }
  0x1a   : > { %p2390_p12 = scmp.ne.s32.totalorder %s2575_s15, %s2389_s21  ;;  %p2398_p4 = scmp.lt.s32.totalorder %s2389_s21, %s2389_s21 }
  0x1c   : > { %p2392_p13 = pnand %p2390_p12, %p2601_p7  ;;  %p2399_p6 = por %p2398_p4, %p2397_p1 }
  0x1e   : > { %p2393_p0 = pneg %p2392_p13 }
  0x20   : > { %p2400_p8 = pnand %p2399_p6, %p2393_p0 }
  0x22   : > { %2403 = shalt.err (!%p2400_p8)
}
  0x23   : > { %s2479_s23 = smov 512   ;;  %s2480_s24 = smov 32  }
  0x24   : > { %2325 = dma.hbm_to_vmem [thread:$0]  (!%p2587_p5), %s2866_s8, 8192, %s2575_s15, [#allocation5], %s2479_s23, %s2479_s23, %s2480_s24  }
  0x25   : > { %s2404_s18 = scalar_lea.hbm %s2860_s2, 6144 }
  0x26   : > { %p2405_p9 = scmp.ne.s32.totalorder %s2860_s2, %s2404_s18  ;;  %p2411_p12 = scmp.lt.u32.totalorder %s2404_s18, %s2860_s2 }
  0x28   : > { %p2407_p10 = pnand %p2405_p9, %p2601_p7 }
  0x2a   : > { %p2408_p11 = pneg %p2407_p10 }
  0x2c   : > { %p2413_p13 = pnand %p2411_p12, %p2408_p11 }
  0x2e   : > { %2416 = shalt.err (!%p2413_p13)
}
  0x2f   : > { %s2417_s15 = scalar_lea.vmem %s2583_s19, 6144  ;;  %p2425_p6 = scmp.lt.s32.totalorder %s2583_s19, %s2583_s19 }
  0x30   : > { %p2418_p0 = scmp.ne.s32.totalorder %s2583_s19, %s2417_s15  ;;  %p2426_p8 = scmp.lt.s32.totalorder %s2417_s15, %s2417_s15 }
  0x32   : > { %p2420_p1 = pnand %p2418_p0, %p2601_p7  ;;  %p2427_p9 = por %p2426_p8, %p2425_p6 }
  0x34   : > { %p2421_p4 = pneg %p2420_p1 }
  0x36   : > { %p2428_p10 = pnand %p2427_p9, %p2421_p4 }
  0x38   : > { %2431 = shalt.err (!%p2428_p10)
}
  0x39   : > { %s2481_s14 = smov 384   ;;  %s2482_s13 = smov 24  }
  0x3a   : > { %2322 = dma.hbm_to_vmem [thread:$0]  (!%p2587_p5), %s2860_s2, 6144, %s2583_s19, [#allocation3], %s2481_s14, %s2481_s14, %s2482_s13  }
  0x3b   : > { %s2432_s26 = scalar_lea.hbm %s2868_s10, 8192 }
  0x3c   : > { %p2433_p11 = scmp.ne.s32.totalorder %s2868_s10, %s2432_s26  ;;  %p2439_p0 = scmp.lt.u32.totalorder %s2432_s26, %s2868_s10 }
  0x3e   : > { %p2435_p12 = pnand %p2433_p11, %p2601_p7 }
  0x40   : > { %p2436_p13 = pneg %p2435_p12 }
  0x42   : > { %p2441_p1 = pnand %p2439_p0, %p2436_p13 }
  0x44   : > { %2444 = shalt.err (!%p2441_p1)
}
  0x45   : > { %s2445_s15 = scalar_lea.vmem %s418_s22, 8192  ;;  %p2453_p9 = scmp.lt.s32.totalorder %s418_s22, %s418_s22 }
  0x46   : > { %p2446_p4 = scmp.ne.s32.totalorder %s418_s22, %s2445_s15  ;;  %p2454_p10 = scmp.lt.s32.totalorder %s2445_s15, %s2445_s15 }
  0x48   : > { %p2448_p6 = pnand %p2446_p4, %p2601_p7  ;;  %p2455_p2 = por %p2454_p10, %p2453_p9 }
  0x4a   : > { %p2449_p8 = pneg %p2448_p6 }
  0x4c   : > { %p2456_p3 = pnand %p2455_p2, %p2449_p8 }
  0x4e   : > { %2459 = shalt.err (!%p2456_p3)
}
  0x4f   : > { %s2483_s19 = smov 128   ;;  %s2484_s14 = smov 8  }
  0x50   : > { %2328 = dma.hbm_to_vmem [thread:$0]  (!%p2587_p5), %s2868_s10, 8192, %s418_s22, [#allocation5], %s2483_s19, %s2483_s19, %s2484_s14  }
  0x51   : > { %p2882_p11 = scmp.ne.s32.totalorder %s2879_s17, 0 }
  0x52   : > { %p2883_p12 = scmp.eq.s32.totalorder (!%p2882_p11), %s2570_s16, 0 }
  0x53   : > { %455 = sbr.rel (%p2882_p11) target bundleno = 2512 (0x9d0), region = 76 }
  0x5a   : > { %2465 = dma.done.wait (%p2883_p12), [#allocation3], 6144   ;;  %p2884_p7 = pmov %p2883_p12 }
  0x5c   : > { %2467 = vsyncadd (%p2884_p7), [#allocation3], 4294961152  ;;  %p2885_p2 = pmov %p2884_p7 }
  0x5e   : > { %2469 = dma.done.wait (%p2885_p2), [#allocation5], 16384   ;;  %p2886_p3 = pmov %p2885_p2 }
  0x5f   : > { %v2485_v0 = vmov 0.0   ;;  %v524_v1 = vld [vmem:[#allocation2 + $0x8] sm:$0xff]  ;;  %v527_v2 = vld [vmem:[#allocation2 + $0x20] sm:$0xff]  ;;  %v526_v5 = vld [vmem:[#allocation2 + $0x18] sm:$0xff]  ;;  %p510_p5 = scmp.lt.s32.totalorder %s2570_s16, 1  ;;  %vm2486_vm0 = vmmov 0   ;;  %v573_v50 = vlaneseq }
  0x60   : > { %2471 = vsyncadd (%p2886_p3), [#allocation5], 4294950912  ;;  %652 = vmatprep.mubr.f32.mxu0 %v2485_v0  ;;  %v523_v3 = vld [vmem:[#allocation2] sm:$0xff]  ;;  %v2099_v4 = vpack.c.bf16 %v527_v2, %v524_v1  ;;  %v530_v6 = vld [vmem:[#allocation2 + $0x38] sm:$0xff]  ;;  %2038 = vmatprep.mubr.msk.f32.mxu1 %vm2486_vm0, %v2485_v0  ;;  %vm729_vm1 = vcmask 523264   ;;  %s2487_s25 = smov 64  }
  0x61   : > { %v533_v7 = vld [vmem:[#allocation2 + $0x50] sm:$0xff]  ;;  %v2101_v8 = vpack.c.bf16 %v526_v5, %v523_v3  ;;  %v532_v11 = vld [vmem:[#allocation2 + $0x48] sm:$0xff]  ;;  %v539_v13 = vld [vmem:[#allocation2 + $0x80] sm:$0xff]  ;;  %s2891_s16 = smov (!%p510_p5, %s2570_s16), 1  ;;  %v2693_v51 = vshrl.u32 %v573_v50, 7  ;;  %v2488_v1 = vmov 0.0|0.0  }
  0x62   : > { %v2103_v9 = vpack.c.bf16 %v533_v7, %v530_v6  ;;  %v529_v10 = vld [vmem:[#allocation2 + $0x30] sm:$0xff]  ;;  %v536_v12 = vld [vmem:[#allocation2 + $0x68] sm:$0xff]  ;;  %2100 = vmatprep.subr.bf16.mxu0 %v2099_v4  ;;  %v535_v16 = vld [vmem:[#allocation2 + $0x60] sm:$0xff]  ;;  %s1874_s17 = sshll.u32 %s2891_s16, 3  ;;  %2131 = vmatprep.subr.bf16.mxu1 %v2488_v1  ;;  %s516_s30 = scalar_lea.vmem %s2859_s1, %s2891_s16  ;;  %vm814_vm2 = vcmask 64512  }
  0x63   : > { %2102 = vmatpush1.bf16.msra.mxu0 %v2101_v8  ;;  %v2105_v14 = vpack.c.bf16 %v532_v11, %v529_v10  ;;  %v2107_v15 = vpack.c.bf16 %v539_v13, %v536_v12  ;;  %v538_v17 = vld [vmem:[#allocation2 + $0x78] sm:$0xff]  ;;  %v545_v19 = vld [vmem:[#allocation2 + $0xb0] sm:$0xff]  ;;  %v544_v23 = vld [vmem:[#allocation2 + $0xa8] sm:$0xff]  ;;  %s513_s28 = scalar_lea.vmem %s2858_s0, %s1874_s17  ;;  %v579_v52 = vsub.s32 1, %v2693_v51  ;;  %v575_v54 = vsub.s32 0, %v2693_v51  ;;  %s2887_s27 = sld [smem:[#allocation10_spill]] }
  0x64   : > { %2104 = vmatprep.subr.bf16.mxu0 %v2103_v9  ;;  %v542_v18 = vld [vmem:[#allocation2 + $0x98] sm:$0xff]  ;;  %v2109_v20 = vpack.c.bf16 %v538_v17, %v535_v16  ;;  %v541_v22 = vld [vmem:[#allocation2 + $0x90] sm:$0xff]  ;;  %v548_v24 = vld [vmem:[#allocation2 + $0xc8] sm:$0xff]  ;;  %s2888_s21 = sld [smem:[#allocation11_spill]] }
  0x65   : > { %v2111_v21 = vpack.c.bf16 %v545_v19, %v542_v18  ;;  %v551_v25 = vld [vmem:[#allocation2 + $0xe0] sm:$0xff]  ;;  %v2113_v26 = vpack.c.bf16 %v544_v23, %v541_v22  ;;  %v550_v29 = vld [vmem:[#allocation2 + $0xd8] sm:$0xff]  ;;  %v557_v31 = vld [vmem:[#allocation2 + $0x110] sm:$0xff] }
  0x66   : > { %v2115_v27 = vpack.c.bf16 %v551_v25, %v548_v24  ;;  %v547_v28 = vld [vmem:[#allocation2 + $0xc0] sm:$0xff]  ;;  %v554_v30 = vld [vmem:[#allocation2 + $0xf8] sm:$0xff]  ;;  %v553_v34 = vld [vmem:[#allocation2 + $0xf0] sm:$0xff] }
  0x67   : > { %2106 = vmatpush1.bf16.msra.mxu0 %v2105_v14  ;;  %v2117_v32 = vpack.c.bf16 %v550_v29, %v547_v28  ;;  %v2119_v33 = vpack.c.bf16 %v557_v31, %v554_v30  ;;  %v556_v35 = vld [vmem:[#allocation2 + $0x108] sm:$0xff]  ;;  %v563_v37 = vld [vmem:[#allocation2 + $0x140] sm:$0xff]  ;;  %v562_v41 = vld [vmem:[#allocation2 + $0x138] sm:$0xff] }
  0x68   : > { %2108 = vmatprep.subr.bf16.mxu0 %v2107_v15  ;;  %v560_v36 = vld [vmem:[#allocation2 + $0x128] sm:$0xff]  ;;  %v2121_v38 = vpack.c.bf16 %v556_v35, %v553_v34  ;;  %v559_v40 = vld [vmem:[#allocation2 + $0x120] sm:$0xff]  ;;  %v566_v42 = vld [vmem:[#allocation2 + $0x158] sm:$0xff] }
  0x69   : > { %v2123_v39 = vpack.c.bf16 %v563_v37, %v560_v36  ;;  %v569_v43 = vld [vmem:[#allocation2 + $0x170] sm:$0xff]  ;;  %v2125_v44 = vpack.c.bf16 %v562_v41, %v559_v40  ;;  %v568_v47 = vld [vmem:[#allocation2 + $0x168] sm:$0xff]  ;;  %v2685_v49 = vld [vmem:[%s513_s28] sm:$0xff]  ;;  %v583_v41 = vsub.s32 2, %v2693_v51 }
  0x6a   : > { %v2127_v45 = vpack.c.bf16 %v569_v43, %v566_v42  ;;  %v565_v46 = vld [vmem:[#allocation2 + $0x150] sm:$0xff]  ;;  %v2699_v53 = vld [vmem:[%s2861_s3] sm:$0x7]  ;;  %v528_v62 = vld [vmem:[#allocation2 + $0x28] sm:$0xff]  ;;  %s520_s15 = scalar_lea.vmem %s2888_s21, %s1874_s17 }
  0x6b   : > { %2110 = vmatpush1.bf16.msra.mxu0 %v2109_v20  ;;  %v2129_v48 = vpack.c.bf16 %v568_v47, %v565_v46  ;;  %v580_v55 = vrot.slane %v2699_v53, %v579_v52  ;;  %v576_v57 = vrot.slane %v2699_v53, %v575_v54  ;;  %v525_v61 = vld [vmem:[#allocation2 + $0x10] sm:$0xff]  ;;  %v531_v63 = vld [vmem:[#allocation2 + $0x40] sm:$0xff]  ;;  %v534_v3 = vld [vmem:[#allocation2 + $0x58] sm:$0xff]  ;;  %v584_v42 = vrot.slane %v2699_v53, %v583_v41 }
  0x6c   : > { %2112 = vmatprep.subr.bf16.mxu0 %v2111_v21  ;;  %v2132_v2 = vpack.c.bf16 %v528_v62, %v525_v61  ;;  %v2135_v4 = vpack.c.bf16 %v534_v3, %v531_v63  ;;  %v537_v5 = vld [vmem:[#allocation2 + $0x70] sm:$0xff]  ;;  %v540_v6 = vld [vmem:[#allocation2 + $0x88] sm:$0xff]  ;;  %v543_v8 = vld [vmem:[#allocation2 + $0xa0] sm:$0xff] }
  0x6d   : > { %v2138_v7 = vpack.c.bf16 %v540_v6, %v537_v5  ;;  %v546_v9 = vld [vmem:[#allocation2 + $0xb8] sm:$0xff]  ;;  %v549_v11 = vld [vmem:[#allocation2 + $0xd0] sm:$0xff]  ;;  %v552_v12 = vld [vmem:[#allocation2 + $0xe8] sm:$0xff] }
  0x6e   : > { %2133 = vmatpush3.bf16.msra.mxu1 %v2132_v2  ;;  %v2141_v10 = vpack.c.bf16 %v546_v9, %v543_v8  ;;  %v2144_v13 = vpack.c.bf16 %v552_v12, %v549_v11  ;;  %v555_v14 = vld [vmem:[#allocation2 + $0x100] sm:$0xff]  ;;  %v558_v15 = vld [vmem:[#allocation2 + $0x118] sm:$0xff]  ;;  %v561_v17 = vld [vmem:[#allocation2 + $0x130] sm:$0xff] }
  0x6f   : > { %2114 = vmatpush1.bf16.msra.mxu0 %v2113_v26  ;;  %2134 = vmatprep.subr.bf16.mxu1 %v2488_v1  ;;  %v2147_v16 = vpack.c.bf16 %v558_v15, %v555_v14  ;;  %v564_v18 = vld [vmem:[#allocation2 + $0x148] sm:$0xff]  ;;  %v567_v21 = vld [vmem:[#allocation2 + $0x160] sm:$0xff]  ;;  %v570_v22 = vld [vmem:[#allocation2 + $0x178] sm:$0xff] }
  0x70   : > { %2116 = vmatprep.subr.bf16.mxu0 %v2115_v27  ;;  %v2150_v20 = vpack.c.bf16 %v564_v18, %v561_v17  ;;  %v2153_v24 = vpack.c.bf16 %v570_v22, %v567_v21  ;;  %v1878_v26 = vld [vmem:[%s516_s30] ss:$0 sm:$0xff]  ;;  %v1078_v62 = vld [vmem:[%s2862_s4 + $0x58] sm:$0xff]  ;;  %v1080_v3 = vld [vmem:[%s2862_s4 + $0x68] sm:$0xff] }
  0x71   : > { %v1079_v2 = vld [vmem:[%s2862_s4 + $0x60] sm:$0xff]  ;;  %v1081_v5 = vld [vmem:[%s2862_s4 + $0x70] sm:$0xff]  ;;  %v1082_v6 = vld [vmem:[%s2862_s4 + $0x78] sm:$0xff] }
  0x72   : > { %2136 = vmatpush3.bf16.msra.mxu1 %v2135_v4  ;;  %v2162_v4 = vpack.c.bf16 %v1080_v3, %v1079_v2  ;;  %v900_v11 = vld [vmem:[%s2862_s4 + $0x8] sm:$0xff]  ;;  %v901_v15 = vld [vmem:[%s2862_s4 + $0x10] sm:$0xff]  ;;  %v903_v18 = vld [vmem:[%s2862_s4 + $0x20] sm:$0xff] }
  0x73   : > { %2118 = vmatpush1.bf16.msra.mxu0 %v2117_v32  ;;  %2137 = vmatprep.subr.bf16.mxu1 %v2488_v1  ;;  %v905_v21 = vld [vmem:[%s2862_s4 + $0x30] sm:$0xff]  ;;  %v906_v22 = vld [vmem:[%s2862_s4 + $0x38] sm:$0xff] }
  0x74   : > { %2120 = vmatprep.subr.bf16.mxu0 %v2119_v33  ;;  %v1285_v3 = vld [vmem:[#allocation4 + $0x98] sm:$0xff] }
  0x76   : > { %2139 = vmatpush3.bf16.msra.mxu1 %v2138_v7  ;;  %v2165_v7 = vpack.c.bf16 %v1082_v6, %v1081_v5  ;;  %v1282_v5 = vld [vmem:[#allocation4 + $0x80] sm:$0xff] }
  0x77   : > { %2122 = vmatpush1.bf16.msra.mxu0 %v2121_v38  ;;  %2140 = vmatprep.subr.bf16.mxu1 %v2488_v1 }
  0x78   : > { %2124 = vmatprep.subr.bf16.mxu0 %v2123_v39 }
  0x7a   : > { %2142 = vmatpush3.bf16.msra.mxu1 %v2141_v10  ;;  %v899_v10 = vld [vmem:[%s2862_s4] sm:$0xff] }
  0x7b   : > { %2126 = vmatpush1.bf16.msra.mxu0 %v2125_v44  ;;  %2143 = vmatprep.subr.bf16.mxu1 %v2488_v1 }
  0x7c   : > { %2128 = vmatprep.subr.bf16.mxu0 %v2127_v45 }
  0x7e   : > { %2145 = vmatpush3.bf16.msra.mxu1 %v2144_v13  ;;  %v2168_v13 = vpack.c.bf16 %v900_v11, %v899_v10 }
  0x7f   : > { %2130 = vmatpush1.bf16.msra.mxu0 %v2129_v48  ;;  %2146 = vmatprep.subr.bf16.mxu1 %v2488_v1 }
  0x80   : > { %2041 = vmatprep.subr.mxu0 %v2485_v0 }
  0x82   : > { %653 = vmatmul.mubr.f32.vlgmr.msra.gmra.mrb[0].mxu0 %v2685_v49  ;;  %2148 = vmatpush3.bf16.msra.mxu1 %v2147_v16  ;;  %v902_v16 = vld [vmem:[%s2862_s4 + $0x18] sm:$0xff] }
  0x83   : > { %2043 = vmatprep.mubr.msk.f32.mxu0 %vm2486_vm0, %v2485_v0  ;;  %2149 = vmatprep.subr.bf16.mxu1 %v2488_v1  ;;  %v2171_v17 = vpack.c.bf16 %v902_v16, %v901_v15  ;;  %v1291_v16 = vld [vmem:[#allocation4 + $0xc8] sm:$0xff] }
  0x86   : > { %2151 = vmatpush3.bf16.msra.mxu1 %v2150_v20 }
  0x87   : > { %2152 = vmatprep.subr.bf16.mxu1 %v2488_v1 }
  0x8a   : > { %2154 = vmatpush3.bf16.msra.mxu1 %v2153_v24 }
  0x8b   : > { %2046 = vmatprep.subr.mxu1 %v2485_v0 }
  0x8d   : > { %2039 = vmatmul.mubr.f32.vlgmr.msra.gmra.mrb[0].mxu1 %v2685_v49 }
  0x8e   : > { %2048 = vmatprep.mubr.msk.f32.mxu1 %vm2486_vm0, %v2485_v0 }
 0x155   : > { %v654_v56 = vpop.f32.mrb[0].mxu0 }
 0x156   : > { %v656_v58 = vpop.f32.mrb[1].mxu0  ;;  %v655_v60 = vadd.f32 %v654_v56, %v576_v57 }
 0x157   : > { %v657_v59 = vadd.f32 %v656_v58, %v580_v55  ;;  %v1075_v58 = vld [vmem:[%s2862_s4 + $0x40] sm:$0xff] }
 0x159   : > { %909 = vrot.lane.b32.xlu0 %v657_v59, %s2487_s25  ;;  %2042 = vmatpush3.xpose.msk.msra.mxu0 %vm729_vm1, %v657_v59  ;;  %v1076_v59 = vld [vmem:[%s2862_s4 + $0x48] sm:$0xff] }
 0x15a   : > { %2051 = vmatprep.subr.mxu0 %v2485_v0  ;;  %v2156_v61 = vpack.c.bf16 %v1076_v59, %v1075_v58  ;;  %v1276_v58 = vld [vmem:[#allocation4 + $0x50] sm:$0xff] }
 0x15c   : > { %2044 = vmatmul.mubr.msk.f32.vlgmr.msra.gmra.mrb[2].mxu0 %vm729_vm1, %v655_v60 }
 0x15d   : > { %907 = vrot.lane.b32.xlu0 %v655_v60, %s2487_s25  ;;  %2053 = vmatprep.mubr.msk.f32.mxu0 %vm2486_vm0, %v2485_v0  ;;  %v1077_v60 = vld [vmem:[%s2862_s4 + $0x50] sm:$0xff] }
 0x15e   : > { %v2159_v63 = vpack.c.bf16 %v1078_v62, %v1077_v60  ;;  %v1280_v60 = vld [vmem:[#allocation4 + $0x70] sm:$0xff]  ;;  %v1287_v62 = vld [vmem:[#allocation4 + $0xa8] sm:$0xff] }
 0x160   : > { %v725_v43 = vpop.f32.mrb[0].mxu1 }
 0x161   : > { %v726_v44 = vadd.f32 %v725_v43, %v584_v42  ;;  %v2040_v45 = vpop.f32.mrb[1].mxu1 }
 0x162   : > { %v1272_v45 = vld [vmem:[#allocation4 + $0x30] sm:$0xff] }
 0x163   : > { %2047 = vmatpush3.msra.mxu1 %v726_v44 }
 0x164   : > { %2056 = vmatprep.subr.mxu1 %v2485_v0 }
 0x1cb   : > { %v910_v19 = vpop.permute.xlu0 %909 }
 0x1cc   : > { %2052 = vmatpush3.xpose.msk.msra.mxu0 %vm729_vm1, %v910_v19  ;;  %v904_v19 = vld [vmem:[%s2862_s4 + $0x28] sm:$0xff] }
 0x1cd   : > { %2155 = vmatprep.subr.bf16.mxu0 %v2488_v1  ;;  %v2174_v20 = vpack.c.bf16 %v904_v19, %v903_v18  ;;  %v1293_v18 = vld [vmem:[#allocation4 + $0xd8] sm:$0xff] }
 0x1cf   : > { %v908_v23 = vpop.permute.xlu0 %907 }
 0x1d0   : > { %2054 = vmatmul.mubr.msk.f32.vlgmr.msra.gmra.mrb[4].mxu0 %vm729_vm1, %v908_v23  ;;  %v2177_v23 = vpack.c.bf16 %v906_v22, %v905_v21  ;;  %v1290_v21 = vld [vmem:[#allocation4 + $0xc0] sm:$0xff] }
 0x1d1   : > { %2077 = vmatprep.mubr.msk.f32.mxu0 %vm2486_vm0, %v2485_v0  ;;  %2157 = vmatpush3.bf16.msra.mxu0 %v2156_v61  ;;  %v1283_v61 = vld [vmem:[#allocation4 + $0x88] sm:$0xff]  ;;  %v1294_v22 = vld [vmem:[#allocation4 + $0xe0] sm:$0xff] }
 0x1d2   : > { %2158 = vmatprep.subr.bf16.mxu0 %v2488_v1  ;;  %v2187_v2 = vpack.c.bf16 %v1287_v62, %v1283_v61  ;;  %v1318_v61 = vld [vmem:[#allocation4 + $0x1a0] sm:$0xff]  ;;  %v1316_v62 = vld [vmem:[#allocation4 + $0x190] sm:$0xff] }
 0x1d5   : > { %2160 = vmatpush3.bf16.msra.mxu0 %v2159_v63  ;;  %v2217_v63 = vpack.c.bf16 %v1280_v60, %v1276_v58  ;;  %v1321_v58 = vld [vmem:[#allocation4 + $0x1b8] sm:$0xff] }
 0x1d6   : > { %2161 = vmatprep.subr.bf16.mxu0 %v2488_v1 }
 0x1d9   : > { %2163 = vmatpush3.bf16.msra.mxu0 %v2162_v4  ;;  %v1289_v4 = vld [vmem:[#allocation4 + $0xb8] sm:$0xff] }
 0x1da   : > { %2164 = vmatprep.subr.bf16.mxu0 %v2488_v1  ;;  %v2219_v6 = vpack.c.bf16 %v1289_v4, %v1285_v3  ;;  %v1323_v3 = vld [vmem:[#allocation4 + $0x1c8] sm:$0xff] }
 0x1db   : > { %v1327_v4 = vld [vmem:[#allocation4 + $0x1e8] sm:$0xff] }
 0x1dd   : > { %2166 = vmatpush3.bf16.msra.mxu0 %v2165_v7  ;;  %v1286_v7 = vld [vmem:[#allocation4 + $0xa0] sm:$0xff] }
 0x1de   : > { %v2189_v10 = vpack.c.bf16 %v1286_v7, %v1282_v5  ;;  %v1325_v5 = vld [vmem:[#allocation4 + $0x1d8] sm:$0xff]  ;;  %v2207_v7 = vpack.c.bf16 %v1327_v4, %v1323_v3  ;;  %v1584_v3 = vld [vmem:[#allocation6 + $0x1b0] sm:$0xff] }
 0x22f   : > { %v802_v25 = vpop.f32.mrb[2].mxu0 }
 0x230   : > { %v806_v27 = vmul.f32 0.125, %v802_v25  ;;  %v2045_v28 = vpop.f32.mrb[3].mxu0 }
 0x232   : > { %v813_v29 = vadd.f32 %v1878_v26, %v806_v27 }
 0x234   : > { %v815_v30 = vsel %vm814_vm2, %v813_v29, -inf }
 0x235   : > { %816 = vmax.xlane.f32.xlu1 %v815_v30 }
 0x2a3   : > { %v981_v31 = vpop.f32.mrb[4].mxu0 }
 0x2a4   : > { %v985_v32 = vmul.f32 0.125, %v981_v31  ;;  %v2055_v33 = vpop.f32.mrb[5].mxu0 }
 0x2a6   : > { %v986_v34 = vadd.f32 %v1878_v26, %v985_v32 }
 0x2a8   : > { %v987_v35 = vsel %vm814_vm2, %v986_v34, -inf }
 0x2a9   : > { %988 = vmax.xlane.f32.xlu1 %v987_v35  ;;  %v1267_v35 = vld [vmem:[#allocation4 + $0x8] sm:$0xff] }
 0x2c2   : > { %v817_v36 = vpop.xlane.xlu1 %816 }
 0x2c3   : > { %v818_v37 = vsub.f32 %v813_v29, %v817_v36  ;;  %v1271_v36 = vld [vmem:[#allocation4 + $0x28] sm:$0xff] }
 0x2c5   : > { %v819_v38 = vmul.f32 1.442695, %v818_v37  ;;  %v1269_v37 = vld [vmem:[#allocation4 + $0x18] sm:$0xff] }
 0x2c7   : > { %2356 = vpow2.f32 %v819_v38  ;;  %v2179_v38 = vpack.c.bf16 %v1271_v36, %v1267_v35  ;;  %v1300_v36 = vld [vmem:[#allocation4 + $0x110] sm:$0xff] }
 0x2c9   : > { %2180 = vmatprep.subr.bf16.mxu0 %v2179_v38  ;;  %v1307_v38 = vld [vmem:[#allocation4 + $0x148] sm:$0xff] }
 0x2d1   : > { %v2357_v39 = vpop.eup %2356 }
 0x2d2   : > { %v821_v40 = vsel %vm814_vm2, %v2357_v39, 0.0 }
 0x2d3   : > { %822 = vadd.xlane.f32.xlu0 %v821_v40  ;;  %v1266_v40 = vld [vmem:[#allocation4] sm:$0xff] }
 0x336   : > { %v989_v46 = vpop.xlane.xlu1 %988 }
 0x337   : > { %v990_v47 = vsub.f32 %v986_v34, %v989_v46  ;;  %v1275_v46 = vld [vmem:[#allocation4 + $0x48] sm:$0xff] }
 0x339   : > { %v991_v48 = vmul.f32 1.442695, %v990_v47 }
 0x33b   : > { %2358 = vpow2.f32 %v991_v48  ;;  %v1279_v48 = vld [vmem:[#allocation4 + $0x68] sm:$0xff] }
 0x345   : > { %v2359_v50 = vpop.eup %2358 }
 0x346   : > { %v993_v55 = vsel %vm814_vm2, %v2359_v50, 0.0 }
 0x347   : > { %994 = vadd.xlane.f32.xlu1 %v993_v55  ;;  %v1281_v55 = vld [vmem:[#allocation4 + $0x78] sm:$0xff] }
 0x358   : > { %999 = vrot.lane.b32.xlu1 %v726_v44, %s2487_s25  ;;  %v1268_v44 = vld [vmem:[#allocation4 + $0x10] sm:$0xff] }
 0x359   : > { %v2213_v47 = vpack.c.bf16 %v1272_v45, %v1268_v44  ;;  %v1306_v45 = vld [vmem:[#allocation4 + $0x140] sm:$0xff] }
 0x360   : > { %v823_v56 = vpop.xlane.xlu0 %822 }
 0x361   : > { %2360 = vrcp.f32 %v823_v56 }
 0x36b   : > { %v2361_v57 = vpop.eup %2360 }
 0x36c   : > { %v825_v53 = vmul.f32 %v2361_v57, %v2357_v39  ;;  %v1273_v39 = vld [vmem:[#allocation4 + $0x38] sm:$0xff]  ;;  %v1274_v57 = vld [vmem:[#allocation4 + $0x40] sm:$0xff] }
 0x36d   : > { %v2211_v42 = vpack.c.bf16 %v1273_v39, %v1269_v37  ;;  %v1304_v37 = vld [vmem:[#allocation4 + $0x130] sm:$0xff] }
 0x36e   : > { %2049 = vmatmul.mubr.msk.f32.vlgmr.msra.gmra.mrb[2].mxu1 %vm814_vm2, %v825_v53  ;;  %v1278_v53 = vld [vmem:[#allocation4 + $0x60] sm:$0xff]  ;;  %v2229_v39 = vpack.c.bf16 %v1304_v37, %v1300_v36  ;;  %v1548_v36 = vld [vmem:[#allocation6 + $0x90] sm:$0xff]  ;;  %v1549_v37 = vld [vmem:[#allocation6 + $0x98] sm:$0xff] }
 0x36f   : > { %2058 = vmatprep.mubr.msk.f32.mxu1 %vm2486_vm0, %v2485_v0  ;;  %v2185_v59 = vpack.c.bf16 %v1278_v53, %v1274_v57  ;;  %v1317_v53 = vld [vmem:[#allocation4 + $0x198] sm:$0xff] }
 0x370   : > { %v2235_v60 = vpack.c.bf16 %v1321_v58, %v1317_v53  ;;  %v1535_v53 = vld [vmem:[#allocation6 + $0x28] sm:$0xff] }
 0x3d4   : > { %v995_v8 = vpop.xlane.xlu1 %994 }
 0x3d5   : > { %2362 = vrcp.f32 %v995_v8  ;;  %v1284_v8 = vld [vmem:[#allocation4 + $0x90] sm:$0xff] }
 0x3d8   : > { %v1000_v9 = vpop.permute.xlu1 %999 }
 0x3d9   : > { %2057 = vmatpush3.msra.mxu1 %v1000_v9  ;;  %v1288_v9 = vld [vmem:[#allocation4 + $0xb0] sm:$0xff] }
 0x3da   : > { %2167 = vmatprep.subr.bf16.mxu1 %v2488_v1  ;;  %v2221_v11 = vpack.c.bf16 %v1288_v9, %v1284_v8  ;;  %v1329_v8 = vld [vmem:[#allocation4 + $0x1f8] sm:$0xff]  ;;  %v1322_v9 = vld [vmem:[#allocation4 + $0x1c0] sm:$0xff] }
 0x3df   : > { %v2363_v12 = vpop.eup %2362 }
 0x3e0   : > { %v997_v14 = vmul.f32 %v2363_v12, %v2359_v50  ;;  %v1277_v50 = vld [vmem:[#allocation4 + $0x58] sm:$0xff] }
 0x3e1   : > { %v2215_v56 = vpack.c.bf16 %v1281_v55, %v1277_v50  ;;  %v1312_v50 = vld [vmem:[#allocation4 + $0x170] sm:$0xff]  ;;  %v1315_v55 = vld [vmem:[#allocation4 + $0x188] sm:$0xff] }
 0x3e2   : > { %2059 = vmatmul.mubr.msk.f32.vlgmr.msra.gmra.mrb[4].mxu1 %vm814_vm2, %v997_v14 }
 0x3e3   : > { %2169 = vmatpush3.bf16.msra.mxu1 %v2168_v13  ;;  %2096 = vmatprep.mubr.msk.f32.mxu1 %vm2486_vm0, %v2485_v0 }
 0x3e4   : > { %2170 = vmatprep.subr.bf16.mxu1 %v2488_v1 }
 0x3e7   : > { %2172 = vmatpush3.bf16.msra.mxu1 %v2171_v17  ;;  %v1295_v17 = vld [vmem:[#allocation4 + $0xe8] sm:$0xff] }
 0x3e8   : > { %2173 = vmatprep.subr.bf16.mxu1 %v2488_v1  ;;  %v2191_v19 = vpack.c.bf16 %v1295_v17, %v1291_v16 }
 0x3eb   : > { %2175 = vmatpush3.bf16.msra.mxu1 %v2174_v20  ;;  %v1297_v20 = vld [vmem:[#allocation4 + $0xf8] sm:$0xff] }
 0x3ec   : > { %2176 = vmatprep.subr.bf16.mxu1 %v2488_v1  ;;  %v1885_v1 = vld [vmem:[%s2863_s5] ss:$0 sm:$0xff] }
 0x3ef   : > { %2178 = vmatpush3.bf16.msra.mxu1 %v2177_v23  ;;  %v2223_v23 = vpack.c.bf16 %v1297_v20, %v1293_v18 }
 0x3f0   : > { %2212 = vmatprep.subr.bf16.mxu1 %v2211_v42  ;;  %v1313_v42 = vld [vmem:[#allocation4 + $0x178] sm:$0xff] }
 0x441   : > { %v895_v24 = vpop.f32.mrb[2].mxu1 }
 0x442   : > { %v2050_v25 = vpop.f32.mrb[3].mxu1  ;;  %2097 = vmatmul.mubr.msk.f32.vlgmr.msra.gmra.mrb[6].mxu1 %vm729_vm1, %v895_v24  ;;  %v2193_v24 = vpack.c.bf16 %v1294_v22, %v1290_v21  ;;  %v1886_v21 = vld [vmem:[%s2864_s6] ss:$0 sm:$0xff] }
 0x443   : > { %1487 = vmatprep.mubr.f32.mxu1 %v2485_v0  ;;  %2214 = vmatpush1.bf16.msra.mxu1 %v2213_v47  ;;  %v1292_v25 = vld [vmem:[#allocation4 + $0xd0] sm:$0xff] }
 0x444   : > { %2216 = vmatprep.subr.bf16.mxu1 %v2215_v56  ;;  %v1308_v47 = vld [vmem:[#allocation4 + $0x150] sm:$0xff] }
 0x445   : > { %v2233_v56 = vpack.c.bf16 %v1312_v50, %v1308_v47  ;;  %v1551_v50 = vld [vmem:[#allocation6 + $0xa8] sm:$0xff] }
 0x447   : > { %2218 = vmatpush1.bf16.msra.mxu1 %v2217_v63  ;;  %v1320_v63 = vld [vmem:[#allocation4 + $0x1b0] sm:$0xff] }
 0x448   : > { %2220 = vmatprep.subr.bf16.mxu1 %v2219_v6  ;;  %v2237_v6 = vpack.c.bf16 %v1320_v63, %v1316_v62  ;;  %v1552_v63 = vld [vmem:[#allocation6 + $0xb0] sm:$0xff] }
 0x44b   : > { %2222 = vmatpush1.bf16.msra.mxu1 %v2221_v11  ;;  %v2239_v11 = vpack.c.bf16 %v1329_v8, %v1325_v5  ;;  %v1585_v5 = vld [vmem:[#allocation6 + $0x1b8] sm:$0xff] }
 0x44c   : > { %2224 = vmatprep.subr.bf16.mxu1 %v2223_v23  ;;  %v1887_v23 = vld [vmem:[%s2865_s7] ss:$0 sm:$0xff]  ;;  %v2287_v8 = vpack.c.bf16 %v1585_v5, %v1584_v3  ;;  %v1346_v3 = vsub.s32 3, %v2693_v51 }
 0x4b5   : > { %v1071_v26 = vpop.f32.mrb[4].mxu1 }
 0x4b6   : > { %v2060_v27 = vpop.f32.mrb[5].mxu1  ;;  %2078 = vmatmul.mubr.msk.f32.vlgmr.msra.gmra.mrb[6].mxu0 %vm729_vm1, %v1071_v26  ;;  %v1296_v26 = vld [vmem:[#allocation4 + $0xf0] sm:$0xff] }
 0x4b7   : > { %1416 = vmatprep.mubr.f32.mxu0 %v2485_v0  ;;  %v1270_v0 = vld [vmem:[#allocation4 + $0x20] sm:$0xff]  ;;  %v2225_v27 = vpack.c.bf16 %v1296_v26, %v1292_v25 }
 0x4b8   : > { %v2181_v43 = vpack.c.bf16 %v1270_v0, %v1266_v40  ;;  %v1311_v40 = vld [vmem:[#allocation4 + $0x168] sm:$0xff]  ;;  %v1309_v0 = vld [vmem:[#allocation4 + $0x158] sm:$0xff]  ;;  %v1546_v26 = vld [vmem:[#allocation6 + $0x80] sm:$0xff] }
 0x4b9   : > { %2226 = vmatpush1.bf16.msra.mxu1 %v2225_v27  ;;  %v2231_v44 = vpack.c.bf16 %v1313_v42, %v1309_v0  ;;  %v1547_v27 = vld [vmem:[#allocation6 + $0x88] sm:$0xff]  ;;  %v1532_v0 = vld [vmem:[#allocation6 + $0x10] sm:$0xff]  ;;  %v1533_v42 = vld [vmem:[#allocation6 + $0x18] sm:$0xff] }
 0x4ba   : > { %2182 = vmatpush1.bf16.msra.mxu0 %v2181_v43  ;;  %v2199_v43 = vpack.c.bf16 %v1311_v40, %v1307_v38  ;;  %v1580_v38 = vld [vmem:[#allocation6 + $0x190] sm:$0xff]  ;;  %v1581_v40 = vld [vmem:[#allocation6 + $0x198] sm:$0xff] }
 0x515   : > { %v1225_v28 = vpop.f32.mrb[6].mxu1 }
 0x516   : > { %v2098_v29 = vpop.f32.mrb[7].mxu1 }
 0x517   : > { %v1303_v29 = vld [vmem:[#allocation4 + $0x128] sm:$0xff] }
 0x589   : > { %v1152_v30 = vpop.f32.mrb[6].mxu0 }
 0x58a   : > { %v1226_v31 = vadd.f32 %v1225_v28, %v1152_v30  ;;  %v2079_v32 = vpop.f32.mrb[7].mxu0  ;;  %v1299_v28 = vld [vmem:[#allocation4 + $0x108] sm:$0xff]  ;;  %v1301_v30 = vld [vmem:[#allocation4 + $0x118] sm:$0xff] }
 0x58b   : > { %v1298_v32 = vld [vmem:[#allocation4 + $0x100] sm:$0xff] }
 0x58c   : > { %v1236_v33 = vadd.f32 %v1885_v1, %v1226_v31  ;;  %v2195_v1 = vpack.c.bf16 %v1303_v29, %v1299_v28  ;;  %v1305_v31 = vld [vmem:[#allocation4 + $0x138] sm:$0xff]  ;;  %v1578_v28 = vld [vmem:[#allocation6 + $0x180] sm:$0xff]  ;;  %v2243_v29 = vpack.c.bf16 %v1547_v27, %v1546_v26  ;;  %v1556_v26 = vld [vmem:[#allocation6 + $0xd0] sm:$0xff] }
 0x58e   : > { %v1237_v34 = vadd.f32 %v1236_v33, %v2685_v49  ;;  %v2183_v49 = vpack.c.bf16 %v1279_v48, %v1275_v46  ;;  %v1302_v33 = vld [vmem:[#allocation4 + $0x120] sm:$0xff] }
 0x58f   : > { %v2197_v35 = vpack.c.bf16 %v1302_v33, %v1298_v32  ;;  %v1310_v46 = vld [vmem:[#allocation4 + $0x160] sm:$0xff] }
 0x590   : > { %1240 = vadd.xlane.f32.xlu1 %v1237_v34  ;;  %2184 = vmatprep.subr.bf16.mxu0 %v2183_v49  ;;  %v2201_v48 = vpack.c.bf16 %v1310_v46, %v1306_v45  ;;  %v1319_v49 = vld [vmem:[#allocation4 + $0x1a8] sm:$0xff]  ;;  %v1562_v33 = vld [vmem:[#allocation6 + $0x100] sm:$0xff]  ;;  %v1564_v45 = vld [vmem:[#allocation6 + $0x110] sm:$0xff] }
 0x591   : > { %2186 = vmatpush1.bf16.msra.mxu0 %v2185_v59  ;;  %v2203_v57 = vpack.c.bf16 %v1319_v49, %v1315_v55  ;;  %v1314_v59 = vld [vmem:[#allocation4 + $0x180] sm:$0xff]  ;;  %v1565_v46 = vld [vmem:[#allocation6 + $0x118] sm:$0xff] }
 0x592   : > { %2188 = vmatprep.subr.bf16.mxu0 %v2187_v2  ;;  %v2205_v2 = vpack.c.bf16 %v1318_v61, %v1314_v59  ;;  %v2281_v47 = vpack.c.bf16 %v1565_v46, %v1564_v45  ;;  %v1582_v55 = vld [vmem:[#allocation6 + $0x1a0] sm:$0xff]  ;;  %v1567_v61 = vld [vmem:[#allocation6 + $0x128] sm:$0xff] }
 0x593   : > { %v1574_v45 = vld [vmem:[#allocation6 + $0x160] sm:$0xff]  ;;  %v1575_v46 = vld [vmem:[#allocation6 + $0x168] sm:$0xff] }
 0x595   : > { %2190 = vmatpush1.bf16.msra.mxu0 %v2189_v10  ;;  %v1326_v10 = vld [vmem:[#allocation4 + $0x1e0] sm:$0xff] }
 0x596   : > { %2192 = vmatprep.subr.bf16.mxu0 %v2191_v19 }
 0x599   : > { %2194 = vmatpush1.bf16.msra.mxu0 %v2193_v24 }
 0x59a   : > { %2196 = vmatprep.subr.bf16.mxu0 %v2195_v1  ;;  %v1530_v1 = vld [vmem:[#allocation6] sm:$0xff] }
 0x59d   : > { %2198 = vmatpush1.bf16.msra.mxu0 %v2197_v35 }
 0x59e   : > { %2200 = vmatprep.subr.bf16.mxu0 %v2199_v43  ;;  %v2279_v43 = vpack.c.bf16 %v1581_v40, %v1580_v38  ;;  %v1590_v40 = vld [vmem:[#allocation6 + $0x1e0] sm:$0xff] }
 0x5a1   : > { %2202 = vmatpush1.bf16.msra.mxu0 %v2201_v48  ;;  %v1550_v48 = vld [vmem:[#allocation6 + $0xa0] sm:$0xff] }
 0x5a2   : > { %2204 = vmatprep.subr.bf16.mxu0 %v2203_v57  ;;  %v2251_v49 = vpack.c.bf16 %v1551_v50, %v1550_v48  ;;  %v1534_v57 = vld [vmem:[#allocation6 + $0x20] sm:$0xff]  ;;  %v1560_v48 = vld [vmem:[#allocation6 + $0xf0] sm:$0xff]  ;;  %v1561_v50 = vld [vmem:[#allocation6 + $0xf8] sm:$0xff] }
 0x5a3   : > { %v2253_v59 = vpack.c.bf16 %v1535_v53, %v1534_v57  ;;  %v1593_v57 = vld [vmem:[#allocation6 + $0x1f8] sm:$0xff]  ;;  %v1544_v53 = vld [vmem:[#allocation6 + $0x70] sm:$0xff] }
 0x5a5   : > { %2206 = vmatpush1.bf16.msra.mxu0 %v2205_v2  ;;  %v1553_v2 = vld [vmem:[#allocation6 + $0xb8] sm:$0xff] }
 0x5a6   : > { %2208 = vmatprep.subr.bf16.mxu0 %v2207_v7  ;;  %v2255_v4 = vpack.c.bf16 %v1553_v2, %v1552_v63  ;;  %v1537_v7 = vld [vmem:[#allocation6 + $0x38] sm:$0xff]  ;;  %v1330_v2 = vld [vmem:[%s2867_s9] sm:$0xf] }
 0x5a7   : > { %v1343_v5 = vrot.slane %v1330_v2, %v583_v41 }
 0x61d   : > { %v1241_v12 = vpop.xlane.xlu1 %1240 }
 0x61e   : > { %v1243_v13 = vmul.f32 0.0078125, %v1241_v12  ;;  %v1324_v12 = vld [vmem:[#allocation4 + $0x1d0] sm:$0xff] }
 0x620   : > { %v2815_v14 = vsub.f32 %v1237_v34, %v1243_v13  ;;  %v2227_v34 = vpack.c.bf16 %v1305_v31, %v1301_v30  ;;  %v1328_v13 = vld [vmem:[#allocation4 + $0x1f0] sm:$0xff]  ;;  %v1579_v30 = vld [vmem:[#allocation6 + $0x188] sm:$0xff] }
 0x621   : > { %v2241_v16 = vpack.c.bf16 %v1328_v13, %v1324_v12  ;;  %v1531_v31 = vld [vmem:[#allocation6 + $0x8] sm:$0xff]  ;;  %v2275_v32 = vpack.c.bf16 %v1579_v30, %v1578_v28  ;;  %v1554_v13 = vld [vmem:[#allocation6 + $0xc0] sm:$0xff]  ;;  %v1557_v28 = vld [vmem:[#allocation6 + $0xd8] sm:$0xff] }
 0x622   : > { %v1245_v15 = vmul.f32 %v2815_v14, %v2815_v14  ;;  %2228 = vmatprep.subr.bf16.mxu1 %v2227_v34  ;;  %v1563_v34 = vld [vmem:[#allocation6 + $0x108] sm:$0xff]  ;;  %v1589_v30 = vld [vmem:[#allocation6 + $0x1d8] sm:$0xff] }
 0x623   : > { %2230 = vmatpush1.bf16.msra.mxu1 %v2229_v39  ;;  %v2277_v35 = vpack.c.bf16 %v1563_v34, %v1562_v33  ;;  %v2247_v39 = vpack.c.bf16 %v1549_v37, %v1548_v36  ;;  %v1572_v33 = vld [vmem:[#allocation6 + $0x150] sm:$0xff]  ;;  %v1558_v36 = vld [vmem:[#allocation6 + $0xe0] sm:$0xff]  ;;  %v1559_v37 = vld [vmem:[#allocation6 + $0xe8] sm:$0xff] }
 0x624   : > { %1246 = vadd.xlane.f32.xlu0 %v1245_v15  ;;  %2232 = vmatprep.subr.bf16.mxu1 %v2231_v44  ;;  %v2209_v15 = vpack.c.bf16 %v1326_v10, %v1322_v9  ;;  %v2249_v44 = vpack.c.bf16 %v1533_v42, %v1532_v0  ;;  %v1568_v10 = vld [vmem:[#allocation6 + $0x130] sm:$0xff]  ;;  %v1591_v0 = vld [vmem:[#allocation6 + $0x1e8] sm:$0xff]  ;;  %v1542_v42 = vld [vmem:[#allocation6 + $0x60] sm:$0xff] }
 0x626   : > { %2210 = vmatpush1.bf16.msra.mxu0 %v2209_v15  ;;  %v1555_v15 = vld [vmem:[#allocation6 + $0xc8] sm:$0xff] }
 0x627   : > { %2234 = vmatpush1.bf16.msra.mxu1 %v2233_v56  ;;  %2244 = vmatprep.subr.bf16.mxu0 %v2243_v29  ;;  %v1583_v56 = vld [vmem:[#allocation6 + $0x1a8] sm:$0xff]  ;;  %v1588_v29 = vld [vmem:[#allocation6 + $0x1d0] sm:$0xff] }
 0x628   : > { %2236 = vmatprep.subr.bf16.mxu1 %v2235_v60  ;;  %v2283_v58 = vpack.c.bf16 %v1583_v56, %v1582_v55  ;;  %v1566_v60 = vld [vmem:[#allocation6 + $0x120] sm:$0xff]  ;;  %v1592_v55 = vld [vmem:[#allocation6 + $0x1f0] sm:$0xff]  ;;  %v2271_v56 = vpack.c.bf16 %v1561_v50, %v1560_v48 }
 0x629   : > { %v2285_v62 = vpack.c.bf16 %v1567_v61, %v1566_v60  ;;  %v1576_v60 = vld [vmem:[#allocation6 + $0x170] sm:$0xff]  ;;  %v1577_v61 = vld [vmem:[#allocation6 + $0x178] sm:$0xff] }
 0x62a   : > { %v2305_v63 = vpack.c.bf16 %v1577_v61, %v1576_v60 }
 0x62b   : > { %2238 = vmatpush1.bf16.msra.mxu1 %v2237_v6  ;;  %v1536_v6 = vld [vmem:[#allocation6 + $0x30] sm:$0xff] }
 0x62c   : > { %2240 = vmatprep.subr.bf16.mxu1 %v2239_v11  ;;  %v2257_v9 = vpack.c.bf16 %v1537_v7, %v1536_v6  ;;  %v1569_v11 = vld [vmem:[#allocation6 + $0x138] sm:$0xff]  ;;  %v1339_v6 = vrot.slane %v1330_v2, %v579_v52  ;;  %v1347_v7 = vrot.slane %v1330_v2, %v1346_v3 }
 0x62d   : > { %v2289_v12 = vpack.c.bf16 %v1569_v11, %v1568_v10 }
 0x62f   : > { %2242 = vmatpush1.bf16.msra.mxu1 %v2241_v16  ;;  %v1586_v16 = vld [vmem:[#allocation6 + $0x1c0] sm:$0xff] }
 0x630   : > { %2276 = vmatprep.subr.bf16.mxu1 %v2275_v32  ;;  %v1540_v32 = vld [vmem:[#allocation6 + $0x50] sm:$0xff] }
 0x6b1   : > { %v1247_v17 = vpop.xlane.xlu0 %1246 }
 0x6b2   : > { %v1248_v18 = vmul.f32 0.0078125, %v1247_v17  ;;  %v2259_v17 = vpack.c.bf16 %v1555_v15, %v1554_v13 }
 0x6b4   : > { %v1249_v19 = vadd.f32 1e-12, %v1248_v18  ;;  %v1587_v18 = vld [vmem:[#allocation6 + $0x1c8] sm:$0xff] }
 0x6b6   : > { %2364 = vrsqrt.f32 %v1249_v19  ;;  %v1538_v19 = vld [vmem:[#allocation6 + $0x40] sm:$0xff] }
 0x6c0   : > { %v2365_v20 = vpop.eup %2364 }
 0x6c1   : > { %v1251_v22 = vmul.f32 %v2365_v20, %v2815_v14  ;;  %v2245_v14 = vpack.c.bf16 %v1531_v31, %v1530_v1  ;;  %v1539_v20 = vld [vmem:[#allocation6 + $0x48] sm:$0xff]  ;;  %v2263_v1 = vpack.c.bf16 %v1557_v28, %v1556_v26  ;;  %v2295_v31 = vpack.c.bf16 %v1589_v30, %v1588_v29 }
 0x6c3   : > { %v1258_v24 = vmul.f32 %v1886_v21, %v1251_v22  ;;  %v2291_v21 = vpack.c.bf16 %v1587_v18, %v1586_v16  ;;  %v2261_v22 = vpack.c.bf16 %v1539_v20, %v1538_v19 }
 0x6c5   : > { %v2826_v25 = vadd.f32 %v1887_v23, %v1258_v24  ;;  %v1570_v23 = vld [vmem:[#allocation6 + $0x140] sm:$0xff]  ;;  %v1571_v24 = vld [vmem:[#allocation6 + $0x148] sm:$0xff] }
 0x6c6   : > { %v2293_v27 = vpack.c.bf16 %v1571_v24, %v1570_v23 }
 0x6c7   : > { %1417 = vmatmul.mubr.f32.vlgmr.msra.gmra.mrb[8].mxu0 %v2826_v25  ;;  %1488 = vmatmul.mubr.f32.vlgmr.msra.gmra.mrb[8].mxu1 %v2826_v25 }
 0x6c8   : > { %2246 = vmatpush3.bf16.msra.mxu0 %v2245_v14  ;;  %2278 = vmatpush3.bf16.msra.mxu1 %v2277_v35  ;;  %v1541_v14 = vld [vmem:[#allocation6 + $0x58] sm:$0xff] }
 0x6c9   : > { %2248 = vmatprep.subr.bf16.mxu0 %v2247_v39  ;;  %2280 = vmatprep.subr.bf16.mxu1 %v2279_v43  ;;  %v2265_v34 = vpack.c.bf16 %v1541_v14, %v1540_v32  ;;  %v1573_v35 = vld [vmem:[#allocation6 + $0x158] sm:$0xff]  ;;  %v2267_v39 = vpack.c.bf16 %v1559_v37, %v1558_v36  ;;  %v2299_v43 = vpack.c.bf16 %v1591_v0, %v1590_v40 }
 0x6ca   : > { %v2297_v38 = vpack.c.bf16 %v1573_v35, %v1572_v33 }
 0x6cc   : > { %2250 = vmatpush3.bf16.msra.mxu0 %v2249_v44  ;;  %2282 = vmatpush3.bf16.msra.mxu1 %v2281_v47  ;;  %v1543_v44 = vld [vmem:[#allocation6 + $0x68] sm:$0xff] }
 0x6cd   : > { %2252 = vmatprep.subr.bf16.mxu0 %v2251_v49  ;;  %2284 = vmatprep.subr.bf16.mxu1 %v2283_v58  ;;  %v2269_v47 = vpack.c.bf16 %v1543_v44, %v1542_v42  ;;  %v2301_v49 = vpack.c.bf16 %v1575_v46, %v1574_v45  ;;  %v1545_v58 = vld [vmem:[#allocation6 + $0x78] sm:$0xff] }
 0x6d0   : > { %2254 = vmatpush3.bf16.msra.mxu0 %v2253_v59  ;;  %2286 = vmatpush3.bf16.msra.mxu1 %v2285_v62  ;;  %v2303_v59 = vpack.c.bf16 %v1593_v57, %v1592_v55  ;;  %v2273_v62 = vpack.c.bf16 %v1545_v58, %v1544_v53  ;;  %v1888_v55 = vld [vmem:[%s2869_s11] ss:$0 sm:$0xff] }
 0x6d1   : > { %2256 = vmatprep.subr.bf16.mxu0 %v2255_v4  ;;  %2288 = vmatprep.subr.bf16.mxu1 %v2287_v8  ;;  %v1335_v4 = vrot.slane %v1330_v2, %v575_v54 }
 0x6d4   : > { %2258 = vmatpush3.bf16.msra.mxu0 %v2257_v9  ;;  %2290 = vmatpush3.bf16.msra.mxu1 %v2289_v12 }
 0x6d5   : > { %2260 = vmatprep.subr.bf16.mxu0 %v2259_v17  ;;  %2292 = vmatprep.subr.bf16.mxu1 %v2291_v21 }
 0x6d8   : > { %2262 = vmatpush3.bf16.msra.mxu0 %v2261_v22  ;;  %2294 = vmatpush3.bf16.msra.mxu1 %v2293_v27 }
 0x6d9   : > { %2264 = vmatprep.subr.bf16.mxu0 %v2263_v1  ;;  %2296 = vmatprep.subr.bf16.mxu1 %v2295_v31 }
 0x6dc   : > { %2266 = vmatpush3.bf16.msra.mxu0 %v2265_v34  ;;  %2298 = vmatpush3.bf16.msra.mxu1 %v2297_v38 }
 0x6dd   : > { %2268 = vmatprep.subr.bf16.mxu0 %v2267_v39  ;;  %2300 = vmatprep.subr.bf16.mxu1 %v2299_v43 }
 0x6e0   : > { %2270 = vmatpush3.bf16.msra.mxu0 %v2269_v47  ;;  %2302 = vmatpush3.bf16.msra.mxu1 %v2301_v49 }
 0x6e1   : > { %2272 = vmatprep.subr.bf16.mxu0 %v2271_v56  ;;  %2304 = vmatprep.subr.bf16.mxu1 %v2303_v59 }
 0x6e4   : > { %2274 = vmatpush3.bf16.msra.mxu0 %v2273_v62  ;;  %2306 = vmatpush3.bf16.msra.mxu1 %v2305_v63 }
 0x79a   : > { %v1418_v8 = vpop.f32.mrb[8].mxu0  ;;  %v1489_v9 = vpop.f32.mrb[8].mxu1 }
 0x79b   : > { %v1419_v10 = vadd.f32 %v1418_v8, %v1335_v4  ;;  %v1490_v11 = vadd.f32 %v1489_v9, %v1343_v5  ;;  %v1420_v12 = vpop.f32.mrb[9].mxu0  ;;  %v1491_v13 = vpop.f32.mrb[9].mxu1 }
 0x79c   : > { %v1421_v15 = vadd.f32 %v1420_v12, %v1339_v6  ;;  %v1492_v16 = vadd.f32 %v1491_v13, %v1347_v7  ;;  %v1889_v7 = vld [vmem:[%s2870_s12] ss:$0 sm:$0xff] }
 0x79d   : > { %v1494_v17 = vmul.f32 %v1419_v10, %v1419_v10  ;;  %v1496_v18 = vmul.f32 %v1490_v11, %v1490_v11 }
 0x79e   : > { %v1495_v19 = vmul.f32 %v1421_v15, %v1421_v15  ;;  %v1497_v20 = vmul.f32 %v1492_v16, %v1492_v16 }
 0x79f   : > { %v1498_v54 = vmul.f32 %v1494_v17, %v1419_v10  ;;  %v1500_v21 = vmul.f32 %v1496_v18, %v1490_v11 }
 0x7a0   : > { %v1499_v22 = vmul.f32 %v1495_v19, %v1421_v15  ;;  %v1501_v41 = vmul.f32 %v1497_v20, %v1492_v16 }
 0x7a1   : > { %v1502_v23 = vmul.f32 0.044715, %v1498_v54  ;;  %v1504_v51 = vmul.f32 0.044715, %v1500_v21 }
 0x7a2   : > { %v1503_v52 = vmul.f32 0.044715, %v1499_v22  ;;  %v1505_v24 = vmul.f32 0.044715, %v1501_v41 }
 0x7a3   : > { %v1506_v26 = vadd.f32 %v1502_v23, %v1419_v10  ;;  %v1508_v27 = vadd.f32 %v1504_v51, %v1490_v11 }
 0x7a4   : > { %v1507_v28 = vadd.f32 %v1503_v52, %v1421_v15  ;;  %v1509_v29 = vadd.f32 %v1505_v24, %v1492_v16 }
 0x7a5   : > { %v1510_v30 = vmul.f32 0.7978846, %v1506_v26  ;;  %v1512_v1 = vmul.f32 0.7978846, %v1508_v27 }
 0x7a6   : > { %v1511_v31 = vmul.f32 0.7978846, %v1507_v28  ;;  %v1513_v32 = vmul.f32 0.7978846, %v1509_v29 }
 0x7a7   : > { %2366 = vtanh.f32 %v1510_v30 }
 0x7a8   : > { %2368 = vtanh.f32 %v1512_v1 }
 0x7a9   : > { %2370 = vtanh.f32 %v1511_v31 }
 0x7aa   : > { %2372 = vtanh.f32 %v1513_v32 }
 0x7b1   : > { %v2367_v14 = vpop.eup %2366 }
 0x7b2   : > { %v2369_v33 = vpop.eup %2368  ;;  %v1518_v34 = vadd.f32 1.0, %v2367_v14 }
 0x7b3   : > { %v2371_v35 = vpop.eup %2370  ;;  %v1520_v36 = vadd.f32 1.0, %v2369_v33 }
 0x7b4   : > { %v2373_v37 = vpop.eup %2372  ;;  %v1519_v38 = vadd.f32 1.0, %v2371_v35  ;;  %v1522_v40 = vmul.f32 0.5, %v1518_v34 }
 0x7b5   : > { %v1521_v39 = vadd.f32 1.0, %v2373_v37  ;;  %v1524_v42 = vmul.f32 0.5, %v1520_v36 }
 0x7b6   : > { %v1523_v0 = vmul.f32 0.5, %v1519_v38  ;;  %v1526_v46 = vmul.f32 %v1522_v40, %v1419_v10 }
 0x7b7   : > { %v1525_v43 = vmul.f32 0.5, %v1521_v39  ;;  %v1528_v47 = vmul.f32 %v1524_v42, %v1490_v11 }
 0x7b8   : > { %v1527_v44 = vmul.f32 %v1523_v0, %v1421_v15 }
 0x7b9   : > { %v1529_v45 = vmul.f32 %v1525_v43, %v1492_v16 }
 0x7ba   : > { %1665 = vmatprep.mubr.f32.mxu0 %v1527_v44 }
 0x7bb   : > { %1735 = vmatprep.mubr.f32.mxu1 %v1529_v45  ;;  %1666 = vmatmul.mubr.f32.vlgmr.msra.gmra.mrb[10].mxu0 %v1526_v46 }
 0x7bc   : > { %1736 = vmatmul.mubr.f32.vlgmr.msra.gmra.mrb[10].mxu1 %v1528_v47 }
 0x88e   : > { %v1968_v48 = vpop.f32.mrb[10].mxu0 }
 0x88f   : > { %v2003_v50 = vpop.f32.mrb[10].mxu1  ;;  %v1969_v49 = vpop.f32.mrb[11].mxu0 }
 0x890   : > { %v1970_v56 = vadd.f32 %v1969_v49, %v1968_v48  ;;  %v2004_v57 = vpop.f32.mrb[11].mxu1 }
 0x891   : > { %v2005_v53 = vadd.f32 %v2004_v57, %v2003_v50 }
 0x892   : > { %v1668_v58 = vadd.f32 %v1970_v56, %v1888_v55 }
 0x894   : > { %v1738_v59 = vadd.f32 %v2005_v53, %v1668_v58 }
 0x896   : > { %v1741_v60 = vadd.f32 %v1738_v59, %v2826_v25  ;;  %v1890_v25 = vld [vmem:[%s2887_s27] ss:$0 sm:$0xff] }
 0x898   : > { %1744 = vadd.xlane.f32.xlu0 %v1741_v60 }
 0x925   : > { %v1745_v61 = vpop.xlane.xlu0 %1744 }
 0x926   : > { %v1746_v62 = vmul.f32 0.0078125, %v1745_v61 }
 0x928   : > { %v1747_v63 = vsub.f32 %v1741_v60, %v1746_v62 }
 0x92a   : > { %v1748_v2 = vmul.f32 %v1747_v63, %v1747_v63 }
 0x92c   : > { %1749 = vadd.xlane.f32.xlu0 %v1748_v2 }
 0x9b9   : > { %v1750_v3 = vpop.xlane.xlu0 %1749 }
 0x9ba   : > { %v1751_v4 = vmul.f32 0.0078125, %v1750_v3 }
 0x9bc   : > { %v1752_v5 = vadd.f32 1e-12, %v1751_v4 }
 0x9be   : > { %2374 = vrsqrt.f32 %v1752_v5 }
 0x9c8   : > { %v2375_v6 = vpop.eup %2374 }
 0x9c9   : > { %v1754_v8 = vmul.f32 %v2375_v6, %v1747_v63 }
 0x9cb   : > { %v1761_v9 = vmul.f32 %v1889_v7, %v1754_v8 }
 0x9cd   : > { %v1768_v10 = vadd.f32 %v1890_v25, %v1761_v9 }
 0x9cf   : > { %1769 = vst [vmem:[%s520_s15] sm:$0xff] %v1768_v10 }
 0x9d0 PF: > { %s2889_s19 = sld [smem:[#allocation9_spill]] }
 0x9d6   : > { %s26_s29 = sadd.s32 1, %s2889_s19  }
 0x9d7   : > { %p23_p13 = scmp.ge.s32.totalorder %s26_s29, 4  }
 0x9d9   :  { %25 = sbr.rel (!%p23_p13) target bundleno = 5 (0x5), region = 122 }
 0x9e0   :  { %1789 = vsyncpa [#allocation3], 1 }
 0x9e1   :  { %1791 = vsyncpa [#allocation3 + $0x1], 1 }
 0x9e2   :  { %1792 = vsyncpa [#allocation5], 1 }

</bundles_post_ra>
